<compile_context>
chip_gen: v7x
topology: tpu7x:2x2x1
jax: 0.10.0
libtpu: 0.0.40
codegen_flags: <defaults>
</compile_context>

<pallas_src>
import functools

import jax
import jax.numpy as jnp
from jax import lax
from jax.experimental import pallas as pl
from jax.experimental.pallas import tpu as pltpu

KSIZE = 3
NKER = 5
H = W = 28
HP = WP = 14              # spatial size after the 2x2 / stride-2 max pool
JW = 16                   # pooled width padded 14 -> 16 (8-aligned sublane merges)
KFC = NKER * HP * JW      # 1120: FC contraction length (padded, extra cols are 0-weighted)
NOUT = 10
NOUT_PAD = 16             # FC output rows padded to a sublane multiple
BLOCK_B = 128             # images per grid step; batch sits on the 128-lane axis
P_ROWS = 2                # pooled rows produced per strip iteration
CROWS = 2 * P_ROWS        # conv rows consumed per strip
N_STRIPS = HP // P_ROWS   # 7


def _kernel(wconv_ref,    # SMEM [NKER*9]          conv weights, flat (co, kh, kw)
            xe_ref,       # VMEM [H+2, JW+1, BB]   even image columns (zero padded), batch on lanes
            xo_ref,       # VMEM [H+2, JW+1, BB]   odd  image columns (zero padded)
            wfc_ref,      # VMEM [NOUT_PAD, KFC]   fc weight, permuted + padded
            bias_ref,     # VMEM [NOUT_PAD, BB]    fc bias, broadcast over lanes
            out_ref,      # VMEM [NOUT_PAD, BB]
            feat_ref):    # VMEM scratch [KFC, BB] pooled features, batch on lanes

    def strip(i, carry):
        h0 = pl.multiple_of(i * CROWS, CROWS)          # first conv row of this strip
        for co in range(NKER):
            ce = None     # conv output at even image columns  [CROWS, JW, BB]
            cod = None    # conv output at odd  image columns
            for kh in range(KSIZE):
                rows = pl.ds(h0 + kh, CROWS)
                xe0 = xe_ref[rows, 0:JW, :]            # xpad[.., 2j    ]
                xo0 = xo_ref[rows, 0:JW, :]            # xpad[.., 2j + 1]
                xe1 = xe_ref[rows, 1:JW + 1, :]        # xpad[.., 2j + 2]
                xo1 = xo_ref[rows, 1:JW + 1, :]        # xpad[.., 2j + 3]
                w0 = wconv_ref[co * 9 + kh * 3 + 0]
                w1 = wconv_ref[co * 9 + kh * 3 + 1]
                w2 = wconv_ref[co * 9 + kh * 3 + 2]
                te = xe0 * w0 + xo0 * w1 + xe1 * w2    # even output columns
                to = xo0 * w0 + xe1 * w1 + xo1 * w2    # odd  output columns
                ce = te if ce is None else ce + te
                cod = to if cod is None else cod + to
            # 2x2 max pool (row pairs via static leading-dim picks, column pairs
            # via the even/odd parity split) then ReLU (commutes with max).
            for p in range(P_ROWS):
                r = jnp.maximum(jnp.maximum(ce[2 * p], ce[2 * p + 1]),
                                jnp.maximum(cod[2 * p], cod[2 * p + 1]))
                r = jnp.maximum(r, 0.0)                                   # [JW, BB]
                off = co * (HP * JW) + (i * P_ROWS + p) * JW
                feat_ref[pl.ds(pl.multiple_of(off, JW), JW), :] = r
        return carry

    lax.fori_loop(0, N_STRIPS, strip, 0)

    # Fully connected: one K-aligned MXU matmul, batch fills the 128-lane N dim.
    out_ref[...] = (
        jnp.dot(wfc_ref[...], feat_ref[...], preferred_element_type=jnp.float32)
        + bias_ref[...])


@functools.partial(jax.jit, static_argnames=("block_b",))
def kernel_fitter_forward(x, conv_w, fc_w, fc_b, *, block_b=BLOCK_B):
    """x: [B,1,28,28] (NCHW); conv_w: [5,1,3,3]; fc_w: [10,980]; fc_b: [10]."""
    B = x.shape[0]
    assert x.shape[1:] == (1, H, W)
    b_pad = ((B + block_b - 1) // block_b) * block_b

    # zero-pad spatially (conv padding=1) and on batch, split image columns
    # into even/odd planes and put the batch on the last (lane) axis.
    xpad = jnp.pad(x[:, 0].astype(jnp.float32),
                   ((0, b_pad - B), (1, 1), (1, 1)))        # [b_pad, 30, 30]
    xe = jnp.pad(xpad[:, :, 0::2], ((0, 0), (0, 0), (0, JW + 1 - 15)))  # cols 0,2,...,28
    xo = jnp.pad(xpad[:, :, 1::2], ((0, 0), (0, 0), (0, JW + 1 - 15)))  # cols 1,3,...,29
    xe_t = jnp.transpose(xe, (1, 2, 0))                     # [30, 17, b_pad]
    xo_t = jnp.transpose(xo, (1, 2, 0))

    wconv_flat = conv_w.astype(jnp.float32).reshape(-1)     # [45] (co, ci=1, kh, kw)

    # fc weight permuted to (n, c, h, j), j padded 14->16 and n 10->16 with
    # zeros, flattened to [16, 1120] to match the kernel's feature layout.
    wfc = fc_w.astype(jnp.float32).reshape(NOUT, NKER, HP, WP)
    wfc = jnp.pad(wfc, ((0, NOUT_PAD - NOUT), (0, 0), (0, 0), (0, JW - WP)))
    wfc = wfc.reshape(NOUT_PAD, KFC)

    bias = jnp.pad(fc_b.astype(jnp.float32), (0, NOUT_PAD - NOUT))
    bias_b = jnp.broadcast_to(bias[:, None], (NOUT_PAD, block_b))

    out = pl.pallas_call(
        _kernel,
        out_shape=jax.ShapeDtypeStruct((NOUT_PAD, b_pad), jnp.float32),
        grid=(b_pad // block_b,),
        in_specs=[
            pl.BlockSpec(memory_space=pltpu.MemorySpace.SMEM),
            pl.BlockSpec((H + 2, JW + 1, block_b), lambda i: (0, 0, i)),
            pl.BlockSpec((H + 2, JW + 1, block_b), lambda i: (0, 0, i)),
            pl.BlockSpec((NOUT_PAD, KFC), lambda i: (0, 0)),
            pl.BlockSpec((NOUT_PAD, block_b), lambda i: (0, 0)),
        ],
        out_specs=pl.BlockSpec((NOUT_PAD, block_b), lambda i: (0, i)),
        scratch_shapes=[pltpu.VMEM((KFC, block_b), jnp.float32)],
        compiler_params=pltpu.CompilerParams(
            dimension_semantics=("parallel",)),
    )(wconv_flat, xe_t, xo_t, wfc, bias_b)

    return jnp.transpose(out[:NOUT, :B])                    # [B, 10]


def _reference(x, conv_w, fc_w, fc_b):
    y = lax.conv_general_dilated(
        x.astype(jnp.float32), conv_w.astype(jnp.float32),
        window_strides=(1, 1), padding=((1, 1), (1, 1)),
        dimension_numbers=("NCHW", "OIHW", "NCHW"))
    y = jnp.maximum(y, 0.0)
    y = lax.reduce_window(y, -jnp.inf, lax.max,
                          window_dimensions=(1, 1, 2, 2),
                          window_strides=(1, 1, 2, 2), padding="VALID")
    feat = y.reshape(x.shape[0], -1)
    return feat @ fc_w.T + fc_b


if __name__ == "__main__":
    key = jax.random.PRNGKey(0)
    k1, k2, k3, k4 = jax.random.split(key, 4)

    B = 2
    x = jax.random.normal(k1, (B, 1, H, W), jnp.float32)
    conv_w = jax.random.normal(k2, (NKER, 1, KSIZE, KSIZE), jnp.float32) * 0.2
    fc_w = jax.random.normal(k3, (NOUT, NKER * HP * WP), jnp.float32) * 0.05
    fc_b = jax.random.normal(k4, (NOUT,), jnp.float32) * 0.1

    out = jax.block_until_ready(kernel_fitter_forward(x, conv_w, fc_w, fc_b))
    ref = jax.block_until_ready(_reference(x, conv_w, fc_w, fc_b))

    assert out.shape == (B, NOUT)
    assert jnp.allclose(out, ref, atol=5e-2, rtol=5e-2), (out, ref)

    print("KERNEL_OK")
</pallas_src>

<mosaic_0001>
module attributes {stable_mosaic.version = 11 : i64} {
  func.func @_kernel(%arg0: i32, %arg1: memref<45xf32, #tpu.memory_space<smem>>, %arg2: memref<30x17x128xf32, #tpu.memory_space<vmem>>, %arg3: memref<30x17x128xf32, #tpu.memory_space<vmem>>, %arg4: memref<16x1120xf32, #tpu.memory_space<vmem>>, %arg5: memref<16x128xf32, #tpu.memory_space<vmem>>, %arg6: memref<16x128xf32, #tpu.memory_space<vmem>>, %arg7: memref<1120x128xf32, #tpu.memory_space<vmem>>) attributes {dimension_semantics = [#tpu.dimension_semantics<parallel>], iteration_bounds = array<i64: 1>, scalar_prefetch = 0 : i64, scratch_operands = 1 : i64, tpu.core_type = #tpu.core_type<tc>, window_params = [{transform_indices = @transform_0, window_bounds = array<i64: 45>}, {transform_indices = @transform_1, window_bounds = array<i64: 30, 17, 128>}, {transform_indices = @transform_2, window_bounds = array<i64: 30, 17, 128>}, {pipeline_mode = #tpu.pipeline_mode<synchronous>, transform_indices = @transform_3, window_bounds = array<i64: 16, 1120>}, {pipeline_mode = #tpu.pipeline_mode<synchronous>, transform_indices = @transform_4, window_bounds = array<i64: 16, 128>}, {transform_indices = @transform_5, window_bounds = array<i64: 16, 128>}]} {
    %c0_i32 = arith.constant 0 : i32
    %c7_i32 = arith.constant 7 : i32
    %0 = arith.addi %c0_i32, %c7_i32 : i32
    %c1_i32 = arith.constant 1 : i32
    scf.for %arg8 = %c0_i32 to %0 step %c1_i32  : i32 {
      %c4_i32 = arith.constant 4 : i32
      %7 = arith.muli %arg8, %c4_i32 : i32
      %8 = tpu.assume_multiple %7, 4 : i32
      %c0_i32_8 = arith.constant 0 : i32
      %9 = arith.addi %8, %c0_i32_8 : i32
      %10 = arith.index_cast %9 : i32 to index
      %c0_9 = arith.constant 0 : index
      %c0_10 = arith.constant 0 : index
      %11 = vector.load %arg2[%10, %c0_9, %c0_10] : memref<30x17x128xf32, #tpu.memory_space<vmem>>, vector<4x16x128xf32>
      %12 = arith.index_cast %9 : i32 to index
      %c0_11 = arith.constant 0 : index
      %c0_12 = arith.constant 0 : index
      %13 = vector.load %arg3[%12, %c0_11, %c0_12] : memref<30x17x128xf32, #tpu.memory_space<vmem>>, vector<4x16x128xf32>
      %14 = arith.index_cast %9 : i32 to index
      %c1 = arith.constant 1 : index
      %c0_13 = arith.constant 0 : index
      %15 = vector.load %arg2[%14, %c1, %c0_13] : memref<30x17x128xf32, #tpu.memory_space<vmem>>, vector<4x16x128xf32>
      %16 = arith.index_cast %9 : i32 to index
      %c1_14 = arith.constant 1 : index
      %c0_15 = arith.constant 0 : index
      %17 = vector.load %arg3[%16, %c1_14, %c0_15] : memref<30x17x128xf32, #tpu.memory_space<vmem>>, vector<4x16x128xf32>
      %c0_16 = arith.constant 0 : index
      %18 = memref.load %arg1[%c0_16] : memref<45xf32, #tpu.memory_space<smem>>
      %c1_17 = arith.constant 1 : index
      %19 = memref.load %arg1[%c1_17] : memref<45xf32, #tpu.memory_space<smem>>
      %c2 = arith.constant 2 : index
      %20 = memref.load %arg1[%c2] : memref<45xf32, #tpu.memory_space<smem>>
      %21 = vector.broadcast %18 : f32 to vector<4x16x128xf32>
      %22 = arith.mulf %11, %21 : vector<4x16x128xf32>
      %23 = vector.broadcast %19 : f32 to vector<4x16x128xf32>
      %24 = arith.mulf %13, %23 : vector<4x16x128xf32>
      %25 = arith.addf %22, %24 : vector<4x16x128xf32>
      %26 = vector.broadcast %20 : f32 to vector<4x16x128xf32>
      %27 = arith.mulf %15, %26 : vector<4x16x128xf32>
      %28 = arith.addf %25, %27 : vector<4x16x128xf32>
      %29 = vector.broadcast %18 : f32 to vector<4x16x128xf32>
      %30 = arith.mulf %13, %29 : vector<4x16x128xf32>
      %31 = vector.broadcast %19 : f32 to vector<4x16x128xf32>
      %32 = arith.mulf %15, %31 : vector<4x16x128xf32>
      %33 = arith.addf %30, %32 : vector<4x16x128xf32>
      %34 = vector.broadcast %20 : f32 to vector<4x16x128xf32>
      %35 = arith.mulf %17, %34 : vector<4x16x128xf32>
      %36 = arith.addf %33, %35 : vector<4x16x128xf32>
      %c1_i32_18 = arith.constant 1 : i32
      %37 = arith.addi %8, %c1_i32_18 : i32
      %38 = arith.index_cast %37 : i32 to index
      %c0_19 = arith.constant 0 : index
      %c0_20 = arith.constant 0 : index
      %39 = vector.load %arg2[%38, %c0_19, %c0_20] : memref<30x17x128xf32, #tpu.memory_space<vmem>>, vector<4x16x128xf32>
      %40 = arith.index_cast %37 : i32 to index
      %c0_21 = arith.constant 0 : index
      %c0_22 = arith.constant 0 : index
      %41 = vector.load %arg3[%40, %c0_21, %c0_22] : memref<30x17x128xf32, #tpu.memory_space<vmem>>, vector<4x16x128xf32>
      %42 = arith.index_cast %37 : i32 to index
      %c1_23 = arith.constant 1 : index
      %c0_24 = arith.constant 0 : index
      %43 = vector.load %arg2[%42, %c1_23, %c0_24] : memref<30x17x128xf32, #tpu.memory_space<vmem>>, vector<4x16x128xf32>
      %44 = arith.index_cast %37 : i32 to index
      %c1_25 = arith.constant 1 : index
      %c0_26 = arith.constant 0 : index
      %45 = vector.load %arg3[%44, %c1_25, %c0_26] : memref<30x17x128xf32, #tpu.memory_space<vmem>>, vector<4x16x128xf32>
      %c3 = arith.constant 3 : index
      %46 = memref.load %arg1[%c3] : memref<45xf32, #tpu.memory_space<smem>>
      %c4 = arith.constant 4 : index
      %47 = memref.load %arg1[%c4] : memref<45xf32, #tpu.memory_space<smem>>
      %c5 = arith.constant 5 : index
      %48 = memref.load %arg1[%c5] : memref<45xf32, #tpu.memory_space<smem>>
      %49 = vector.broadcast %46 : f32 to vector<4x16x128xf32>
      %50 = arith.mulf %39, %49 : vector<4x16x128xf32>
      %51 = vector.broadcast %47 : f32 to vector<4x16x128xf32>
      %52 = arith.mulf %41, %51 : vector<4x16x128xf32>
      %53 = arith.addf %50, %52 : vector<4x16x128xf32>
      %54 = vector.broadcast %48 : f32 to vector<4x16x128xf32>
      %55 = arith.mulf %43, %54 : vector<4x16x128xf32>
      %56 = arith.addf %53, %55 : vector<4x16x128xf32>
      %57 = vector.broadcast %46 : f32 to vector<4x16x128xf32>
      %58 = arith.mulf %41, %57 : vector<4x16x128xf32>
      %59 = vector.broadcast %47 : f32 to vector<4x16x128xf32>
      %60 = arith.mulf %43, %59 : vector<4x16x128xf32>
      %61 = arith.addf %58, %60 : vector<4x16x128xf32>
      %62 = vector.broadcast %48 : f32 to vector<4x16x128xf32>
      %63 = arith.mulf %45, %62 : vector<4x16x128xf32>
      %64 = arith.addf %61, %63 : vector<4x16x128xf32>
      %65 = arith.addf %28, %56 : vector<4x16x128xf32>
      %66 = arith.addf %36, %64 : vector<4x16x128xf32>
      %c2_i32 = arith.constant 2 : i32
      %67 = arith.addi %8, %c2_i32 : i32
      %68 = arith.index_cast %67 : i32 to index
      %c0_27 = arith.constant 0 : index
      %c0_28 = arith.constant 0 : index
      %69 = vector.load %arg2[%68, %c0_27, %c0_28] : memref<30x17x128xf32, #tpu.memory_space<vmem>>, vector<4x16x128xf32>
      %70 = arith.index_cast %67 : i32 to index
      %c0_29 = arith.constant 0 : index
      %c0_30 = arith.constant 0 : index
      %71 = vector.load %arg3[%70, %c0_29, %c0_30] : memref<30x17x128xf32, #tpu.memory_space<vmem>>, vector<4x16x128xf32>
      %72 = arith.index_cast %67 : i32 to index
      %c1_31 = arith.constant 1 : index
      %c0_32 = arith.constant 0 : index
      %73 = vector.load %arg2[%72, %c1_31, %c0_32] : memref<30x17x128xf32, #tpu.memory_space<vmem>>, vector<4x16x128xf32>
      %74 = arith.index_cast %67 : i32 to index
      %c1_33 = arith.constant 1 : index
      %c0_34 = arith.constant 0 : index
      %75 = vector.load %arg3[%74, %c1_33, %c0_34] : memref<30x17x128xf32, #tpu.memory_space<vmem>>, vector<4x16x128xf32>
      %c6 = arith.constant 6 : index
      %76 = memref.load %arg1[%c6] : memref<45xf32, #tpu.memory_space<smem>>
      %c7 = arith.constant 7 : index
      %77 = memref.load %arg1[%c7] : memref<45xf32, #tpu.memory_space<smem>>
      %c8 = arith.constant 8 : index
      %78 = memref.load %arg1[%c8] : memref<45xf32, #tpu.memory_space<smem>>
      %79 = vector.broadcast %76 : f32 to vector<4x16x128xf32>
      %80 = arith.mulf %69, %79 : vector<4x16x128xf32>
      %81 = vector.broadcast %77 : f32 to vector<4x16x128xf32>
      %82 = arith.mulf %71, %81 : vector<4x16x128xf32>
      %83 = arith.addf %80, %82 : vector<4x16x128xf32>
      %84 = vector.broadcast %78 : f32 to vector<4x16x128xf32>
      %85 = arith.mulf %73, %84 : vector<4x16x128xf32>
      %86 = arith.addf %83, %85 : vector<4x16x128xf32>
      %87 = vector.broadcast %76 : f32 to vector<4x16x128xf32>
      %88 = arith.mulf %71, %87 : vector<4x16x128xf32>
      %89 = vector.broadcast %77 : f32 to vector<4x16x128xf32>
      %90 = arith.mulf %73, %89 : vector<4x16x128xf32>
      %91 = arith.addf %88, %90 : vector<4x16x128xf32>
      %92 = vector.broadcast %78 : f32 to vector<4x16x128xf32>
      %93 = arith.mulf %75, %92 : vector<4x16x128xf32>
      %94 = arith.addf %91, %93 : vector<4x16x128xf32>
      %95 = arith.addf %65, %86 : vector<4x16x128xf32>
      %96 = arith.addf %66, %94 : vector<4x16x128xf32>
      %97 = vector.extract_strided_slice %95 {offsets = [0, 0, 0], sizes = [1, 16, 128], strides = [1, 1, 1]} : vector<4x16x128xf32> to vector<1x16x128xf32>
      %98 = vector.shape_cast %97 : vector<1x16x128xf32> to vector<16x128xf32>
      %99 = vector.extract_strided_slice %95 {offsets = [1, 0, 0], sizes = [1, 16, 128], strides = [1, 1, 1]} : vector<4x16x128xf32> to vector<1x16x128xf32>
      %100 = vector.shape_cast %99 : vector<1x16x128xf32> to vector<16x128xf32>
      %101 = arith.maximumf %98, %100 : vector<16x128xf32>
      %102 = vector.extract_strided_slice %96 {offsets = [0, 0, 0], sizes = [1, 16, 128], strides = [1, 1, 1]} : vector<4x16x128xf32> to vector<1x16x128xf32>
      %103 = vector.shape_cast %102 : vector<1x16x128xf32> to vector<16x128xf32>
      %104 = vector.extract_strided_slice %96 {offsets = [1, 0, 0], sizes = [1, 16, 128], strides = [1, 1, 1]} : vector<4x16x128xf32> to vector<1x16x128xf32>
      %105 = vector.shape_cast %104 : vector<1x16x128xf32> to vector<16x128xf32>
      %106 = arith.maximumf %103, %105 : vector<16x128xf32>
      %107 = arith.maximumf %101, %106 : vector<16x128xf32>
      %cst_35 = arith.constant 0.000000e+00 : f32
      %108 = vector.broadcast %cst_35 : f32 to vector<16x128xf32>
      %109 = arith.maximumf %107, %108 : vector<16x128xf32>
      %c2_i32_36 = arith.constant 2 : i32
      %110 = arith.muli %arg8, %c2_i32_36 : i32
      %c0_i32_37 = arith.constant 0 : i32
      %111 = arith.addi %110, %c0_i32_37 : i32
      %c16_i32 = arith.constant 16 : i32
      %112 = arith.muli %111, %c16_i32 : i32
      %c0_i32_38 = arith.constant 0 : i32
      %113 = arith.addi %c0_i32_38, %112 : i32
      %114 = tpu.assume_multiple %113, 16 : i32
      %115 = arith.index_cast %114 : i32 to index
      %c0_39 = arith.constant 0 : index
      %116 = vector.load %arg7[%115, %c0_39] : memref<1120x128xf32, #tpu.memory_space<vmem>>, vector<16x128xf32>
      tpu.vector_store %arg7[%115, %c0_39], %109 {strides = array<i32>} : memref<1120x128xf32, #tpu.memory_space<vmem>>, vector<16x128xf32>,
      %117 = vector.extract_strided_slice %95 {offsets = [2, 0, 0], sizes = [1, 16, 128], strides = [1, 1, 1]} : vector<4x16x128xf32> to vector<1x16x128xf32>
      %118 = vector.shape_cast %117 : vector<1x16x128xf32> to vector<16x128xf32>
      %119 = vector.extract_strided_slice %95 {offsets = [3, 0, 0], sizes = [1, 16, 128], strides = [1, 1, 1]} : vector<4x16x128xf32> to vector<1x16x128xf32>
      %120 = vector.shape_cast %119 : vector<1x16x128xf32> to vector<16x128xf32>
      %121 = arith.maximumf %118, %120 : vector<16x128xf32>
      %122 = vector.extract_strided_slice %96 {offsets = [2, 0, 0], sizes = [1, 16, 128], strides = [1, 1, 1]} : vector<4x16x128xf32> to vector<1x16x128xf32>
      %123 = vector.shape_cast %122 : vector<1x16x128xf32> to vector<16x128xf32>
      %124 = vector.extract_strided_slice %96 {offsets = [3, 0, 0], sizes = [1, 16, 128], strides = [1, 1, 1]} : vector<4x16x128xf32> to vector<1x16x128xf32>
      %125 = vector.shape_cast %124 : vector<1x16x128xf32> to vector<16x128xf32>
      %126 = arith.maximumf %123, %125 : vector<16x128xf32>
      %127 = arith.maximumf %121, %126 : vector<16x128xf32>
      %cst_40 = arith.constant 0.000000e+00 : f32
      %128 = vector.broadcast %cst_40 : f32 to vector<16x128xf32>
      %129 = arith.maximumf %127, %128 : vector<16x128xf32>
      %c2_i32_41 = arith.constant 2 : i32
      %130 = arith.muli %arg8, %c2_i32_41 : i32
      %c1_i32_42 = arith.constant 1 : i32
      %131 = arith.addi %130, %c1_i32_42 : i32
      %c16_i32_43 = arith.constant 16 : i32
      %132 = arith.muli %131, %c16_i32_43 : i32
      %c0_i32_44 = arith.constant 0 : i32
      %133 = arith.addi %c0_i32_44, %132 : i32
      %134 = tpu.assume_multiple %133, 16 : i32
      %135 = arith.index_cast %134 : i32 to index
      %c0_45 = arith.constant 0 : index
      %136 = vector.load %arg7[%135, %c0_45] : memref<1120x128xf32, #tpu.memory_space<vmem>>, vector<16x128xf32>
      tpu.vector_store %arg7[%135, %c0_45], %129 {strides = array<i32>} : memref<1120x128xf32, #tpu.memory_space<vmem>>, vector<16x128xf32>,
      %c0_i32_46 = arith.constant 0 : i32
      %137 = arith.addi %8, %c0_i32_46 : i32
      %138 = arith.index_cast %137 : i32 to index
      %c0_47 = arith.constant 0 : index
      %c0_48 = arith.constant 0 : index
      %139 = vector.load %arg2[%138, %c0_47, %c0_48] : memref<30x17x128xf32, #tpu.memory_space<vmem>>, vector<4x16x128xf32>
      %140 = arith.index_cast %137 : i32 to index
      %c0_49 = arith.constant 0 : index
      %c0_50 = arith.constant 0 : index
      %141 = vector.load %arg3[%140, %c0_49, %c0_50] : memref<30x17x128xf32, #tpu.memory_space<vmem>>, vector<4x16x128xf32>
      %142 = arith.index_cast %137 : i32 to index
      %c1_51 = arith.constant 1 : index
      %c0_52 = arith.constant 0 : index
      %143 = vector.load %arg2[%142, %c1_51, %c0_52] : memref<30x17x128xf32, #tpu.memory_space<vmem>>, vector<4x16x128xf32>
      %144 = arith.index_cast %137 : i32 to index
      %c1_53 = arith.constant 1 : index
      %c0_54 = arith.constant 0 : index
      %145 = vector.load %arg3[%144, %c1_53, %c0_54] : memref<30x17x128xf32, #tpu.memory_space<vmem>>, vector<4x16x128xf32>
      %c9 = arith.constant 9 : index
      %146 = memref.load %arg1[%c9] : memref<45xf32, #tpu.memory_space<smem>>
      %c10 = arith.constant 10 : index
      %147 = memref.load %arg1[%c10] : memref<45xf32, #tpu.memory_space<smem>>
      %c11 = arith.constant 11 : index
      %148 = memref.load %arg1[%c11] : memref<45xf32, #tpu.memory_space<smem>>
      %149 = vector.broadcast %146 : f32 to vector<4x16x128xf32>
      %150 = arith.mulf %139, %149 : vector<4x16x128xf32>
      %151 = vector.broadcast %147 : f32 to vector<4x16x128xf32>
      %152 = arith.mulf %141, %151 : vector<4x16x128xf32>
      %153 = arith.addf %150, %152 : vector<4x16x128xf32>
      %154 = vector.broadcast %148 : f32 to vector<4x16x128xf32>
      %155 = arith.mulf %143, %154 : vector<4x16x128xf32>
      %156 = arith.addf %153, %155 : vector<4x16x128xf32>
      %157 = vector.broadcast %146 : f32 to vector<4x16x128xf32>
      %158 = arith.mulf %141, %157 : vector<4x16x128xf32>
      %159 = vector.broadcast %147 : f32 to vector<4x16x128xf32>
      %160 = arith.mulf %143, %159 : vector<4x16x128xf32>
      %161 = arith.addf %158, %160 : vector<4x16x128xf32>
      %162 = vector.broadcast %148 : f32 to vector<4x16x128xf32>
      %163 = arith.mulf %145, %162 : vector<4x16x128xf32>
      %164 = arith.addf %161, %163 : vector<4x16x128xf32>
      %c1_i32_55 = arith.constant 1 : i32
      %165 = arith.addi %8, %c1_i32_55 : i32
      %166 = arith.index_cast %165 : i32 to index
      %c0_56 = arith.constant 0 : index
      %c0_57 = arith.constant 0 : index
      %167 = vector.load %arg2[%166, %c0_56, %c0_57] : memref<30x17x128xf32, #tpu.memory_space<vmem>>, vector<4x16x128xf32>
      %168 = arith.index_cast %165 : i32 to index
      %c0_58 = arith.constant 0 : index
      %c0_59 = arith.constant 0 : index
      %169 = vector.load %arg3[%168, %c0_58, %c0_59] : memref<30x17x128xf32, #tpu.memory_space<vmem>>, vector<4x16x128xf32>
      %170 = arith.index_cast %165 : i32 to index
      %c1_60 = arith.constant 1 : index
      %c0_61 = arith.constant 0 : index
      %171 = vector.load %arg2[%170, %c1_60, %c0_61] : memref<30x17x128xf32, #tpu.memory_space<vmem>>, vector<4x16x128xf32>
      %172 = arith.index_cast %165 : i32 to index
      %c1_62 = arith.constant 1 : index
      %c0_63 = arith.constant 0 : index
      %173 = vector.load %arg3[%172, %c1_62, %c0_63] : memref<30x17x128xf32, #tpu.memory_space<vmem>>, vector<4x16x128xf32>
      %c12 = arith.constant 12 : index
      %174 = memref.load %arg1[%c12] : memref<45xf32, #tpu.memory_space<smem>>
      %c13 = arith.constant 13 : index
      %175 = memref.load %arg1[%c13] : memref<45xf32, #tpu.memory_space<smem>>
      %c14 = arith.constant 14 : index
      %176 = memref.load %arg1[%c14] : memref<45xf32, #tpu.memory_space<smem>>
      %177 = vector.broadcast %174 : f32 to vector<4x16x128xf32>
      %178 = arith.mulf %167, %177 : vector<4x16x128xf32>
      %179 = vector.broadcast %175 : f32 to vector<4x16x128xf32>
      %180 = arith.mulf %169, %179 : vector<4x16x128xf32>
      %181 = arith.addf %178, %180 : vector<4x16x128xf32>
      %182 = vector.broadcast %176 : f32 to vector<4x16x128xf32>
      %183 = arith.mulf %171, %182 : vector<4x16x128xf32>
      %184 = arith.addf %181, %183 : vector<4x16x128xf32>
      %185 = vector.broadcast %174 : f32 to vector<4x16x128xf32>
      %186 = arith.mulf %169, %185 : vector<4x16x128xf32>
      %187 = vector.broadcast %175 : f32 to vector<4x16x128xf32>
      %188 = arith.mulf %171, %187 : vector<4x16x128xf32>
      %189 = arith.addf %186, %188 : vector<4x16x128xf32>
      %190 = vector.broadcast %176 : f32 to vector<4x16x128xf32>
      %191 = arith.mulf %173, %190 : vector<4x16x128xf32>
      %192 = arith.addf %189, %191 : vector<4x16x128xf32>
      %193 = arith.addf %156, %184 : vector<4x16x128xf32>
      %194 = arith.addf %164, %192 : vector<4x16x128xf32>
      %c2_i32_64 = arith.constant 2 : i32
      %195 = arith.addi %8, %c2_i32_64 : i32
      %196 = arith.index_cast %195 : i32 to index
      %c0_65 = arith.constant 0 : index
      %c0_66 = arith.constant 0 : index
      %197 = vector.load %arg2[%196, %c0_65, %c0_66] : memref<30x17x128xf32, #tpu.memory_space<vmem>>, vector<4x16x128xf32>
      %198 = arith.index_cast %195 : i32 to index
      %c0_67 = arith.constant 0 : index
      %c0_68 = arith.constant 0 : index
      %199 = vector.load %arg3[%198, %c0_67, %c0_68] : memref<30x17x128xf32, #tpu.memory_space<vmem>>, vector<4x16x128xf32>
      %200 = arith.index_cast %195 : i32 to index
      %c1_69 = arith.constant 1 : index
      %c0_70 = arith.constant 0 : index
      %201 = vector.load %arg2[%200, %c1_69, %c0_70] : memref<30x17x128xf32, #tpu.memory_space<vmem>>, vector<4x16x128xf32>
      %202 = arith.index_cast %195 : i32 to index
      %c1_71 = arith.constant 1 : index
      %c0_72 = arith.constant 0 : index
      %203 = vector.load %arg3[%202, %c1_71, %c0_72] : memref<30x17x128xf32, #tpu.memory_space<vmem>>, vector<4x16x128xf32>
      %c15 = arith.constant 15 : index
      %204 = memref.load %arg1[%c15] : memref<45xf32, #tpu.memory_space<smem>>
      %c16 = arith.constant 16 : index
      %205 = memref.load %arg1[%c16] : memref<45xf32, #tpu.memory_space<smem>>
      %c17 = arith.constant 17 : index
      %206 = memref.load %arg1[%c17] : memref<45xf32, #tpu.memory_space<smem>>
      %207 = vector.broadcast %204 : f32 to vector<4x16x128xf32>
      %208 = arith.mulf %197, %207 : vector<4x16x128xf32>
      %209 = vector.broadcast %205 : f32 to vector<4x16x128xf32>
      %210 = arith.mulf %199, %209 : vector<4x16x128xf32>
      %211 = arith.addf %208, %210 : vector<4x16x128xf32>
      %212 = vector.broadcast %206 : f32 to vector<4x16x128xf32>
      %213 = arith.mulf %201, %212 : vector<4x16x128xf32>
      %214 = arith.addf %211, %213 : vector<4x16x128xf32>
      %215 = vector.broadcast %204 : f32 to vector<4x16x128xf32>
      %216 = arith.mulf %199, %215 : vector<4x16x128xf32>
      %217 = vector.broadcast %205 : f32 to vector<4x16x128xf32>
      %218 = arith.mulf %201, %217 : vector<4x16x128xf32>
      %219 = arith.addf %216, %218 : vector<4x16x128xf32>
      %220 = vector.broadcast %206 : f32 to vector<4x16x128xf32>
      %221 = arith.mulf %203, %220 : vector<4x16x128xf32>
      %222 = arith.addf %219, %221 : vector<4x16x128xf32>
      %223 = arith.addf %193, %214 : vector<4x16x128xf32>
      %224 = arith.addf %194, %222 : vector<4x16x128xf32>
      %225 = vector.extract_strided_slice %223 {offsets = [0, 0, 0], sizes = [1, 16, 128], strides = [1, 1, 1]} : vector<4x16x128xf32> to vector<1x16x128xf32>
      %226 = vector.shape_cast %225 : vector<1x16x128xf32> to vector<16x128xf32>
      %227 = vector.extract_strided_slice %223 {offsets = [1, 0, 0], sizes = [1, 16, 128], strides = [1, 1, 1]} : vector<4x16x128xf32> to vector<1x16x128xf32>
      %228 = vector.shape_cast %227 : vector<1x16x128xf32> to vector<16x128xf32>
      %229 = arith.maximumf %226, %228 : vector<16x128xf32>
      %230 = vector.extract_strided_slice %224 {offsets = [0, 0, 0], sizes = [1, 16, 128], strides = [1, 1, 1]} : vector<4x16x128xf32> to vector<1x16x128xf32>
      %231 = vector.shape_cast %230 : vector<1x16x128xf32> to vector<16x128xf32>
      %232 = vector.extract_strided_slice %224 {offsets = [1, 0, 0], sizes = [1, 16, 128], strides = [1, 1, 1]} : vector<4x16x128xf32> to vector<1x16x128xf32>
      %233 = vector.shape_cast %232 : vector<1x16x128xf32> to vector<16x128xf32>
      %234 = arith.maximumf %231, %233 : vector<16x128xf32>
      %235 = arith.maximumf %229, %234 : vector<16x128xf32>
      %cst_73 = arith.constant 0.000000e+00 : f32
      %236 = vector.broadcast %cst_73 : f32 to vector<16x128xf32>
      %237 = arith.maximumf %235, %236 : vector<16x128xf32>
      %c2_i32_74 = arith.constant 2 : i32
      %238 = arith.muli %arg8, %c2_i32_74 : i32
      %c0_i32_75 = arith.constant 0 : i32
      %239 = arith.addi %238, %c0_i32_75 : i32
      %c16_i32_76 = arith.constant 16 : i32
      %240 = arith.muli %239, %c16_i32_76 : i32
      %c224_i32 = arith.constant 224 : i32
      %241 = arith.addi %c224_i32, %240 : i32
      %242 = tpu.assume_multiple %241, 16 : i32
      %243 = arith.index_cast %242 : i32 to index
      %c0_77 = arith.constant 0 : index
      %244 = vector.load %arg7[%243, %c0_77] : memref<1120x128xf32, #tpu.memory_space<vmem>>, vector<16x128xf32>
      tpu.vector_store %arg7[%243, %c0_77], %237 {strides = array<i32>} : memref<1120x128xf32, #tpu.memory_space<vmem>>, vector<16x128xf32>,
      %245 = vector.extract_strided_slice %223 {offsets = [2, 0, 0], sizes = [1, 16, 128], strides = [1, 1, 1]} : vector<4x16x128xf32> to vector<1x16x128xf32>
      %246 = vector.shape_cast %245 : vector<1x16x128xf32> to vector<16x128xf32>
      %247 = vector.extract_strided_slice %223 {offsets = [3, 0, 0], sizes = [1, 16, 128], strides = [1, 1, 1]} : vector<4x16x128xf32> to vector<1x16x128xf32>
      %248 = vector.shape_cast %247 : vector<1x16x128xf32> to vector<16x128xf32>
      %249 = arith.maximumf %246, %248 : vector<16x128xf32>
      %250 = vector.extract_strided_slice %224 {offsets = [2, 0, 0], sizes = [1, 16, 128], strides = [1, 1, 1]} : vector<4x16x128xf32> to vector<1x16x128xf32>
      %251 = vector.shape_cast %250 : vector<1x16x128xf32> to vector<16x128xf32>
      %252 = vector.extract_strided_slice %224 {offsets = [3, 0, 0], sizes = [1, 16, 128], strides = [1, 1, 1]} : vector<4x16x128xf32> to vector<1x16x128xf32>
      %253 = vector.shape_cast %252 : vector<1x16x128xf32> to vector<16x128xf32>
      %254 = arith.maximumf %251, %253 : vector<16x128xf32>
      %255 = arith.maximumf %249, %254 : vector<16x128xf32>
      %cst_78 = arith.constant 0.000000e+00 : f32
      %256 = vector.broadcast %cst_78 : f32 to vector<16x128xf32>
      %257 = arith.maximumf %255, %256 : vector<16x128xf32>
      %c2_i32_79 = arith.constant 2 : i32
      %258 = arith.muli %arg8, %c2_i32_79 : i32
      %c1_i32_80 = arith.constant 1 : i32
      %259 = arith.addi %258, %c1_i32_80 : i32
      %c16_i32_81 = arith.constant 16 : i32
      %260 = arith.muli %259, %c16_i32_81 : i32
      %c224_i32_82 = arith.constant 224 : i32
      %261 = arith.addi %c224_i32_82, %260 : i32
      %262 = tpu.assume_multiple %261, 16 : i32
      %263 = arith.index_cast %262 : i32 to index
      %c0_83 = arith.constant 0 : index
      %264 = vector.load %arg7[%263, %c0_83] : memref<1120x128xf32, #tpu.memory_space<vmem>>, vector<16x128xf32>
      tpu.vector_store %arg7[%263, %c0_83], %257 {strides = array<i32>} : memref<1120x128xf32, #tpu.memory_space<vmem>>, vector<16x128xf32>,
      %c0_i32_84 = arith.constant 0 : i32
      %265 = arith.addi %8, %c0_i32_84 : i32
      %266 = arith.index_cast %265 : i32 to index
      %c0_85 = arith.constant 0 : index
      %c0_86 = arith.constant 0 : index
      %267 = vector.load %arg2[%266, %c0_85, %c0_86] : memref<30x17x128xf32, #tpu.memory_space<vmem>>, vector<4x16x128xf32>
      %268 = arith.index_cast %265 : i32 to index
      %c0_87 = arith.constant 0 : index
      %c0_88 = arith.constant 0 : index
      %269 = vector.load %arg3[%268, %c0_87, %c0_88] : memref<30x17x128xf32, #tpu.memory_space<vmem>>, vector<4x16x128xf32>
      %270 = arith.index_cast %265 : i32 to index
      %c1_89 = arith.constant 1 : index
      %c0_90 = arith.constant 0 : index
      %271 = vector.load %arg2[%270, %c1_89, %c0_90] : memref<30x17x128xf32, #tpu.memory_space<vmem>>, vector<4x16x128xf32>
      %272 = arith.index_cast %265 : i32 to index
      %c1_91 = arith.constant 1 : index
      %c0_92 = arith.constant 0 : index
      %273 = vector.load %arg3[%272, %c1_91, %c0_92] : memref<30x17x128xf32, #tpu.memory_space<vmem>>, vector<4x16x128xf32>
      %c18 = arith.constant 18 : index
      %274 = memref.load %arg1[%c18] : memref<45xf32, #tpu.memory_space<smem>>
      %c19 = arith.constant 19 : index
      %275 = memref.load %arg1[%c19] : memref<45xf32, #tpu.memory_space<smem>>
      %c20 = arith.constant 20 : index
      %276 = memref.load %arg1[%c20] : memref<45xf32, #tpu.memory_space<smem>>
      %277 = vector.broadcast %274 : f32 to vector<4x16x128xf32>
      %278 = arith.mulf %267, %277 : vector<4x16x128xf32>
      %279 = vector.broadcast %275 : f32 to vector<4x16x128xf32>
      %280 = arith.mulf %269, %279 : vector<4x16x128xf32>
      %281 = arith.addf %278, %280 : vector<4x16x128xf32>
      %282 = vector.broadcast %276 : f32 to vector<4x16x128xf32>
      %283 = arith.mulf %271, %282 : vector<4x16x128xf32>
      %284 = arith.addf %281, %283 : vector<4x16x128xf32>
      %285 = vector.broadcast %274 : f32 to vector<4x16x128xf32>
      %286 = arith.mulf %269, %285 : vector<4x16x128xf32>
      %287 = vector.broadcast %275 : f32 to vector<4x16x128xf32>
      %288 = arith.mulf %271, %287 : vector<4x16x128xf32>
      %289 = arith.addf %286, %288 : vector<4x16x128xf32>
      %290 = vector.broadcast %276 : f32 to vector<4x16x128xf32>
      %291 = arith.mulf %273, %290 : vector<4x16x128xf32>
      %292 = arith.addf %289, %291 : vector<4x16x128xf32>
      %c1_i32_93 = arith.constant 1 : i32
      %293 = arith.addi %8, %c1_i32_93 : i32
      %294 = arith.index_cast %293 : i32 to index
      %c0_94 = arith.constant 0 : index
      %c0_95 = arith.constant 0 : index
      %295 = vector.load %arg2[%294, %c0_94, %c0_95] : memref<30x17x128xf32, #tpu.memory_space<vmem>>, vector<4x16x128xf32>
      %296 = arith.index_cast %293 : i32 to index
      %c0_96 = arith.constant 0 : index
      %c0_97 = arith.constant 0 : index
      %297 = vector.load %arg3[%296, %c0_96, %c0_97] : memref<30x17x128xf32, #tpu.memory_space<vmem>>, vector<4x16x128xf32>
      %298 = arith.index_cast %293 : i32 to index
      %c1_98 = arith.constant 1 : index
      %c0_99 = arith.constant 0 : index
      %299 = vector.load %arg2[%298, %c1_98, %c0_99] : memref<30x17x128xf32, #tpu.memory_space<vmem>>, vector<4x16x128xf32>
      %300 = arith.index_cast %293 : i32 to index
      %c1_100 = arith.constant 1 : index
      %c0_101 = arith.constant 0 : index
      %301 = vector.load %arg3[%300, %c1_100, %c0_101] : memref<30x17x128xf32, #tpu.memory_space<vmem>>, vector<4x16x128xf32>
      %c21 = arith.constant 21 : index
      %302 = memref.load %arg1[%c21] : memref<45xf32, #tpu.memory_space<smem>>
      %c22 = arith.constant 22 : index
      %303 = memref.load %arg1[%c22] : memref<45xf32, #tpu.memory_space<smem>>
      %c23 = arith.constant 23 : index
      %304 = memref.load %arg1[%c23] : memref<45xf32, #tpu.memory_space<smem>>
      %305 = vector.broadcast %302 : f32 to vector<4x16x128xf32>
      %306 = arith.mulf %295, %305 : vector<4x16x128xf32>
      %307 = vector.broadcast %303 : f32 to vector<4x16x128xf32>
      %308 = arith.mulf %297, %307 : vector<4x16x128xf32>
      %309 = arith.addf %306, %308 : vector<4x16x128xf32>
      %310 = vector.broadcast %304 : f32 to vector<4x16x128xf32>
      %311 = arith.mulf %299, %310 : vector<4x16x128xf32>
      %312 = arith.addf %309, %311 : vector<4x16x128xf32>
      %313 = vector.broadcast %302 : f32 to vector<4x16x128xf32>
      %314 = arith.mulf %297, %313 : vector<4x16x128xf32>
      %315 = vector.broadcast %303 : f32 to vector<4x16x128xf32>
      %316 = arith.mulf %299, %315 : vector<4x16x128xf32>
      %317 = arith.addf %314, %316 : vector<4x16x128xf32>
      %318 = vector.broadcast %304 : f32 to vector<4x16x128xf32>
      %319 = arith.mulf %301, %318 : vector<4x16x128xf32>
      %320 = arith.addf %317, %319 : vector<4x16x128xf32>
      %321 = arith.addf %284, %312 : vector<4x16x128xf32>
      %322 = arith.addf %292, %320 : vector<4x16x128xf32>
      %c2_i32_102 = arith.constant 2 : i32
      %323 = arith.addi %8, %c2_i32_102 : i32
      %324 = arith.index_cast %323 : i32 to index
      %c0_103 = arith.constant 0 : index
      %c0_104 = arith.constant 0 : index
      %325 = vector.load %arg2[%324, %c0_103, %c0_104] : memref<30x17x128xf32, #tpu.memory_space<vmem>>, vector<4x16x128xf32>
      %326 = arith.index_cast %323 : i32 to index
      %c0_105 = arith.constant 0 : index
      %c0_106 = arith.constant 0 : index
      %327 = vector.load %arg3[%326, %c0_105, %c0_106] : memref<30x17x128xf32, #tpu.memory_space<vmem>>, vector<4x16x128xf32>
      %328 = arith.index_cast %323 : i32 to index
      %c1_107 = arith.constant 1 : index
      %c0_108 = arith.constant 0 : index
      %329 = vector.load %arg2[%328, %c1_107, %c0_108] : memref<30x17x128xf32, #tpu.memory_space<vmem>>, vector<4x16x128xf32>
      %330 = arith.index_cast %323 : i32 to index
      %c1_109 = arith.constant 1 : index
      %c0_110 = arith.constant 0 : index
      %331 = vector.load %arg3[%330, %c1_109, %c0_110] : memref<30x17x128xf32, #tpu.memory_space<vmem>>, vector<4x16x128xf32>
      %c24 = arith.constant 24 : index
      %332 = memref.load %arg1[%c24] : memref<45xf32, #tpu.memory_space<smem>>
      %c25 = arith.constant 25 : index
      %333 = memref.load %arg1[%c25] : memref<45xf32, #tpu.memory_space<smem>>
      %c26 = arith.constant 26 : index
      %334 = memref.load %arg1[%c26] : memref<45xf32, #tpu.memory_space<smem>>
      %335 = vector.broadcast %332 : f32 to vector<4x16x128xf32>
      %336 = arith.mulf %325, %335 : vector<4x16x128xf32>
      %337 = vector.broadcast %333 : f32 to vector<4x16x128xf32>
      %338 = arith.mulf %327, %337 : vector<4x16x128xf32>
      %339 = arith.addf %336, %338 : vector<4x16x128xf32>
      %340 = vector.broadcast %334 : f32 to vector<4x16x128xf32>
      %341 = arith.mulf %329, %340 : vector<4x16x128xf32>
      %342 = arith.addf %339, %341 : vector<4x16x128xf32>
      %343 = vector.broadcast %332 : f32 to vector<4x16x128xf32>
      %344 = arith.mulf %327, %343 : vector<4x16x128xf32>
      %345 = vector.broadcast %333 : f32 to vector<4x16x128xf32>
      %346 = arith.mulf %329, %345 : vector<4x16x128xf32>
      %347 = arith.addf %344, %346 : vector<4x16x128xf32>
      %348 = vector.broadcast %334 : f32 to vector<4x16x128xf32>
      %349 = arith.mulf %331, %348 : vector<4x16x128xf32>
      %350 = arith.addf %347, %349 : vector<4x16x128xf32>
      %351 = arith.addf %321, %342 : vector<4x16x128xf32>
      %352 = arith.addf %322, %350 : vector<4x16x128xf32>
      %353 = vector.extract_strided_slice %351 {offsets = [0, 0, 0], sizes = [1, 16, 128], strides = [1, 1, 1]} : vector<4x16x128xf32> to vector<1x16x128xf32>
      %354 = vector.shape_cast %353 : vector<1x16x128xf32> to vector<16x128xf32>
      %355 = vector.extract_strided_slice %351 {offsets = [1, 0, 0], sizes = [1, 16, 128], strides = [1, 1, 1]} : vector<4x16x128xf32> to vector<1x16x128xf32>
      %356 = vector.shape_cast %355 : vector<1x16x128xf32> to vector<16x128xf32>
      %357 = arith.maximumf %354, %356 : vector<16x128xf32>
      %358 = vector.extract_strided_slice %352 {offsets = [0, 0, 0], sizes = [1, 16, 128], strides = [1, 1, 1]} : vector<4x16x128xf32> to vector<1x16x128xf32>
      %359 = vector.shape_cast %358 : vector<1x16x128xf32> to vector<16x128xf32>
      %360 = vector.extract_strided_slice %352 {offsets = [1, 0, 0], sizes = [1, 16, 128], strides = [1, 1, 1]} : vector<4x16x128xf32> to vector<1x16x128xf32>
      %361 = vector.shape_cast %360 : vector<1x16x128xf32> to vector<16x128xf32>
      %362 = arith.maximumf %359, %361 : vector<16x128xf32>
      %363 = arith.maximumf %357, %362 : vector<16x128xf32>
      %cst_111 = arith.constant 0.000000e+00 : f32
      %364 = vector.broadcast %cst_111 : f32 to vector<16x128xf32>
      %365 = arith.maximumf %363, %364 : vector<16x128xf32>
      %c2_i32_112 = arith.constant 2 : i32
      %366 = arith.muli %arg8, %c2_i32_112 : i32
      %c0_i32_113 = arith.constant 0 : i32
      %367 = arith.addi %366, %c0_i32_113 : i32
      %c16_i32_114 = arith.constant 16 : i32
      %368 = arith.muli %367, %c16_i32_114 : i32
      %c448_i32 = arith.constant 448 : i32
      %369 = arith.addi %c448_i32, %368 : i32
      %370 = tpu.assume_multiple %369, 16 : i32
      %371 = arith.index_cast %370 : i32 to index
      %c0_115 = arith.constant 0 : index
      %372 = vector.load %arg7[%371, %c0_115] : memref<1120x128xf32, #tpu.memory_space<vmem>>, vector<16x128xf32>
      tpu.vector_store %arg7[%371, %c0_115], %365 {strides = array<i32>} : memref<1120x128xf32, #tpu.memory_space<vmem>>, vector<16x128xf32>,
      %373 = vector.extract_strided_slice %351 {offsets = [2, 0, 0], sizes = [1, 16, 128], strides = [1, 1, 1]} : vector<4x16x128xf32> to vector<1x16x128xf32>
      %374 = vector.shape_cast %373 : vector<1x16x128xf32> to vector<16x128xf32>
      %375 = vector.extract_strided_slice %351 {offsets = [3, 0, 0], sizes = [1, 16, 128], strides = [1, 1, 1]} : vector<4x16x128xf32> to vector<1x16x128xf32>
      %376 = vector.shape_cast %375 : vector<1x16x128xf32> to vector<16x128xf32>
      %377 = arith.maximumf %374, %376 : vector<16x128xf32>
      %378 = vector.extract_strided_slice %352 {offsets = [2, 0, 0], sizes = [1, 16, 128], strides = [1, 1, 1]} : vector<4x16x128xf32> to vector<1x16x128xf32>
      %379 = vector.shape_cast %378 : vector<1x16x128xf32> to vector<16x128xf32>
      %380 = vector.extract_strided_slice %352 {offsets = [3, 0, 0], sizes = [1, 16, 128], strides = [1, 1, 1]} : vector<4x16x128xf32> to vector<1x16x128xf32>
      %381 = vector.shape_cast %380 : vector<1x16x128xf32> to vector<16x128xf32>
      %382 = arith.maximumf %379, %381 : vector<16x128xf32>
      %383 = arith.maximumf %377, %382 : vector<16x128xf32>
      %cst_116 = arith.constant 0.000000e+00 : f32
      %384 = vector.broadcast %cst_116 : f32 to vector<16x128xf32>
      %385 = arith.maximumf %383, %384 : vector<16x128xf32>
      %c2_i32_117 = arith.constant 2 : i32
      %386 = arith.muli %arg8, %c2_i32_117 : i32
      %c1_i32_118 = arith.constant 1 : i32
      %387 = arith.addi %386, %c1_i32_118 : i32
      %c16_i32_119 = arith.constant 16 : i32
      %388 = arith.muli %387, %c16_i32_119 : i32
      %c448_i32_120 = arith.constant 448 : i32
      %389 = arith.addi %c448_i32_120, %388 : i32
      %390 = tpu.assume_multiple %389, 16 : i32
      %391 = arith.index_cast %390 : i32 to index
      %c0_121 = arith.constant 0 : index
      %392 = vector.load %arg7[%391, %c0_121] : memref<1120x128xf32, #tpu.memory_space<vmem>>, vector<16x128xf32>
      tpu.vector_store %arg7[%391, %c0_121], %385 {strides = array<i32>} : memref<1120x128xf32, #tpu.memory_space<vmem>>, vector<16x128xf32>,
      %c0_i32_122 = arith.constant 0 : i32
      %393 = arith.addi %8, %c0_i32_122 : i32
      %394 = arith.index_cast %393 : i32 to index
      %c0_123 = arith.constant 0 : index
      %c0_124 = arith.constant 0 : index
      %395 = vector.load %arg2[%394, %c0_123, %c0_124] : memref<30x17x128xf32, #tpu.memory_space<vmem>>, vector<4x16x128xf32>
      %396 = arith.index_cast %393 : i32 to index
      %c0_125 = arith.constant 0 : index
      %c0_126 = arith.constant 0 : index
      %397 = vector.load %arg3[%396, %c0_125, %c0_126] : memref<30x17x128xf32, #tpu.memory_space<vmem>>, vector<4x16x128xf32>
      %398 = arith.index_cast %393 : i32 to index
      %c1_127 = arith.constant 1 : index
      %c0_128 = arith.constant 0 : index
      %399 = vector.load %arg2[%398, %c1_127, %c0_128] : memref<30x17x128xf32, #tpu.memory_space<vmem>>, vector<4x16x128xf32>
      %400 = arith.index_cast %393 : i32 to index
      %c1_129 = arith.constant 1 : index
      %c0_130 = arith.constant 0 : index
      %401 = vector.load %arg3[%400, %c1_129, %c0_130] : memref<30x17x128xf32, #tpu.memory_space<vmem>>, vector<4x16x128xf32>
      %c27 = arith.constant 27 : index
      %402 = memref.load %arg1[%c27] : memref<45xf32, #tpu.memory_space<smem>>
      %c28 = arith.constant 28 : index
      %403 = memref.load %arg1[%c28] : memref<45xf32, #tpu.memory_space<smem>>
      %c29 = arith.constant 29 : index
      %404 = memref.load %arg1[%c29] : memref<45xf32, #tpu.memory_space<smem>>
      %405 = vector.broadcast %402 : f32 to vector<4x16x128xf32>
      %406 = arith.mulf %395, %405 : vector<4x16x128xf32>
      %407 = vector.broadcast %403 : f32 to vector<4x16x128xf32>
      %408 = arith.mulf %397, %407 : vector<4x16x128xf32>
      %409 = arith.addf %406, %408 : vector<4x16x128xf32>
      %410 = vector.broadcast %404 : f32 to vector<4x16x128xf32>
      %411 = arith.mulf %399, %410 : vector<4x16x128xf32>
      %412 = arith.addf %409, %411 : vector<4x16x128xf32>
      %413 = vector.broadcast %402 : f32 to vector<4x16x128xf32>
      %414 = arith.mulf %397, %413 : vector<4x16x128xf32>
      %415 = vector.broadcast %403 : f32 to vector<4x16x128xf32>
      %416 = arith.mulf %399, %415 : vector<4x16x128xf32>
      %417 = arith.addf %414, %416 : vector<4x16x128xf32>
      %418 = vector.broadcast %404 : f32 to vector<4x16x128xf32>
      %419 = arith.mulf %401, %418 : vector<4x16x128xf32>
      %420 = arith.addf %417, %419 : vector<4x16x128xf32>
      %c1_i32_131 = arith.constant 1 : i32
      %421 = arith.addi %8, %c1_i32_131 : i32
      %422 = arith.index_cast %421 : i32 to index
      %c0_132 = arith.constant 0 : index
      %c0_133 = arith.constant 0 : index
      %423 = vector.load %arg2[%422, %c0_132, %c0_133] : memref<30x17x128xf32, #tpu.memory_space<vmem>>, vector<4x16x128xf32>
      %424 = arith.index_cast %421 : i32 to index
      %c0_134 = arith.constant 0 : index
      %c0_135 = arith.constant 0 : index
      %425 = vector.load %arg3[%424, %c0_134, %c0_135] : memref<30x17x128xf32, #tpu.memory_space<vmem>>, vector<4x16x128xf32>
      %426 = arith.index_cast %421 : i32 to index
      %c1_136 = arith.constant 1 : index
      %c0_137 = arith.constant 0 : index
      %427 = vector.load %arg2[%426, %c1_136, %c0_137] : memref<30x17x128xf32, #tpu.memory_space<vmem>>, vector<4x16x128xf32>
      %428 = arith.index_cast %421 : i32 to index
      %c1_138 = arith.constant 1 : index
      %c0_139 = arith.constant 0 : index
      %429 = vector.load %arg3[%428, %c1_138, %c0_139] : memref<30x17x128xf32, #tpu.memory_space<vmem>>, vector<4x16x128xf32>
      %c30 = arith.constant 30 : index
      %430 = memref.load %arg1[%c30] : memref<45xf32, #tpu.memory_space<smem>>
      %c31 = arith.constant 31 : index
      %431 = memref.load %arg1[%c31] : memref<45xf32, #tpu.memory_space<smem>>
      %c32 = arith.constant 32 : index
      %432 = memref.load %arg1[%c32] : memref<45xf32, #tpu.memory_space<smem>>
      %433 = vector.broadcast %430 : f32 to vector<4x16x128xf32>
      %434 = arith.mulf %423, %433 : vector<4x16x128xf32>
      %435 = vector.broadcast %431 : f32 to vector<4x16x128xf32>
      %436 = arith.mulf %425, %435 : vector<4x16x128xf32>
      %437 = arith.addf %434, %436 : vector<4x16x128xf32>
      %438 = vector.broadcast %432 : f32 to vector<4x16x128xf32>
      %439 = arith.mulf %427, %438 : vector<4x16x128xf32>
      %440 = arith.addf %437, %439 : vector<4x16x128xf32>
      %441 = vector.broadcast %430 : f32 to vector<4x16x128xf32>
      %442 = arith.mulf %425, %441 : vector<4x16x128xf32>
      %443 = vector.broadcast %431 : f32 to vector<4x16x128xf32>
      %444 = arith.mulf %427, %443 : vector<4x16x128xf32>
      %445 = arith.addf %442, %444 : vector<4x16x128xf32>
      %446 = vector.broadcast %432 : f32 to vector<4x16x128xf32>
      %447 = arith.mulf %429, %446 : vector<4x16x128xf32>
      %448 = arith.addf %445, %447 : vector<4x16x128xf32>
      %449 = arith.addf %412, %440 : vector<4x16x128xf32>
      %450 = arith.addf %420, %448 : vector<4x16x128xf32>
      %c2_i32_140 = arith.constant 2 : i32
      %451 = arith.addi %8, %c2_i32_140 : i32
      %452 = arith.index_cast %451 : i32 to index
      %c0_141 = arith.constant 0 : index
      %c0_142 = arith.constant 0 : index
      %453 = vector.load %arg2[%452, %c0_141, %c0_142] : memref<30x17x128xf32, #tpu.memory_space<vmem>>, vector<4x16x128xf32>
      %454 = arith.index_cast %451 : i32 to index
      %c0_143 = arith.constant 0 : index
      %c0_144 = arith.constant 0 : index
      %455 = vector.load %arg3[%454, %c0_143, %c0_144] : memref<30x17x128xf32, #tpu.memory_space<vmem>>, vector<4x16x128xf32>
      %456 = arith.index_cast %451 : i32 to index
      %c1_145 = arith.constant 1 : index
      %c0_146 = arith.constant 0 : index
      %457 = vector.load %arg2[%456, %c1_145, %c0_146] : memref<30x17x128xf32, #tpu.memory_space<vmem>>, vector<4x16x128xf32>
      %458 = arith.index_cast %451 : i32 to index
      %c1_147 = arith.constant 1 : index
      %c0_148 = arith.constant 0 : index
      %459 = vector.load %arg3[%458, %c1_147, %c0_148] : memref<30x17x128xf32, #tpu.memory_space<vmem>>, vector<4x16x128xf32>
      %c33 = arith.constant 33 : index
      %460 = memref.load %arg1[%c33] : memref<45xf32, #tpu.memory_space<smem>>
      %c34 = arith.constant 34 : index
      %461 = memref.load %arg1[%c34] : memref<45xf32, #tpu.memory_space<smem>>
      %c35 = arith.constant 35 : index
      %462 = memref.load %arg1[%c35] : memref<45xf32, #tpu.memory_space<smem>>
      %463 = vector.broadcast %460 : f32 to vector<4x16x128xf32>
      %464 = arith.mulf %453, %463 : vector<4x16x128xf32>
      %465 = vector.broadcast %461 : f32 to vector<4x16x128xf32>
      %466 = arith.mulf %455, %465 : vector<4x16x128xf32>
      %467 = arith.addf %464, %466 : vector<4x16x128xf32>
      %468 = vector.broadcast %462 : f32 to vector<4x16x128xf32>
      %469 = arith.mulf %457, %468 : vector<4x16x128xf32>
      %470 = arith.addf %467, %469 : vector<4x16x128xf32>
      %471 = vector.broadcast %460 : f32 to vector<4x16x128xf32>
      %472 = arith.mulf %455, %471 : vector<4x16x128xf32>
      %473 = vector.broadcast %461 : f32 to vector<4x16x128xf32>
      %474 = arith.mulf %457, %473 : vector<4x16x128xf32>
      %475 = arith.addf %472, %474 : vector<4x16x128xf32>
      %476 = vector.broadcast %462 : f32 to vector<4x16x128xf32>
      %477 = arith.mulf %459, %476 : vector<4x16x128xf32>
      %478 = arith.addf %475, %477 : vector<4x16x128xf32>
      %479 = arith.addf %449, %470 : vector<4x16x128xf32>
      %480 = arith.addf %450, %478 : vector<4x16x128xf32>
      %481 = vector.extract_strided_slice %479 {offsets = [0, 0, 0], sizes = [1, 16, 128], strides = [1, 1, 1]} : vector<4x16x128xf32> to vector<1x16x128xf32>
      %482 = vector.shape_cast %481 : vector<1x16x128xf32> to vector<16x128xf32>
      %483 = vector.extract_strided_slice %479 {offsets = [1, 0, 0], sizes = [1, 16, 128], strides = [1, 1, 1]} : vector<4x16x128xf32> to vector<1x16x128xf32>
      %484 = vector.shape_cast %483 : vector<1x16x128xf32> to vector<16x128xf32>
      %485 = arith.maximumf %482, %484 : vector<16x128xf32>
      %486 = vector.extract_strided_slice %480 {offsets = [0, 0, 0], sizes = [1, 16, 128], strides = [1, 1, 1]} : vector<4x16x128xf32> to vector<1x16x128xf32>
      %487 = vector.shape_cast %486 : vector<1x16x128xf32> to vector<16x128xf32>
      %488 = vector.extract_strided_slice %480 {offsets = [1, 0, 0], sizes = [1, 16, 128], strides = [1, 1, 1]} : vector<4x16x128xf32> to vector<1x16x128xf32>
      %489 = vector.shape_cast %488 : vector<1x16x128xf32> to vector<16x128xf32>
      %490 = arith.maximumf %487, %489 : vector<16x128xf32>
      %491 = arith.maximumf %485, %490 : vector<16x128xf32>
      %cst_149 = arith.constant 0.000000e+00 : f32
      %492 = vector.broadcast %cst_149 : f32 to vector<16x128xf32>
      %493 = arith.maximumf %491, %492 : vector<16x128xf32>
      %c2_i32_150 = arith.constant 2 : i32
      %494 = arith.muli %arg8, %c2_i32_150 : i32
      %c0_i32_151 = arith.constant 0 : i32
      %495 = arith.addi %494, %c0_i32_151 : i32
      %c16_i32_152 = arith.constant 16 : i32
      %496 = arith.muli %495, %c16_i32_152 : i32
      %c672_i32 = arith.constant 672 : i32
      %497 = arith.addi %c672_i32, %496 : i32
      %498 = tpu.assume_multiple %497, 16 : i32
      %499 = arith.index_cast %498 : i32 to index
      %c0_153 = arith.constant 0 : index
      %500 = vector.load %arg7[%499, %c0_153] : memref<1120x128xf32, #tpu.memory_space<vmem>>, vector<16x128xf32>
      tpu.vector_store %arg7[%499, %c0_153], %493 {strides = array<i32>} : memref<1120x128xf32, #tpu.memory_space<vmem>>, vector<16x128xf32>,
      %501 = vector.extract_strided_slice %479 {offsets = [2, 0, 0], sizes = [1, 16, 128], strides = [1, 1, 1]} : vector<4x16x128xf32> to vector<1x16x128xf32>
      %502 = vector.shape_cast %501 : vector<1x16x128xf32> to vector<16x128xf32>
      %503 = vector.extract_strided_slice %479 {offsets = [3, 0, 0], sizes = [1, 16, 128], strides = [1, 1, 1]} : vector<4x16x128xf32> to vector<1x16x128xf32>
      %504 = vector.shape_cast %503 : vector<1x16x128xf32> to vector<16x128xf32>
      %505 = arith.maximumf %502, %504 : vector<16x128xf32>
      %506 = vector.extract_strided_slice %480 {offsets = [2, 0, 0], sizes = [1, 16, 128], strides = [1, 1, 1]} : vector<4x16x128xf32> to vector<1x16x128xf32>
      %507 = vector.shape_cast %506 : vector<1x16x128xf32> to vector<16x128xf32>
      %508 = vector.extract_strided_slice %480 {offsets = [3, 0, 0], sizes = [1, 16, 128], strides = [1, 1, 1]} : vector<4x16x128xf32> to vector<1x16x128xf32>
      %509 = vector.shape_cast %508 : vector<1x16x128xf32> to vector<16x128xf32>
      %510 = arith.maximumf %507, %509 : vector<16x128xf32>
      %511 = arith.maximumf %505, %510 : vector<16x128xf32>
      %cst_154 = arith.constant 0.000000e+00 : f32
      %512 = vector.broadcast %cst_154 : f32 to vector<16x128xf32>
      %513 = arith.maximumf %511, %512 : vector<16x128xf32>
      %c2_i32_155 = arith.constant 2 : i32
      %514 = arith.muli %arg8, %c2_i32_155 : i32
      %c1_i32_156 = arith.constant 1 : i32
      %515 = arith.addi %514, %c1_i32_156 : i32
      %c16_i32_157 = arith.constant 16 : i32
      %516 = arith.muli %515, %c16_i32_157 : i32
      %c672_i32_158 = arith.constant 672 : i32
      %517 = arith.addi %c672_i32_158, %516 : i32
      %518 = tpu.assume_multiple %517, 16 : i32
      %519 = arith.index_cast %518 : i32 to index
      %c0_159 = arith.constant 0 : index
      %520 = vector.load %arg7[%519, %c0_159] : memref<1120x128xf32, #tpu.memory_space<vmem>>, vector<16x128xf32>
      tpu.vector_store %arg7[%519, %c0_159], %513 {strides = array<i32>} : memref<1120x128xf32, #tpu.memory_space<vmem>>, vector<16x128xf32>,
      %c0_i32_160 = arith.constant 0 : i32
      %521 = arith.addi %8, %c0_i32_160 : i32
      %522 = arith.index_cast %521 : i32 to index
      %c0_161 = arith.constant 0 : index
      %c0_162 = arith.constant 0 : index
      %523 = vector.load %arg2[%522, %c0_161, %c0_162] : memref<30x17x128xf32, #tpu.memory_space<vmem>>, vector<4x16x128xf32>
      %524 = arith.index_cast %521 : i32 to index
      %c0_163 = arith.constant 0 : index
      %c0_164 = arith.constant 0 : index
      %525 = vector.load %arg3[%524, %c0_163, %c0_164] : memref<30x17x128xf32, #tpu.memory_space<vmem>>, vector<4x16x128xf32>
      %526 = arith.index_cast %521 : i32 to index
      %c1_165 = arith.constant 1 : index
      %c0_166 = arith.constant 0 : index
      %527 = vector.load %arg2[%526, %c1_165, %c0_166] : memref<30x17x128xf32, #tpu.memory_space<vmem>>, vector<4x16x128xf32>
      %528 = arith.index_cast %521 : i32 to index
      %c1_167 = arith.constant 1 : index
      %c0_168 = arith.constant 0 : index
      %529 = vector.load %arg3[%528, %c1_167, %c0_168] : memref<30x17x128xf32, #tpu.memory_space<vmem>>, vector<4x16x128xf32>
      %c36 = arith.constant 36 : index
      %530 = memref.load %arg1[%c36] : memref<45xf32, #tpu.memory_space<smem>>
      %c37 = arith.constant 37 : index
      %531 = memref.load %arg1[%c37] : memref<45xf32, #tpu.memory_space<smem>>
      %c38 = arith.constant 38 : index
      %532 = memref.load %arg1[%c38] : memref<45xf32, #tpu.memory_space<smem>>
      %533 = vector.broadcast %530 : f32 to vector<4x16x128xf32>
      %534 = arith.mulf %523, %533 : vector<4x16x128xf32>
      %535 = vector.broadcast %531 : f32 to vector<4x16x128xf32>
      %536 = arith.mulf %525, %535 : vector<4x16x128xf32>
      %537 = arith.addf %534, %536 : vector<4x16x128xf32>
      %538 = vector.broadcast %532 : f32 to vector<4x16x128xf32>
      %539 = arith.mulf %527, %538 : vector<4x16x128xf32>
      %540 = arith.addf %537, %539 : vector<4x16x128xf32>
      %541 = vector.broadcast %530 : f32 to vector<4x16x128xf32>
      %542 = arith.mulf %525, %541 : vector<4x16x128xf32>
      %543 = vector.broadcast %531 : f32 to vector<4x16x128xf32>
      %544 = arith.mulf %527, %543 : vector<4x16x128xf32>
      %545 = arith.addf %542, %544 : vector<4x16x128xf32>
      %546 = vector.broadcast %532 : f32 to vector<4x16x128xf32>
      %547 = arith.mulf %529, %546 : vector<4x16x128xf32>
      %548 = arith.addf %545, %547 : vector<4x16x128xf32>
      %c1_i32_169 = arith.constant 1 : i32
      %549 = arith.addi %8, %c1_i32_169 : i32
      %550 = arith.index_cast %549 : i32 to index
      %c0_170 = arith.constant 0 : index
      %c0_171 = arith.constant 0 : index
      %551 = vector.load %arg2[%550, %c0_170, %c0_171] : memref<30x17x128xf32, #tpu.memory_space<vmem>>, vector<4x16x128xf32>
      %552 = arith.index_cast %549 : i32 to index
      %c0_172 = arith.constant 0 : index
      %c0_173 = arith.constant 0 : index
      %553 = vector.load %arg3[%552, %c0_172, %c0_173] : memref<30x17x128xf32, #tpu.memory_space<vmem>>, vector<4x16x128xf32>
      %554 = arith.index_cast %549 : i32 to index
      %c1_174 = arith.constant 1 : index
      %c0_175 = arith.constant 0 : index
      %555 = vector.load %arg2[%554, %c1_174, %c0_175] : memref<30x17x128xf32, #tpu.memory_space<vmem>>, vector<4x16x128xf32>
      %556 = arith.index_cast %549 : i32 to index
      %c1_176 = arith.constant 1 : index
      %c0_177 = arith.constant 0 : index
      %557 = vector.load %arg3[%556, %c1_176, %c0_177] : memref<30x17x128xf32, #tpu.memory_space<vmem>>, vector<4x16x128xf32>
      %c39 = arith.constant 39 : index
      %558 = memref.load %arg1[%c39] : memref<45xf32, #tpu.memory_space<smem>>
      %c40 = arith.constant 40 : index
      %559 = memref.load %arg1[%c40] : memref<45xf32, #tpu.memory_space<smem>>
      %c41 = arith.constant 41 : index
      %560 = memref.load %arg1[%c41] : memref<45xf32, #tpu.memory_space<smem>>
      %561 = vector.broadcast %558 : f32 to vector<4x16x128xf32>
      %562 = arith.mulf %551, %561 : vector<4x16x128xf32>
      %563 = vector.broadcast %559 : f32 to vector<4x16x128xf32>
      %564 = arith.mulf %553, %563 : vector<4x16x128xf32>
      %565 = arith.addf %562, %564 : vector<4x16x128xf32>
      %566 = vector.broadcast %560 : f32 to vector<4x16x128xf32>
      %567 = arith.mulf %555, %566 : vector<4x16x128xf32>
      %568 = arith.addf %565, %567 : vector<4x16x128xf32>
      %569 = vector.broadcast %558 : f32 to vector<4x16x128xf32>
      %570 = arith.mulf %553, %569 : vector<4x16x128xf32>
      %571 = vector.broadcast %559 : f32 to vector<4x16x128xf32>
      %572 = arith.mulf %555, %571 : vector<4x16x128xf32>
      %573 = arith.addf %570, %572 : vector<4x16x128xf32>
      %574 = vector.broadcast %560 : f32 to vector<4x16x128xf32>
      %575 = arith.mulf %557, %574 : vector<4x16x128xf32>
      %576 = arith.addf %573, %575 : vector<4x16x128xf32>
      %577 = arith.addf %540, %568 : vector<4x16x128xf32>
      %578 = arith.addf %548, %576 : vector<4x16x128xf32>
      %c2_i32_178 = arith.constant 2 : i32
      %579 = arith.addi %8, %c2_i32_178 : i32
      %580 = arith.index_cast %579 : i32 to index
      %c0_179 = arith.constant 0 : index
      %c0_180 = arith.constant 0 : index
      %581 = vector.load %arg2[%580, %c0_179, %c0_180] : memref<30x17x128xf32, #tpu.memory_space<vmem>>, vector<4x16x128xf32>
      %582 = arith.index_cast %579 : i32 to index
      %c0_181 = arith.constant 0 : index
      %c0_182 = arith.constant 0 : index
      %583 = vector.load %arg3[%582, %c0_181, %c0_182] : memref<30x17x128xf32, #tpu.memory_space<vmem>>, vector<4x16x128xf32>
      %584 = arith.index_cast %579 : i32 to index
      %c1_183 = arith.constant 1 : index
      %c0_184 = arith.constant 0 : index
      %585 = vector.load %arg2[%584, %c1_183, %c0_184] : memref<30x17x128xf32, #tpu.memory_space<vmem>>, vector<4x16x128xf32>
      %586 = arith.index_cast %579 : i32 to index
      %c1_185 = arith.constant 1 : index
      %c0_186 = arith.constant 0 : index
      %587 = vector.load %arg3[%586, %c1_185, %c0_186] : memref<30x17x128xf32, #tpu.memory_space<vmem>>, vector<4x16x128xf32>
      %c42 = arith.constant 42 : index
      %588 = memref.load %arg1[%c42] : memref<45xf32, #tpu.memory_space<smem>>
      %c43 = arith.constant 43 : index
      %589 = memref.load %arg1[%c43] : memref<45xf32, #tpu.memory_space<smem>>
      %c44 = arith.constant 44 : index
      %590 = memref.load %arg1[%c44] : memref<45xf32, #tpu.memory_space<smem>>
      %591 = vector.broadcast %588 : f32 to vector<4x16x128xf32>
      %592 = arith.mulf %581, %591 : vector<4x16x128xf32>
      %593 = vector.broadcast %589 : f32 to vector<4x16x128xf32>
      %594 = arith.mulf %583, %593 : vector<4x16x128xf32>
      %595 = arith.addf %592, %594 : vector<4x16x128xf32>
      %596 = vector.broadcast %590 : f32 to vector<4x16x128xf32>
      %597 = arith.mulf %585, %596 : vector<4x16x128xf32>
      %598 = arith.addf %595, %597 : vector<4x16x128xf32>
      %599 = vector.broadcast %588 : f32 to vector<4x16x128xf32>
      %600 = arith.mulf %583, %599 : vector<4x16x128xf32>
      %601 = vector.broadcast %589 : f32 to vector<4x16x128xf32>
      %602 = arith.mulf %585, %601 : vector<4x16x128xf32>
      %603 = arith.addf %600, %602 : vector<4x16x128xf32>
      %604 = vector.broadcast %590 : f32 to vector<4x16x128xf32>
      %605 = arith.mulf %587, %604 : vector<4x16x128xf32>
      %606 = arith.addf %603, %605 : vector<4x16x128xf32>
      %607 = arith.addf %577, %598 : vector<4x16x128xf32>
      %608 = arith.addf %578, %606 : vector<4x16x128xf32>
      %609 = vector.extract_strided_slice %607 {offsets = [0, 0, 0], sizes = [1, 16, 128], strides = [1, 1, 1]} : vector<4x16x128xf32> to vector<1x16x128xf32>
      %610 = vector.shape_cast %609 : vector<1x16x128xf32> to vector<16x128xf32>
      %611 = vector.extract_strided_slice %607 {offsets = [1, 0, 0], sizes = [1, 16, 128], strides = [1, 1, 1]} : vector<4x16x128xf32> to vector<1x16x128xf32>
      %612 = vector.shape_cast %611 : vector<1x16x128xf32> to vector<16x128xf32>
      %613 = arith.maximumf %610, %612 : vector<16x128xf32>
      %614 = vector.extract_strided_slice %608 {offsets = [0, 0, 0], sizes = [1, 16, 128], strides = [1, 1, 1]} : vector<4x16x128xf32> to vector<1x16x128xf32>
      %615 = vector.shape_cast %614 : vector<1x16x128xf32> to vector<16x128xf32>
      %616 = vector.extract_strided_slice %608 {offsets = [1, 0, 0], sizes = [1, 16, 128], strides = [1, 1, 1]} : vector<4x16x128xf32> to vector<1x16x128xf32>
      %617 = vector.shape_cast %616 : vector<1x16x128xf32> to vector<16x128xf32>
      %618 = arith.maximumf %615, %617 : vector<16x128xf32>
      %619 = arith.maximumf %613, %618 : vector<16x128xf32>
      %cst_187 = arith.constant 0.000000e+00 : f32
      %620 = vector.broadcast %cst_187 : f32 to vector<16x128xf32>
      %621 = arith.maximumf %619, %620 : vector<16x128xf32>
      %c2_i32_188 = arith.constant 2 : i32
      %622 = arith.muli %arg8, %c2_i32_188 : i32
      %c0_i32_189 = arith.constant 0 : i32
      %623 = arith.addi %622, %c0_i32_189 : i32
      %c16_i32_190 = arith.constant 16 : i32
      %624 = arith.muli %623, %c16_i32_190 : i32
      %c896_i32 = arith.constant 896 : i32
      %625 = arith.addi %c896_i32, %624 : i32
      %626 = tpu.assume_multiple %625, 16 : i32
      %627 = arith.index_cast %626 : i32 to index
      %c0_191 = arith.constant 0 : index
      %628 = vector.load %arg7[%627, %c0_191] : memref<1120x128xf32, #tpu.memory_space<vmem>>, vector<16x128xf32>
      tpu.vector_store %arg7[%627, %c0_191], %621 {strides = array<i32>} : memref<1120x128xf32, #tpu.memory_space<vmem>>, vector<16x128xf32>,
      %629 = vector.extract_strided_slice %607 {offsets = [2, 0, 0], sizes = [1, 16, 128], strides = [1, 1, 1]} : vector<4x16x128xf32> to vector<1x16x128xf32>
      %630 = vector.shape_cast %629 : vector<1x16x128xf32> to vector<16x128xf32>
      %631 = vector.extract_strided_slice %607 {offsets = [3, 0, 0], sizes = [1, 16, 128], strides = [1, 1, 1]} : vector<4x16x128xf32> to vector<1x16x128xf32>
      %632 = vector.shape_cast %631 : vector<1x16x128xf32> to vector<16x128xf32>
      %633 = arith.maximumf %630, %632 : vector<16x128xf32>
      %634 = vector.extract_strided_slice %608 {offsets = [2, 0, 0], sizes = [1, 16, 128], strides = [1, 1, 1]} : vector<4x16x128xf32> to vector<1x16x128xf32>
      %635 = vector.shape_cast %634 : vector<1x16x128xf32> to vector<16x128xf32>
      %636 = vector.extract_strided_slice %608 {offsets = [3, 0, 0], sizes = [1, 16, 128], strides = [1, 1, 1]} : vector<4x16x128xf32> to vector<1x16x128xf32>
      %637 = vector.shape_cast %636 : vector<1x16x128xf32> to vector<16x128xf32>
      %638 = arith.maximumf %635, %637 : vector<16x128xf32>
      %639 = arith.maximumf %633, %638 : vector<16x128xf32>
      %cst_192 = arith.constant 0.000000e+00 : f32
      %640 = vector.broadcast %cst_192 : f32 to vector<16x128xf32>
      %641 = arith.maximumf %639, %640 : vector<16x128xf32>
      %c2_i32_193 = arith.constant 2 : i32
      %642 = arith.muli %arg8, %c2_i32_193 : i32
      %c1_i32_194 = arith.constant 1 : i32
      %643 = arith.addi %642, %c1_i32_194 : i32
      %c16_i32_195 = arith.constant 16 : i32
      %644 = arith.muli %643, %c16_i32_195 : i32
      %c896_i32_196 = arith.constant 896 : i32
      %645 = arith.addi %c896_i32_196, %644 : i32
      %646 = tpu.assume_multiple %645, 16 : i32
      %647 = arith.index_cast %646 : i32 to index
      %c0_197 = arith.constant 0 : index
      %648 = vector.load %arg7[%647, %c0_197] : memref<1120x128xf32, #tpu.memory_space<vmem>>, vector<16x128xf32>
      tpu.vector_store %arg7[%647, %c0_197], %641 {strides = array<i32>} : memref<1120x128xf32, #tpu.memory_space<vmem>>, vector<16x128xf32>,
    }
    %c7_i32_0 = arith.constant 7 : i32
    %c0 = arith.constant 0 : index
    %c0_1 = arith.constant 0 : index
    %1 = vector.load %arg4[%c0, %c0_1] : memref<16x1120xf32, #tpu.memory_space<vmem>>, vector<16x1120xf32>
    %c0_2 = arith.constant 0 : index
    %c0_3 = arith.constant 0 : index
    %2 = vector.load %arg7[%c0_2, %c0_3] : memref<1120x128xf32, #tpu.memory_space<vmem>>, vector<1120x128xf32>
    %cst = arith.constant dense<0.000000e+00> : vector<16x128xf32>
    %3 = tpu.matmul %1, %2, %cst {dimension_numbers = #tpu.dot_dimension_numbers<[1], [0], [0], [1], [0, 0, 1, 1], [], []>} : vector<16x1120xf32>, vector<1120x128xf32>, vector<16x128xf32> -> vector<16x128xf32>
    %c0_4 = arith.constant 0 : index
    %c0_5 = arith.constant 0 : index
    %4 = vector.load %arg5[%c0_4, %c0_5] : memref<16x128xf32, #tpu.memory_space<vmem>>, vector<16x128xf32>
    %5 = arith.addf %3, %4 : vector<16x128xf32>
    %c0_6 = arith.constant 0 : index
    %c0_7 = arith.constant 0 : index
    %6 = vector.load %arg6[%c0_6, %c0_7] : memref<16x128xf32, #tpu.memory_space<vmem>>, vector<16x128xf32>
    tpu.vector_store %arg6[%c0_6, %c0_7], %5 {strides = array<i32>} : memref<16x128xf32, #tpu.memory_space<vmem>>, vector<16x128xf32>,
    return
  }
  func.func @transform_0(%arg0: i32) -> i32 {
    %c0_i32 = arith.constant 0 : i32
    %c0_i32_0 = arith.constant 0 : i32
    return %c0_i32 : i32
  }
  func.func @transform_1(%arg0: i32) -> (i32, i32, i32) {
    %c0_i32 = arith.constant 0 : i32
    %c0_i32_0 = arith.constant 0 : i32
    %c0_i32_1 = arith.constant 0 : i32
    return %c0_i32, %c0_i32_0, %arg0 : i32, i32, i32
  }
  func.func @transform_2(%arg0: i32) -> (i32, i32, i32) {
    %c0_i32 = arith.constant 0 : i32
    %c0_i32_0 = arith.constant 0 : i32
    %c0_i32_1 = arith.constant 0 : i32
    return %c0_i32, %c0_i32_0, %arg0 : i32, i32, i32
  }
  func.func @transform_3(%arg0: i32) -> (i32, i32) {
    %c0_i32 = arith.constant 0 : i32
    %c0_i32_0 = arith.constant 0 : i32
    %c0_i32_1 = arith.constant 0 : i32
    return %c0_i32, %c0_i32_0 : i32, i32
  }
  func.func @transform_4(%arg0: i32) -> (i32, i32) {
    %c0_i32 = arith.constant 0 : i32
    %c0_i32_0 = arith.constant 0 : i32
    %c0_i32_1 = arith.constant 0 : i32
    return %c0_i32, %c0_i32_0 : i32, i32
  }
  func.func @transform_5(%arg0: i32) -> (i32, i32) {
    %c0_i32 = arith.constant 0 : i32
    %c0_i32_0 = arith.constant 0 : i32
    return %c0_i32, %arg0 : i32, i32
  }
}

</mosaic_0001>

<bundles_post_ra>
// kernel: kernel_fitter_forward.1
= control target key start
LH: loop header
LB: loop body
LE: loop exit
PB: predicated region body
PF: predicated region fallthrough
CT: control target
= control target key end

     0   :  { %10 = vsyncpa [#allocation4], 0  ;;  %s5759_s0 = inlined_call_operand.vmem [shape: f32[45], index: 0, kind: input, shape index: {}]   ;;  %s5760_s1 = inlined_call_operand.vmem [shape: f32[30,17,128], index: 1, kind: input, shape index: {}]   ;;  %s5761_s2 = inlined_call_operand.vmem [shape: f32[30,17,128], index: 2, kind: input, shape index: {}]   ;;  %s5762_s3 = inlined_call_operand.vmem [shape: f32[16,1120], index: 3, kind: input, shape index: {}]   ;;  %s5763_s4 = inlined_call_operand.vmem [shape: f32[16,128], index: 4, kind: input, shape index: {}]   ;;  %s5764_s5 = inlined_call_operand.vmem [shape: f32[16,128], index: 5, kind: output, shape index: {}]  }
   0x1   :  { %s17_s20 = sshll.u32 %s5759_s0, 4  ;;  %s18_s20 = int_to_ptr.vmem [resolvable:$true] %s17_s20 }
   0x2   :  { %s3479_s21 = scalar_lea.vmem %s18_s20, 16  ;;  %p3484_p1 = scmp.lt.s32.totalorder %s18_s20, %s18_s20 }
   0x3   :  { %p3480_p0 = scmp.ne.s32.totalorder %s18_s20, %s3479_s21  ;;  %p3485_p2 = scmp.lt.s32.totalorder %s3479_s21, %s3479_s21 }
   0x5   :  { %p3486_p3 = por %p3485_p2, %p3484_p1 }
   0x7   :  { %p3487_p4 = pnand %p3486_p3, %p3480_p0 }
   0x9   :  { %3490 = shalt.err (!%p3487_p4)
}
   0xa   :  { %s3501_s22 = smov [#allocation3]  }
   0xb   :  { %20 = dma.vmem_to_smem %s18_s20, 16, %s3501_s22, [#allocation4]  }
   0xc   :  { %3495 = dma.done.wait [#allocation4], 16  }
   0xd   :  { %3496 = vsyncadd [#allocation4], 4294967280 }
   0xe   :  { %32 = sfence }
   0xf   :  { %s3535_s23 = smov 0  }
  0x10 LB: > { %s75_s0 = sld [smem:[#allocation3]]  ;;  %s2713_s24 = sld [smem:[#allocation3 + $0x1]]  ;;  %s3499_s23 = sphi %s3535_s23, %s38_s23  }
  0x11   : > { %s2712_s25 = smul.u32 96, %s3499_s23  ;;  %s3569_s7 = sld [smem:[#allocation3 + $0x2]] }
  0x12   : > { %s3712_s8 = sld [smem:[#allocation3 + $0x3]]  ;;  %s3714_s9 = sld [smem:[#allocation3 + $0x4]] }
  0x13   : > { %s3544_s28 = scalar_lea.vmem %s5760_s1, %s2712_s25  ;;  %s3549_s6 = scalar_lea.vmem %s5761_s2, %s2712_s25 }
  0x14   : > { %v3552_v0 = vld [vmem:[%s3544_s28] sm:$0xff]  ;;  %v3555_v1 = vld [vmem:[%s3544_s28 + $0x8] sm:$0xff]  ;;  %v3558_v2 = vld [vmem:[%s3544_s28 + $0x18] sm:$0xff]  ;;  %s3781_s10 = sld [smem:[#allocation3 + $0x5]]  ;;  %s3848_s11 = sld [smem:[#allocation3 + $0x6]] }
  0x15   : > { %5937 = vst [vmem:[#allocation6_spill] sm:$0xff] %v3552_v0  ;;  %5938 = vst [vmem:[#allocation7_spill] sm:$0xff] %v3555_v1  ;;  %v3561_v3 = vld [vmem:[%s3544_s28 + $0x20] sm:$0xff]  ;;  %v3564_v4 = vld [vmem:[%s3544_s28 + $0x30] sm:$0xff]  ;;  %s3853_s12 = sld [smem:[#allocation3 + $0x7]]  ;;  %s3855_s13 = sld [smem:[#allocation3 + $0x8]] }
  0x16   : > { %5939 = vst [vmem:[#allocation8_spill] sm:$0xff] %v3558_v2  ;;  %5940 = vst [vmem:[#allocation9_spill] sm:$0xff] %v3561_v3  ;;  %v3567_v5 = vld [vmem:[%s3544_s28 + $0x38] sm:$0xff]  ;;  %v3571_v6 = vstv %s75_s0  ;;  %v3574_v7 = vld [vmem:[%s3544_s28 + $0x48] sm:$0xff]  ;;  %v3616_v24 = vstv %s2713_s24  ;;  %s4003_s14 = sld [smem:[#allocation3 + $0x9]]  ;;  %s4005_s15 = sld [smem:[#allocation3 + $0xa]] }
  0x17   : > { %5941 = vst [vmem:[#allocation10_spill] sm:$0xff] %v3564_v4  ;;  %5942 = vst [vmem:[#allocation11_spill] sm:$0xff] %v3567_v5  ;;  %v3577_v8 = vld [vmem:[%s3544_s28 + $0x50] sm:$0xff]  ;;  %v3580_v9 = vld [vmem:[%s3549_s6] sm:$0xff]  ;;  %v79_v10 = vmul.f32 %v3571_v6, %v3552_v0  ;;  %v80_v11 = vmul.f32 %v3571_v6, %v3555_v1  ;;  %v81_v12 = vmul.f32 %v3571_v6, %v3558_v2  ;;  %v104_v50 = vstv %s3569_s7  ;;  %s2793_s16 = sshll.u32 %s3499_s23, 5  ;;  %s4024_s17 = sld [smem:[#allocation3 + $0xb]] }
  0x18   : > { %5943 = vst [vmem:[#allocation12_spill] sm:$0xff] %v3574_v7  ;;  %5944 = vst [vmem:[#allocation13_spill] sm:$0xff] %v3577_v8  ;;  %v82_v13 = vmul.f32 %v3571_v6, %v3561_v3  ;;  %v3591_v14 = vld [vmem:[%s3549_s6 + $0x8] sm:$0xff]  ;;  %v3594_v15 = vld [vmem:[%s3549_s6 + $0x18] sm:$0xff]  ;;  %v83_v17 = vmul.f32 %v3571_v6, %v3564_v4  ;;  %v84_v18 = vmul.f32 %v3571_v6, %v3567_v5  ;;  %s4036_s18 = scalar_lea.vmem [#allocation2], %s2793_s16  ;;  %s4095_s19 = sld [smem:[#allocation3 + $0xc]] }
  0x19   : > { %5945 = vst [vmem:[#allocation14_spill] sm:$0xff] %v3580_v9  ;;  %5946 = vst [vmem:[#allocation15_spill] sm:$0xff] %v3591_v14  ;;  %v3597_v16 = vld [vmem:[%s3549_s6 + $0x20] sm:$0xff]  ;;  %v85_v19 = vmul.f32 %v3571_v6, %v3574_v7  ;;  %v86_v20 = vmul.f32 %v3571_v6, %v3577_v8  ;;  %v3608_v21 = vld [vmem:[%s3549_s6 + $0x30] sm:$0xff]  ;;  %v3620_v25 = vmul.f32 %v3571_v6, %v3580_v9  ;;  %s4111_s20 = sld [smem:[#allocation3 + $0xd]]  ;;  %s4113_s21 = sld [smem:[#allocation3 + $0xe]] }
  0x1a   : > { %5947 = vst [vmem:[#allocation16_spill] sm:$0xff] %v3594_v15  ;;  %5948 = vst [vmem:[#allocation17_spill] sm:$0xff] %v3597_v16  ;;  %v3611_v22 = vld [vmem:[%s3549_s6 + $0x38] sm:$0xff]  ;;  %v3614_v23 = vld [vmem:[%s3549_s6 + $0x48] sm:$0xff]  ;;  %v3624_v26 = vmul.f32 %v3571_v6, %v3591_v14  ;;  %v3628_v27 = vmul.f32 %v3571_v6, %v3594_v15  ;;  %v88_v29 = vmul.f32 %v3616_v24, %v3580_v9  ;;  %s4268_s22 = sld [smem:[#allocation3 + $0xf]]  ;;  %s4270_s0 = sld [smem:[#allocation3 + $0x10]] }
  0x1b   : > { %5949 = vst [vmem:[#allocation18_spill] sm:$0xff] %v3608_v21  ;;  %v3631_v28 = vld [vmem:[%s3549_s6 + $0x50] sm:$0xff]  ;;  %v89_v30 = vmul.f32 %v3616_v24, %v3591_v14  ;;  %v90_v31 = vmul.f32 %v3616_v24, %v3594_v15  ;;  %v91_v32 = vmul.f32 %v3616_v24, %v3597_v16  ;;  %v92_v33 = vmul.f32 %v3616_v24, %v3608_v21  ;;  %v3650_v41 = vld [vmem:[%s3544_s28 + $0x1] sm:$0xff]  ;;  %v3656_v47 = vld [vmem:[%s3544_s28 + $0x19] sm:$0xff]  ;;  %s4326_s24 = sld [smem:[#allocation3 + $0x11]]  ;;  %s4427_s25 = sld [smem:[#allocation3 + $0x12]] }
  0x1c   : > { %v93_v34 = vmul.f32 %v3616_v24, %v3611_v22  ;;  %v94_v35 = vmul.f32 %v3616_v24, %v3614_v23  ;;  %v95_v36 = vmul.f32 %v3616_v24, %v3631_v28  ;;  %v96_v37 = vadd.f32 %v88_v29, %v79_v10  ;;  %5950 = vst [vmem:[#allocation19_spill] sm:$0xff] %v3650_v41  ;;  %v3653_v42 = vld [vmem:[%s3544_s28 + $0x9] sm:$0xff]  ;;  %v3659_v48 = vld [vmem:[%s3544_s28 + $0x21] sm:$0xff]  ;;  %v3662_v49 = vld [vmem:[%s3544_s28 + $0x31] sm:$0xff]  ;;  %s4429_s26 = sld [smem:[#allocation3 + $0x13]]  ;;  %s4453_s27 = sld [smem:[#allocation3 + $0x14]] }
  0x1d   : > { %v97_v38 = vadd.f32 %v89_v30, %v80_v11  ;;  %v98_v39 = vadd.f32 %v90_v31, %v81_v12  ;;  %v99_v40 = vadd.f32 %v91_v32, %v82_v13  ;;  %5951 = vst [vmem:[#allocation20_spill] sm:$0xff] %v3653_v42  ;;  %v100_v43 = vadd.f32 %v92_v33, %v83_v17  ;;  %v3672_v54 = vld [vmem:[%s3544_s28 + $0x39] sm:$0xff]  ;;  %v3675_v55 = vld [vmem:[%s3544_s28 + $0x49] sm:$0xff]  ;;  %v3678_v56 = vld [vmem:[%s3544_s28 + $0x51] sm:$0xff]  ;;  %s4550_s29 = sld [smem:[#allocation3 + $0x15]]  ;;  %s4552_s30 = sld [smem:[#allocation3 + $0x16]] }
  0x1e   : > { %v101_v44 = vadd.f32 %v93_v34, %v84_v18  ;;  %v102_v45 = vadd.f32 %v94_v35, %v85_v19  ;;  %v103_v46 = vadd.f32 %v95_v36, %v86_v20  ;;  %5952 = vst [vmem:[#allocation21_spill] sm:$0xff] %v3656_v47  ;;  %5953 = vst [vmem:[#allocation22_spill] sm:$0xff] %v3659_v48  ;;  %v3717_v34 = vld [vmem:[%s3549_s6 + $0x1] sm:$0xff]  ;;  %v3720_v35 = vld [vmem:[%s3549_s6 + $0x9] sm:$0xff]  ;;  %s4562_s7 = sld [smem:[#allocation3 + $0x17]]  ;;  %s5017_s16 = sld [smem:[#allocation3 + $0x20]] }
  0x1f   : > { %v124_v51 = vmul.f32 %v3571_v6, %v3597_v16  ;;  %v125_v52 = vmul.f32 %v3571_v6, %v3608_v21  ;;  %v126_v53 = vmul.f32 %v3571_v6, %v3611_v22  ;;  %5954 = vst [vmem:[#allocation23_spill] sm:$0xff] %v3678_v56  ;;  %v105_v57 = vmul.f32 %v104_v50, %v3650_v41  ;;  %v3723_v36 = vld [vmem:[%s3549_s6 + $0x19] sm:$0xff]  ;;  %s38_s23 = sadd.s32 1, %s3499_s23  }
  0x20   : > { %v106_v58 = vmul.f32 %v104_v50, %v3653_v42  ;;  %v107_v59 = vmul.f32 %v104_v50, %v3656_v47  ;;  %v108_v60 = vmul.f32 %v104_v50, %v3659_v48  ;;  %v109_v61 = vmul.f32 %v104_v50, %v3662_v49  ;;  %5955 = vst [vmem:[#allocation24_spill] sm:$0xff] %v3717_v34  ;;  %p35_p5 = scmp.ge.s32.totalorder %s38_s23, 7  }
  0x21   : > { %v110_v62 = vmul.f32 %v104_v50, %v3672_v54  ;;  %v111_v63 = vmul.f32 %v104_v50, %v3675_v55  ;;  %v112_v10 = vmul.f32 %v104_v50, %v3678_v56  ;;  %v3688_v11 = vadd.f32 %v105_v57, %v96_v37  ;;  %5956 = vst [vmem:[#allocation25_spill] sm:$0xff] %v3720_v35 }
  0x22   : > { %v3690_v12 = vadd.f32 %v106_v58, %v97_v38  ;;  %v3692_v13 = vadd.f32 %v107_v59, %v98_v39  ;;  %v3694_v17 = vadd.f32 %v108_v60, %v99_v40  ;;  %v3696_v18 = vadd.f32 %v109_v61, %v100_v43  ;;  %5957 = vst [vmem:[#allocation26_spill] sm:$0xff] %v3723_v36  ;;  %v3734_v40 = vld [vmem:[%s3549_s6 + $0x21] sm:$0xff]  ;;  %v3737_v43 = vld [vmem:[%s3549_s6 + $0x31] sm:$0xff]  ;;  %v3749_v59 = vld [vmem:[%s3549_s6 + $0x49] sm:$0xff] }
  0x23   : > { %v3698_v19 = vadd.f32 %v110_v62, %v101_v44  ;;  %v3700_v20 = vadd.f32 %v111_v63, %v102_v45  ;;  %v3702_v29 = vadd.f32 %v112_v10, %v103_v46  ;;  %v127_v30 = vmul.f32 %v3571_v6, %v3614_v23  ;;  %5958 = vst [vmem:[#allocation27_spill] sm:$0xff] %v3734_v40  ;;  %v3740_v44 = vld [vmem:[%s3549_s6 + $0x39] sm:$0xff]  ;;  %v3752_v60 = vld [vmem:[%s3549_s6 + $0x51] sm:$0xff] }
  0x24   : > { %v128_v31 = vmul.f32 %v3571_v6, %v3631_v28  ;;  %v129_v32 = vmul.f32 %v3616_v24, %v3650_v41  ;;  %v130_v33 = vmul.f32 %v3616_v24, %v3653_v42  ;;  %v131_v6 = vmul.f32 %v3616_v24, %v3656_v47 }
  0x25   : > { %v132_v37 = vmul.f32 %v3616_v24, %v3659_v48  ;;  %v133_v38 = vmul.f32 %v3616_v24, %v3662_v49  ;;  %v134_v39 = vmul.f32 %v3616_v24, %v3672_v54  ;;  %v135_v45 = vmul.f32 %v3616_v24, %v3675_v55 }
  0x26   : > { %v136_v46 = vmul.f32 %v3616_v24, %v3678_v56  ;;  %v137_v57 = vadd.f32 %v129_v32, %v3620_v25  ;;  %v138_v58 = vadd.f32 %v130_v33, %v3624_v26  ;;  %v139_v61 = vadd.f32 %v131_v6, %v3628_v27 }
  0x27   : > { %v140_v62 = vadd.f32 %v132_v37, %v124_v51  ;;  %v141_v63 = vadd.f32 %v133_v38, %v125_v52  ;;  %v142_v10 = vadd.f32 %v134_v39, %v126_v53  ;;  %v143_v42 = vadd.f32 %v135_v45, %v127_v30  ;;  %v3776_v38 = vld [vmem:[%s3544_s28 + $0x60] sm:$0xff]  ;;  %v3779_v39 = vld [vmem:[%s3544_s28 + $0x68] sm:$0xff] }
  0x28   : > { %v144_v41 = vadd.f32 %v136_v46, %v128_v31  ;;  %v145_v14 = vmul.f32 %v104_v50, %v3717_v34  ;;  %v146_v24 = vmul.f32 %v104_v50, %v3720_v35  ;;  %v147_v25 = vmul.f32 %v104_v50, %v3723_v36  ;;  %5963 = vst [vmem:[#allocation32_spill] sm:$0xff] %v3776_v38 }
  0x29   : > { %v148_v26 = vmul.f32 %v104_v50, %v3734_v40  ;;  %v149_v32 = vmul.f32 %v104_v50, %v3737_v43  ;;  %v150_v27 = vmul.f32 %v104_v50, %v3740_v44  ;;  %v151_v51 = vmul.f32 %v104_v50, %v3749_v59  ;;  %5964 = vst [vmem:[#allocation33_spill] sm:$0xff] %v3779_v39 }
  0x2a   : > { %v152_v52 = vmul.f32 %v104_v50, %v3752_v60  ;;  %v3763_v53 = vadd.f32 %v145_v14, %v137_v57  ;;  %v3765_v30 = vadd.f32 %v146_v24, %v138_v58  ;;  %v3767_v31 = vadd.f32 %v147_v25, %v139_v61  ;;  %v3790_v57 = vld [vmem:[%s3549_s6 + $0x60] sm:$0xff]  ;;  %v3793_v58 = vld [vmem:[%s3549_s6 + $0x68] sm:$0xff] }
  0x2b   : > { %v3769_v33 = vadd.f32 %v148_v26, %v140_v62  ;;  %v3771_v6 = vadd.f32 %v149_v32, %v141_v63  ;;  %v3773_v37 = vadd.f32 %v150_v27, %v142_v10  ;;  %v3783_v45 = vadd.f32 %v151_v51, %v143_v42  ;;  %5967 = vst [vmem:[#allocation36_spill] sm:$0xff] %v3790_v57 }
  0x2c   : > { %5959 = vst [vmem:[#allocation28_spill] sm:$0xff] %v3767_v31  ;;  %v3785_v14 = vadd.f32 %v152_v52, %v144_v41  ;;  %v200_v50 = vstv %s3712_s8  ;;  %v209_v46 = vstv %s3714_s9  ;;  %5968 = vst [vmem:[#allocation37_spill] sm:$0xff] %v3793_v58  ;;  %s4564_s8 = sld [smem:[#allocation3 + $0x18]]  ;;  %s4676_s9 = sld [smem:[#allocation3 + $0x19]]  ;;  %vm2263_vm0 = vcmask (%p35_p5), 785408  }
  0x2d   : > { %5960 = vst [vmem:[#allocation29_spill] sm:$0xff] %v3769_v33  ;;  %5961 = vst [vmem:[#allocation30_spill] sm:$0xff] %v3771_v6  ;;  %v201_v61 = vmul.f32 %v200_v50, %v3558_v2  ;;  %v202_v62 = vmul.f32 %v200_v50, %v3561_v3  ;;  %v203_v63 = vmul.f32 %v200_v50, %v3564_v4  ;;  %v3819_v6 = vld [vmem:[%s3544_s28 + $0x69] sm:$0xff] }
  0x2e   : > { %5962 = vst [vmem:[#allocation31_spill] sm:$0xff] %v3773_v37  ;;  %5965 = vst [vmem:[#allocation34_spill] sm:$0xff] %v3783_v45  ;;  %v204_v10 = vmul.f32 %v200_v50, %v3567_v5  ;;  %v205_v24 = vmul.f32 %v200_v50, %v3574_v7  ;;  %v206_v42 = vmul.f32 %v200_v50, %v3577_v8  ;;  %v226_v5 = vstv %s3781_s10  ;;  %v3816_v37 = vld [vmem:[%s3544_s28 + $0x61] sm:$0xff]  ;;  %s4678_s10 = sld [smem:[#allocation3 + $0x1a]] }
  0x2f   : > { %5966 = vst [vmem:[#allocation35_spill] sm:$0xff] %v3785_v14  ;;  %v207_v41 = vmul.f32 %v3776_v38, %v200_v50  ;;  %v208_v25 = vmul.f32 %v3779_v39, %v200_v50  ;;  %v210_v26 = vmul.f32 %v209_v46, %v3594_v15  ;;  %v211_v32 = vmul.f32 %v209_v46, %v3597_v16 }
  0x30   : > { %v212_v27 = vmul.f32 %v209_v46, %v3608_v21  ;;  %v213_v51 = vmul.f32 %v209_v46, %v3611_v22  ;;  %v214_v52 = vmul.f32 %v209_v46, %v3614_v23  ;;  %v215_v35 = vmul.f32 %v209_v46, %v3631_v28  ;;  %5969 = vst [vmem:[#allocation38_spill] sm:$0xff] %v3816_v37 }
  0x31   : > { %v216_v34 = vmul.f32 %v3790_v57, %v209_v46  ;;  %v217_v9 = vmul.f32 %v3793_v58, %v209_v46  ;;  %v218_v3 = vadd.f32 %v210_v26, %v201_v61  ;;  %v219_v2 = vadd.f32 %v211_v32, %v202_v62 }
  0x32   : > { %v220_v1 = vadd.f32 %v212_v27, %v203_v63  ;;  %v221_v0 = vadd.f32 %v213_v51, %v204_v10  ;;  %v222_v39 = vadd.f32 %v214_v52, %v205_v24  ;;  %v223_v38 = vadd.f32 %v215_v35, %v206_v42 }
  0x33   : > { %v224_v8 = vadd.f32 %v216_v34, %v207_v41  ;;  %v225_v7 = vadd.f32 %v217_v9, %v208_v25  ;;  %v243_v4 = vmul.f32 %v200_v50, %v3594_v15  ;;  %v244_v14 = vmul.f32 %v200_v50, %v3597_v16 }
  0x34   : > { %v245_v45 = vmul.f32 %v200_v50, %v3608_v21  ;;  %v227_v61 = vmul.f32 %v226_v5, %v3656_v47  ;;  %v228_v62 = vmul.f32 %v226_v5, %v3659_v48  ;;  %v229_v63 = vmul.f32 %v226_v5, %v3662_v49 }
  0x35   : > { %v230_v34 = vmul.f32 %v226_v5, %v3672_v54  ;;  %v231_v9 = vmul.f32 %v226_v5, %v3675_v55  ;;  %v232_v35 = vmul.f32 %v226_v5, %v3678_v56  ;;  %v233_v10 = vmul.f32 %v3816_v37, %v226_v5 }
  0x36   : > { %v234_v24 = vmul.f32 %v3819_v6, %v226_v5  ;;  %v235_v42 = vadd.f32 %v227_v61, %v218_v3  ;;  %v236_v41 = vadd.f32 %v228_v62, %v219_v2  ;;  %v237_v25 = vadd.f32 %v229_v63, %v220_v1 }
  0x37   : > { %v238_v26 = vadd.f32 %v230_v34, %v221_v0  ;;  %v239_v32 = vadd.f32 %v231_v9, %v222_v39  ;;  %v240_v27 = vadd.f32 %v232_v35, %v223_v38  ;;  %v241_v51 = vadd.f32 %v233_v10, %v224_v8  ;;  %v3842_v39 = vld [vmem:[%s3549_s6 + $0x61] sm:$0xff]  ;;  %v3846_v34 = vld [vmem:[%s3549_s6 + $0x69] sm:$0xff] }
  0x38   : > { %v242_v52 = vadd.f32 %v234_v24, %v225_v7  ;;  %v246_v16 = vmul.f32 %v200_v50, %v3611_v22  ;;  %v247_v15 = vmul.f32 %v200_v50, %v3614_v23  ;;  %v248_v21 = vmul.f32 %v200_v50, %v3631_v28 }
  0x39   : > { %v249_v33 = vmul.f32 %v3790_v57, %v200_v50  ;;  %v250_v31 = vmul.f32 %v3793_v58, %v200_v50  ;;  %v251_v2 = vmul.f32 %v209_v46, %v3656_v47  ;;  %v252_v0 = vmul.f32 %v209_v46, %v3659_v48 }
  0x3a   : > { %v253_v1 = vmul.f32 %v209_v46, %v3662_v49  ;;  %v254_v3 = vmul.f32 %v209_v46, %v3672_v54  ;;  %v255_v7 = vmul.f32 %v209_v46, %v3675_v55  ;;  %v256_v8 = vmul.f32 %v209_v46, %v3678_v56 }
  0x3b   : > { %v257_v38 = vmul.f32 %v3816_v37, %v209_v46  ;;  %v258_v61 = vmul.f32 %v3819_v6, %v209_v46  ;;  %v259_v62 = vadd.f32 %v251_v2, %v243_v4  ;;  %v260_v50 = vadd.f32 %v252_v0, %v244_v14 }
  0x3c   : > { %v261_v63 = vadd.f32 %v253_v1, %v245_v45  ;;  %v262_v9 = vadd.f32 %v254_v3, %v246_v16  ;;  %v263_v35 = vadd.f32 %v255_v7, %v247_v15  ;;  %v264_v10 = vadd.f32 %v256_v8, %v248_v21 }
  0x3d   : > { %v265_v24 = vadd.f32 %v257_v38, %v249_v33  ;;  %v266_v48 = vadd.f32 %v258_v61, %v250_v31  ;;  %v267_v47 = vmul.f32 %v226_v5, %v3723_v36  ;;  %v268_v37 = vmul.f32 %v226_v5, %v3734_v40 }
  0x3e   : > { %v269_v56 = vmul.f32 %v226_v5, %v3737_v43  ;;  %v270_v4 = vmul.f32 %v226_v5, %v3740_v44  ;;  %v271_v16 = vmul.f32 %v226_v5, %v3749_v59  ;;  %v272_v15 = vmul.f32 %v226_v5, %v3752_v60 }
  0x3f   : > { %v273_v21 = vmul.f32 %v3842_v39, %v226_v5  ;;  %v274_v31 = vmul.f32 %v3846_v34, %v226_v5  ;;  %v275_v33 = vadd.f32 %v267_v47, %v259_v62  ;;  %v276_v45 = vadd.f32 %v268_v37, %v260_v50  ;;  %v5972_v37 = vld [vmem:[#allocation29_spill] sm:$0xff]  ;;  %v3925_v50 = vld [vmem:[%s3549_s6 + $0x80] sm:$0xff] }
  0x40   : > { %v277_v14 = vadd.f32 %v269_v56, %v261_v63  ;;  %v278_v46 = vadd.f32 %v270_v4, %v262_v9  ;;  %v279_v2 = vadd.f32 %v271_v16, %v263_v35  ;;  %v280_v0 = vadd.f32 %v272_v15, %v264_v10  ;;  %v3922_v62 = vld [vmem:[%s3549_s6 + $0x78] sm:$0xff]  ;;  %5985 = vst [vmem:[#allocation42_spill] sm:$0xff] %v3925_v50  ;;  %v5986_v63 = vld [vmem:[#allocation10_spill] sm:$0xff]  ;;  %v5987_v35 = vld [vmem:[#allocation11_spill] sm:$0xff] }
  0x41   : > { %v281_v1 = vadd.f32 %v273_v21, %v265_v24  ;;  %v282_v3 = vadd.f32 %v274_v31, %v266_v48  ;;  %v3863_v7 = vadd.f32 %v235_v42, %v3688_v11  ;;  %v3866_v8 = vadd.f32 %v236_v41, %v3690_v12  ;;  %v5974_v42 = vld [vmem:[#allocation30_spill] sm:$0xff]  ;;  %5984 = vst [vmem:[#allocation41_spill] sm:$0xff] %v3922_v62  ;;  %v5988_v24 = vld [vmem:[#allocation12_spill] sm:$0xff]  ;;  %v5989_v16 = vld [vmem:[#allocation13_spill] sm:$0xff] }
  0x42   : > { %v3869_v38 = vadd.f32 %v237_v25, %v3692_v13  ;;  %v3872_v5 = vadd.f32 %v238_v26, %v3694_v17  ;;  %v3875_v47 = vadd.f32 %v239_v32, %v3696_v18  ;;  %v3878_v48 = vadd.f32 %v240_v27, %v3698_v19  ;;  %v5970_v17 = vld [vmem:[#allocation28_spill] sm:$0xff]  ;;  %v3911_v32 = vld [vmem:[%s3544_s28 + $0x80] sm:$0xff] }
  0x43   : > { %v3881_v56 = vadd.f32 %v241_v51, %v3700_v20  ;;  %v3884_v11 = vadd.f32 %v242_v52, %v3702_v29  ;;  %v3887_v12 = vadd.f32 %v275_v33, %v3763_v53  ;;  %v3890_v13 = vadd.f32 %v276_v45, %v3765_v30  ;;  %v5976_v20 = vld [vmem:[#allocation31_spill] sm:$0xff]  ;;  %v5978_v29 = vld [vmem:[#allocation34_spill] sm:$0xff]  ;;  %v3908_v53 = vld [vmem:[%s3544_s28 + $0x78] sm:$0xff]  ;;  %5981 = vst [vmem:[#allocation40_spill] sm:$0xff] %v3911_v32 }
  0x44   : > { %v3893_v18 = vadd.f32 %v277_v14, %v5970_v17  ;;  %v3896_v19 = vadd.f32 %v278_v46, %v5972_v37  ;;  %v3899_v41 = vadd.f32 %v279_v2, %v5974_v42  ;;  %v3902_v25 = vadd.f32 %v280_v0, %v5976_v20  ;;  %5980 = vst [vmem:[#allocation39_spill] sm:$0xff] %v3908_v53  ;;  %v5982_v30 = vld [vmem:[#allocation35_spill] sm:$0xff]  ;;  %v5990_v21 = vld [vmem:[#allocation32_spill] sm:$0xff]  ;;  %v5991_v33 = vld [vmem:[#allocation33_spill] sm:$0xff] }
  0x45   : > { %v3905_v26 = vadd.f32 %v281_v1, %v5978_v29  ;;  %v3914_v27 = vadd.f32 %v282_v3, %v5982_v30  ;;  %v338_v51 = vstv %s3848_s11  ;;  %v347_v52 = vstv %s3853_s12  ;;  %v5992_v2 = vld [vmem:[#allocation18_spill] sm:$0xff]  ;;  %s4884_s11 = sld [smem:[#allocation3 + $0x1b]]  ;;  %s4886_s12 = sld [smem:[#allocation3 + $0x1c]] }
  0x46   : > { %5971 = vst [vmem:[#allocation28_spill] sm:$0xff] %v3893_v18  ;;  %5973 = vst [vmem:[#allocation29_spill] sm:$0xff] %v3896_v19  ;;  %v3919_v61 = vstv %s3855_s13  ;;  %v339_v9 = vmul.f32 %v338_v51, %v5986_v63  ;;  %v340_v10 = vmul.f32 %v338_v51, %v5987_v35  ;;  %v341_v4 = vmul.f32 %v338_v51, %v5988_v24  ;;  %v3944_v24 = vld [vmem:[%s3544_s28 + $0x79] sm:$0xff]  ;;  %v3947_v35 = vld [vmem:[%s3544_s28 + $0x81] sm:$0xff]  ;;  %s4916_s13 = sld [smem:[#allocation3 + $0x1d]] }
  0x47   : > { %5975 = vst [vmem:[#allocation30_spill] sm:$0xff] %v3899_v41  ;;  %5977 = vst [vmem:[#allocation31_spill] sm:$0xff] %v3902_v25  ;;  %v342_v15 = vmul.f32 %v338_v51, %v5989_v16  ;;  %v343_v31 = vmul.f32 %v5990_v21, %v338_v51  ;;  %v344_v45 = vmul.f32 %v5991_v33, %v338_v51 }
  0x48   : > { %5979 = vst [vmem:[#allocation34_spill] sm:$0xff] %v3905_v26  ;;  %5983 = vst [vmem:[#allocation35_spill] sm:$0xff] %v3914_v27  ;;  %v345_v14 = vmul.f32 %v3908_v53, %v338_v51  ;;  %v346_v46 = vmul.f32 %v3911_v32, %v338_v51  ;;  %v348_v0 = vmul.f32 %v347_v52, %v5992_v2 }
  0x49   : > { %v349_v1 = vmul.f32 %v347_v52, %v3611_v22  ;;  %v350_v3 = vmul.f32 %v347_v52, %v3614_v23  ;;  %v351_v17 = vmul.f32 %v347_v52, %v3631_v28  ;;  %v352_v37 = vmul.f32 %v3790_v57, %v347_v52  ;;  %5993 = vst [vmem:[#allocation18_spill] sm:$0xff] %v3944_v24 }
  0x4a   : > { %v353_v42 = vmul.f32 %v3793_v58, %v347_v52  ;;  %v354_v20 = vmul.f32 %v3922_v62, %v347_v52  ;;  %v355_v29 = vmul.f32 %v3925_v50, %v347_v52  ;;  %v356_v30 = vadd.f32 %v348_v0, %v339_v9  ;;  %5994 = vst [vmem:[#allocation43_spill] sm:$0xff] %v3947_v35 }
  0x4b   : > { %v357_v32 = vadd.f32 %v349_v1, %v340_v10  ;;  %v358_v53 = vadd.f32 %v350_v3, %v341_v4  ;;  %v359_v33 = vadd.f32 %v351_v17, %v342_v15  ;;  %v360_v21 = vadd.f32 %v352_v37, %v343_v31  ;;  %v5995_v10 = vld [vmem:[#allocation23_spill] sm:$0xff]  ;;  %v5996_v15 = vld [vmem:[#allocation38_spill] sm:$0xff] }
  0x4c   : > { %v361_v40 = vadd.f32 %v353_v42, %v344_v45  ;;  %v362_v36 = vadd.f32 %v354_v20, %v345_v14  ;;  %v363_v16 = vadd.f32 %v355_v29, %v346_v46  ;;  %v365_v63 = vmul.f32 %v3919_v61, %v3662_v49 }
  0x4d   : > { %v366_v27 = vmul.f32 %v3919_v61, %v3672_v54  ;;  %v367_v9 = vmul.f32 %v3919_v61, %v3675_v55  ;;  %v368_v4 = vmul.f32 %v3919_v61, %v5995_v10  ;;  %v369_v31 = vmul.f32 %v5996_v15, %v3919_v61 }
  0x4e   : > { %v370_v45 = vmul.f32 %v3819_v6, %v3919_v61  ;;  %v371_v14 = vmul.f32 %v3944_v24, %v3919_v61  ;;  %v372_v46 = vmul.f32 %v3947_v35, %v3919_v61  ;;  %v373_v0 = vadd.f32 %v365_v63, %v356_v30 }
  0x4f   : > { %v374_v1 = vadd.f32 %v366_v27, %v357_v32  ;;  %v375_v3 = vadd.f32 %v367_v9, %v358_v53  ;;  %v376_v17 = vadd.f32 %v368_v4, %v359_v33  ;;  %v377_v37 = vadd.f32 %v369_v31, %v360_v21  ;;  %v3982_v4 = vld [vmem:[%s3549_s6 + $0x79] sm:$0xff]  ;;  %v3985_v31 = vld [vmem:[%s3549_s6 + $0x81] sm:$0xff] }
  0x50   : > { %v378_v42 = vadd.f32 %v370_v45, %v361_v40  ;;  %v379_v20 = vadd.f32 %v371_v14, %v362_v36  ;;  %v380_v29 = vadd.f32 %v372_v46, %v363_v16  ;;  %v381_v26 = vmul.f32 %v338_v51, %v5992_v2  ;;  %5997 = vst [vmem:[#allocation23_spill] sm:$0xff] %v3982_v4 }
  0x51   : > { %v382_v25 = vmul.f32 %v338_v51, %v3611_v22  ;;  %v383_v41 = vmul.f32 %v338_v51, %v3614_v23  ;;  %v384_v19 = vmul.f32 %v338_v51, %v3631_v28  ;;  %v385_v18 = vmul.f32 %v3790_v57, %v338_v51  ;;  %5998 = vst [vmem:[#allocation44_spill] sm:$0xff] %v3985_v31 }
  0x52   : > { %v386_v32 = vmul.f32 %v3793_v58, %v338_v51  ;;  %v387_v53 = vmul.f32 %v3922_v62, %v338_v51  ;;  %v388_v40 = vmul.f32 %v3925_v50, %v338_v51  ;;  %v389_v36 = vmul.f32 %v347_v52, %v3662_v49 }
  0x53   : > { %v390_v27 = vmul.f32 %v347_v52, %v3672_v54  ;;  %v391_v63 = vmul.f32 %v347_v52, %v3675_v55  ;;  %v392_v16 = vmul.f32 %v347_v52, %v5995_v10  ;;  %v393_v21 = vmul.f32 %v5996_v15, %v347_v52 }
  0x54   : > { %v394_v33 = vmul.f32 %v3819_v6, %v347_v52  ;;  %v395_v30 = vmul.f32 %v3944_v24, %v347_v52  ;;  %v396_v9 = vmul.f32 %v3947_v35, %v347_v52  ;;  %v397_v51 = vadd.f32 %v389_v36, %v381_v26 }
  0x55   : > { %v398_v45 = vadd.f32 %v390_v27, %v382_v25  ;;  %v399_v14 = vadd.f32 %v391_v63, %v383_v41  ;;  %v400_v46 = vadd.f32 %v392_v16, %v384_v19  ;;  %v401_v50 = vadd.f32 %v393_v21, %v385_v18 }
  0x56   : > { %v402_v62 = vadd.f32 %v394_v33, %v386_v32  ;;  %v403_v58 = vadd.f32 %v395_v30, %v387_v53  ;;  %v404_v57 = vadd.f32 %v396_v9, %v388_v40  ;;  %v405_v15 = vmul.f32 %v3919_v61, %v3737_v43 }
  0x57   : > { %v406_v24 = vmul.f32 %v3919_v61, %v3740_v44  ;;  %v407_v52 = vmul.f32 %v3919_v61, %v3749_v59  ;;  %v408_v35 = vmul.f32 %v3919_v61, %v3752_v60  ;;  %v409_v41 = vmul.f32 %v3842_v39, %v3919_v61 }
  0x58   : > { %v410_v18 = vmul.f32 %v3846_v34, %v3919_v61  ;;  %v411_v19 = vmul.f32 %v3982_v4, %v3919_v61  ;;  %v412_v25 = vmul.f32 %v3985_v31, %v3919_v61  ;;  %v413_v26 = vadd.f32 %v405_v15, %v397_v51  ;;  %v4211_v31 = vld [vmem:[%s3544_s28 + $0x49] sm:$0xff]  ;;  %v4214_v4 = vld [vmem:[%s3544_s28 + $0x51] sm:$0xff] }
  0x59   : > { %v414_v32 = vadd.f32 %v406_v24, %v398_v45  ;;  %v415_v53 = vadd.f32 %v407_v52, %v399_v14  ;;  %v416_v40 = vadd.f32 %v408_v35, %v400_v46  ;;  %v417_v36 = vadd.f32 %v409_v41, %v401_v50 }
  0x5a   : > { %v418_v27 = vadd.f32 %v410_v18, %v402_v62  ;;  %v419_v63 = vadd.f32 %v411_v19, %v403_v58  ;;  %v420_v16 = vadd.f32 %v412_v25, %v404_v57  ;;  %v421_v21 = vadd.f32 %v373_v0, %v3863_v7  ;;  %v5999_v7 = vld [vmem:[#allocation28_spill] sm:$0xff]  ;;  %v6005_v18 = vld [vmem:[#allocation6_spill] sm:$0xff]  ;;  %v6006_v25 = vld [vmem:[#allocation7_spill] sm:$0xff] }
  0x5b   : > { %v422_v33 = vadd.f32 %v374_v1, %v3866_v8  ;;  %v423_v30 = vadd.f32 %v375_v3, %v3869_v38  ;;  %v424_v61 = vadd.f32 %v376_v17, %v3872_v5  ;;  %v425_v24 = vadd.f32 %v377_v37, %v3875_v47  ;;  %v6000_v8 = vld [vmem:[#allocation29_spill] sm:$0xff]  ;;  %v6001_v38 = vld [vmem:[#allocation30_spill] sm:$0xff]  ;;  %v6002_v5 = vld [vmem:[#allocation31_spill] sm:$0xff] }
  0x5c   : > { %v426_v35 = vadd.f32 %v378_v42, %v3878_v48  ;;  %v427_v15 = vadd.f32 %v379_v20, %v3881_v56  ;;  %v428_v50 = vadd.f32 %v380_v29, %v3884_v11  ;;  %v429_v58 = vadd.f32 %v413_v26, %v3887_v12  ;;  %v6003_v3 = vld [vmem:[#allocation34_spill] sm:$0xff]  ;;  %v6004_v17 = vld [vmem:[#allocation35_spill] sm:$0xff] }
  0x5d   : > { %v430_v57 = vadd.f32 %v414_v32, %v3890_v13  ;;  %v431_v62 = vadd.f32 %v415_v53, %v5999_v7  ;;  %v432_v0 = vadd.f32 %v416_v40, %v6000_v8  ;;  %v433_v1 = vadd.f32 %v417_v36, %v6001_v38  ;;  %v6007_v40 = vld [vmem:[#allocation8_spill] sm:$0xff] }
  0x5e   : > { %v434_v47 = vadd.f32 %v418_v27, %v6002_v5  ;;  %v435_v48 = vadd.f32 %v419_v63, %v6003_v3  ;;  %v436_v56 = vadd.f32 %v420_v16, %v6004_v17  ;;  %v437_v37 = vmax.f32 %v421_v21, %v423_v30  ;;  %v6008_v27 = vld [vmem:[#allocation9_spill] sm:$0xff] }
  0x5f   : > { %v438_v11 = vmax.f32 %v422_v33, %v424_v61  ;;  %v439_v42 = vmax.f32 %v429_v58, %v431_v62  ;;  %v440_v12 = vmax.f32 %v430_v57, %v432_v0  ;;  %v449_v13 = vmax.f32 %v425_v24, %v427_v15  ;;  %v6009_v33 = vld [vmem:[#allocation10_spill] sm:$0xff]  ;;  %v6010_v61 = vld [vmem:[#allocation11_spill] sm:$0xff]  ;;  %v6015_v0 = vld [vmem:[#allocation16_spill] sm:$0xff] }
  0x60   : > { %v450_v20 = vmax.f32 %v426_v35, %v428_v50  ;;  %v451_v29 = vmax.f32 %v433_v1, %v435_v48  ;;  %v452_v9 = vmax.f32 %v434_v47, %v436_v56  ;;  %v498_v14 = vstv %s4003_s14  ;;  %v6011_v35 = vld [vmem:[#allocation12_spill] sm:$0xff]  ;;  %v6012_v50 = vld [vmem:[#allocation13_spill] sm:$0xff]  ;;  %v6013_v57 = vld [vmem:[#allocation14_spill] sm:$0xff]  ;;  %6045 = vst [vmem:[#allocation16_spill] sm:$0xff] %v4211_v31  ;;  %s5005_s14 = sld [smem:[#allocation3 + $0x1e]] }
  0x61   : > { %v441_v51 = vmax.f32 %v437_v37, %v439_v42  ;;  %v442_v45 = vmax.f32 %v438_v11, %v440_v12  ;;  %v4028_v46 = vstv %s4005_s15  ;;  %v499_v19 = vmul.f32 %v498_v14, %v6005_v18  ;;  %v6014_v62 = vld [vmem:[#allocation15_spill] sm:$0xff]  ;;  %v6016_v1 = vld [vmem:[#allocation17_spill] sm:$0xff]  ;;  %s5015_s15 = sld [smem:[#allocation3 + $0x1f]] }
  0x62   : > { %v453_v52 = vmax.f32 %v449_v13, %v451_v29  ;;  %v454_v41 = vmax.f32 %v450_v20, %v452_v9  ;;  %v500_v26 = vmul.f32 %v498_v14, %v6006_v25  ;;  %v501_v36 = vmul.f32 %v498_v14, %v6007_v40  ;;  %v6019_v25 = vld [vmem:[#allocation21_spill] sm:$0xff]  ;;  %6046 = vst [vmem:[#allocation17_spill] sm:$0xff] %v4214_v4 }
  0x63   : > { %v443_v32 = vmax.f32 %v441_v51, 0.0  ;;  %v444_v53 = vmax.f32 %v442_v45, 0.0  ;;  %v502_v63 = vmul.f32 %v498_v14, %v6008_v27  ;;  %v503_v30 = vmul.f32 %v498_v14, %v6009_v33  ;;  %v6017_v45 = vld [vmem:[#allocation19_spill] sm:$0xff] }
  0x64   : > { %v455_v16 = vmax.f32 %v453_v52, 0.0  ;;  %v456_v21 = vmax.f32 %v454_v41, 0.0  ;;  %v504_v24 = vmul.f32 %v498_v14, %v6010_v61  ;;  %v505_v15 = vmul.f32 %v498_v14, %v6011_v35  ;;  %v6018_v41 = vld [vmem:[#allocation20_spill] sm:$0xff] }
  0x65   : > { %447 = vst [vmem:[%s4036_s18] sm:$0xff] %v443_v32  ;;  %448 = vst [vmem:[%s4036_s18 + $0x8] sm:$0xff] %v444_v53  ;;  %v506_v58 = vmul.f32 %v498_v14, %v6012_v50  ;;  %v508_v7 = vmul.f32 %v4028_v46, %v6013_v57  ;;  %v509_v8 = vmul.f32 %v4028_v46, %v6014_v62  ;;  %v524_v9 = vstv %s4024_s17  ;;  %v6020_v53 = vld [vmem:[#allocation22_spill] sm:$0xff]  ;;  %s5136_s17 = sld [smem:[#allocation3 + $0x21]] }
  0x66   : > { %2796 = vst [vmem:[%s4036_s18 + $0x10] sm:$0xff] %v455_v16  ;;  %2797 = vst [vmem:[%s4036_s18 + $0x18] sm:$0xff] %v456_v21  ;;  %v510_v38 = vmul.f32 %v4028_v46, %v6015_v0  ;;  %v511_v5 = vmul.f32 %v4028_v46, %v6016_v1  ;;  %v512_v47 = vmul.f32 %v4028_v46, %v5992_v2 }
  0x67   : > { %v513_v3 = vmul.f32 %v4028_v46, %v3611_v22  ;;  %v514_v48 = vmul.f32 %v4028_v46, %v3614_v23  ;;  %v515_v17 = vmul.f32 %v4028_v46, %v3631_v28  ;;  %v516_v56 = vadd.f32 %v508_v7, %v499_v19 }
  0x68   : > { %v517_v37 = vadd.f32 %v509_v8, %v500_v26  ;;  %v518_v11 = vadd.f32 %v510_v38, %v501_v36  ;;  %v519_v42 = vadd.f32 %v511_v5, %v502_v63  ;;  %v520_v12 = vadd.f32 %v512_v47, %v503_v30 }
  0x69   : > { %v521_v13 = vadd.f32 %v513_v3, %v504_v24  ;;  %v522_v20 = vadd.f32 %v514_v48, %v505_v15  ;;  %v523_v29 = vadd.f32 %v515_v17, %v506_v58  ;;  %v541_v51 = vmul.f32 %v498_v14, %v6013_v57 }
  0x6a   : > { %v525_v52 = vmul.f32 %v524_v9, %v6017_v45  ;;  %v526_v18 = vmul.f32 %v524_v9, %v6018_v41  ;;  %v527_v32 = vmul.f32 %v524_v9, %v6019_v25  ;;  %v528_v40 = vmul.f32 %v524_v9, %v6020_v53 }
  0x6b   : > { %v529_v19 = vmul.f32 %v524_v9, %v3662_v49  ;;  %v530_v26 = vmul.f32 %v524_v9, %v3672_v54  ;;  %v531_v36 = vmul.f32 %v524_v9, %v3675_v55  ;;  %v532_v27 = vmul.f32 %v524_v9, %v5995_v10 }
  0x6c   : > { %v4070_v63 = vadd.f32 %v525_v52, %v516_v56  ;;  %v4072_v16 = vadd.f32 %v526_v18, %v517_v37  ;;  %v4074_v21 = vadd.f32 %v527_v32, %v518_v11  ;;  %v4076_v33 = vadd.f32 %v528_v40, %v519_v42  ;;  %v6022_v11 = vld [vmem:[#allocation25_spill] sm:$0xff]  ;;  %v4129_v18 = vld [vmem:[%s3544_s28 + $0x20] sm:$0xff] }
  0x6d   : > { %v4078_v30 = vadd.f32 %v529_v19, %v520_v12  ;;  %v4080_v61 = vadd.f32 %v530_v26, %v521_v13  ;;  %v4082_v24 = vadd.f32 %v531_v36, %v522_v20  ;;  %v4084_v35 = vadd.f32 %v532_v27, %v523_v29  ;;  %v6024_v12 = vld [vmem:[#allocation27_spill] sm:$0xff]  ;;  %v4121_v29 = vld [vmem:[%s3544_s28 + $0x18] sm:$0xff]  ;;  %6026 = vst [vmem:[#allocation29_spill] sm:$0xff] %v4129_v18  ;;  %v4161_v27 = vld [vmem:[%s3549_s6 + $0x20] sm:$0xff] }
  0x6e   : > { %v542_v15 = vmul.f32 %v498_v14, %v6014_v62  ;;  %v543_v50 = vmul.f32 %v498_v14, %v6015_v0  ;;  %v544_v58 = vmul.f32 %v498_v14, %v6016_v1  ;;  %v545_v57 = vmul.f32 %v498_v14, %v5992_v2  ;;  %6025 = vst [vmem:[#allocation28_spill] sm:$0xff] %v4121_v29  ;;  %v4158_v36 = vld [vmem:[%s3549_s6 + $0x18] sm:$0xff] }
  0x6f   : > { %v546_v7 = vmul.f32 %v498_v14, %v3611_v22  ;;  %v547_v8 = vmul.f32 %v498_v14, %v3614_v23  ;;  %v548_v38 = vmul.f32 %v498_v14, %v3631_v28  ;;  %v549_v5 = vmul.f32 %v4028_v46, %v6017_v45  ;;  %6031 = vst [vmem:[#allocation6_spill] sm:$0xff] %v4158_v36 }
  0x70   : > { %v550_v62 = vmul.f32 %v4028_v46, %v6018_v41  ;;  %v551_v0 = vmul.f32 %v4028_v46, %v6019_v25  ;;  %v552_v2 = vmul.f32 %v4028_v46, %v6020_v53  ;;  %v553_v22 = vmul.f32 %v4028_v46, %v3662_v49  ;;  %v4132_v25 = vld [vmem:[%s3544_s28 + $0x30] sm:$0xff]  ;;  %6032 = vst [vmem:[#allocation7_spill] sm:$0xff] %v4161_v27 }
  0x71   : > { %v554_v23 = vmul.f32 %v4028_v46, %v3672_v54  ;;  %v555_v28 = vmul.f32 %v4028_v46, %v3675_v55  ;;  %v556_v14 = vmul.f32 %v4028_v46, %v5995_v10  ;;  %v557_v1 = vadd.f32 %v549_v5, %v541_v51  ;;  %v6021_v55 = vld [vmem:[#allocation24_spill] sm:$0xff]  ;;  %v6023_v46 = vld [vmem:[#allocation26_spill] sm:$0xff]  ;;  %6027 = vst [vmem:[#allocation30_spill] sm:$0xff] %v4132_v25  ;;  %v4175_v5 = vld [vmem:[%s3549_s6 + $0x48] sm:$0xff] }
  0x72   : > { %v558_v47 = vadd.f32 %v550_v62, %v542_v15  ;;  %v559_v3 = vadd.f32 %v551_v0, %v543_v50  ;;  %v560_v48 = vadd.f32 %v552_v2, %v544_v58  ;;  %v561_v17 = vadd.f32 %v553_v22, %v545_v57  ;;  %v4165_v50 = vld [vmem:[%s3549_s6 + $0x30] sm:$0xff]  ;;  %v4168_v58 = vld [vmem:[%s3549_s6 + $0x38] sm:$0xff]  ;;  %6035 = vst [vmem:[#allocation10_spill] sm:$0xff] %v4175_v5 }
  0x73   : > { %v562_v49 = vadd.f32 %v554_v23, %v546_v7  ;;  %v563_v54 = vadd.f32 %v555_v28, %v547_v8  ;;  %v564_v56 = vadd.f32 %v556_v14, %v548_v38  ;;  %v565_v37 = vmul.f32 %v524_v9, %v6021_v55  ;;  %6033 = vst [vmem:[#allocation8_spill] sm:$0xff] %v4165_v50  ;;  %v4178_v62 = vld [vmem:[%s3549_s6 + $0x50] sm:$0xff]  ;;  %v6038_v28 = vld [vmem:[#allocation33_spill] sm:$0xff] }
  0x74   : > { %v566_v10 = vmul.f32 %v524_v9, %v6022_v11  ;;  %v567_v42 = vmul.f32 %v524_v9, %v6023_v46  ;;  %v568_v13 = vmul.f32 %v524_v9, %v6024_v12  ;;  %v569_v20 = vmul.f32 %v524_v9, %v3737_v43  ;;  %v4135_v43 = vld [vmem:[%s3544_s28 + $0x38] sm:$0xff]  ;;  %6034 = vst [vmem:[#allocation9_spill] sm:$0xff] %v4168_v58  ;;  %v6037_v22 = vld [vmem:[#allocation32_spill] sm:$0xff] }
  0x75   : > { %v570_v51 = vmul.f32 %v524_v9, %v3740_v44  ;;  %v571_v45 = vmul.f32 %v524_v9, %v3749_v59  ;;  %v572_v52 = vmul.f32 %v524_v9, %v3752_v60  ;;  %v4126_v41 = vadd.f32 %v565_v37, %v557_v1  ;;  %6028 = vst [vmem:[#allocation31_spill] sm:$0xff] %v4135_v43  ;;  %v4146_v60 = vld [vmem:[%s3544_s28 + $0x48] sm:$0xff]  ;;  %v4149_v9 = vld [vmem:[%s3544_s28 + $0x50] sm:$0xff]  ;;  %v6040_v46 = vld [vmem:[#allocation37_spill] sm:$0xff] }
  0x76   : > { %v4137_v32 = vadd.f32 %v566_v10, %v558_v47  ;;  %v4139_v44 = vadd.f32 %v567_v42, %v559_v3  ;;  %v4141_v53 = vadd.f32 %v568_v13, %v560_v48  ;;  %v4143_v59 = vadd.f32 %v569_v20, %v561_v17  ;;  %6029 = vst [vmem:[#allocation34_spill] sm:$0xff] %v4146_v60  ;;  %v6039_v11 = vld [vmem:[#allocation36_spill] sm:$0xff]  ;;  %v4199_v12 = vld [vmem:[%s3544_s28 + $0x19] sm:$0xff] }
  0x77   : > { %6030 = vst [vmem:[#allocation35_spill] sm:$0xff] %v4149_v9  ;;  %v4151_v40 = vadd.f32 %v570_v51, %v562_v49  ;;  %v4153_v19 = vadd.f32 %v571_v45, %v563_v54  ;;  %v4155_v26 = vadd.f32 %v572_v52, %v564_v56  ;;  %v616_v15 = vstv %s4095_s19  ;;  %6036 = vst [vmem:[#allocation11_spill] sm:$0xff] %v4178_v62  ;;  %v4202_v52 = vld [vmem:[%s3544_s28 + $0x21] sm:$0xff]  ;;  %s5138_s19 = sld [smem:[#allocation3 + $0x22]] }
  0x78   : > { %v617_v57 = vmul.f32 %v4121_v29, %v616_v15  ;;  %v618_v7 = vmul.f32 %v4129_v18, %v616_v15  ;;  %v619_v8 = vmul.f32 %v4132_v25, %v616_v15  ;;  %v620_v38 = vmul.f32 %v4135_v43, %v616_v15  ;;  %6041 = vst [vmem:[#allocation12_spill] sm:$0xff] %v4199_v12 }
  0x79   : > { %v621_v0 = vmul.f32 %v4146_v60, %v616_v15  ;;  %v622_v2 = vmul.f32 %v4149_v9, %v616_v15  ;;  %v623_v23 = vmul.f32 %v6037_v22, %v616_v15  ;;  %v624_v14 = vmul.f32 %v6038_v28, %v616_v15  ;;  %6042 = vst [vmem:[#allocation13_spill] sm:$0xff] %v4202_v52  ;;  %v4205_v22 = vld [vmem:[%s3544_s28 + $0x31] sm:$0xff]  ;;  %v4208_v28 = vld [vmem:[%s3544_s28 + $0x39] sm:$0xff] }
  0x7a   : > { %v625_v1 = vstv %s4111_s20  ;;  %v4186_v47 = vstv %s4113_s21  ;;  %v659_v3 = vmul.f32 %v4158_v36, %v616_v15  ;;  %v660_v48 = vmul.f32 %v4161_v27, %v616_v15  ;;  %6043 = vst [vmem:[#allocation14_spill] sm:$0xff] %v4205_v22  ;;  %6044 = vst [vmem:[#allocation15_spill] sm:$0xff] %v4208_v28  ;;  %s5148_s20 = sld [smem:[#allocation3 + $0x23]]  ;;  %s5150_s21 = sld [smem:[#allocation3 + $0x24]] }
  0x7b   : > { %v626_v17 = vmul.f32 %v4158_v36, %v625_v1  ;;  %v627_v49 = vmul.f32 %v4161_v27, %v625_v1  ;;  %v628_v54 = vmul.f32 %v4165_v50, %v625_v1  ;;  %v629_v56 = vmul.f32 %v4168_v58, %v625_v1 }
  0x7c   : > { %v630_v55 = vmul.f32 %v4175_v5, %v625_v1  ;;  %v631_v37 = vmul.f32 %v4178_v62, %v625_v1  ;;  %v632_v10 = vmul.f32 %v6039_v11, %v625_v1  ;;  %v633_v42 = vmul.f32 %v6040_v46, %v625_v1 }
  0x7d   : > { %v634_v13 = vadd.f32 %v626_v17, %v617_v57  ;;  %v635_v20 = vadd.f32 %v627_v49, %v618_v7  ;;  %v636_v51 = vadd.f32 %v628_v54, %v619_v8  ;;  %v637_v45 = vadd.f32 %v629_v56, %v620_v38 }
  0x7e   : > { %v638_v27 = vadd.f32 %v630_v55, %v621_v0  ;;  %v639_v36 = vadd.f32 %v631_v37, %v622_v2  ;;  %v640_v18 = vadd.f32 %v632_v10, %v623_v23  ;;  %v641_v29 = vadd.f32 %v633_v42, %v624_v14  ;;  %v6047_v23 = vld [vmem:[#allocation38_spill] sm:$0xff] }
  0x7f   : > { %v643_v57 = vmul.f32 %v4199_v12, %v4186_v47  ;;  %v644_v7 = vmul.f32 %v4202_v52, %v4186_v47  ;;  %v645_v8 = vmul.f32 %v4205_v22, %v4186_v47  ;;  %v646_v38 = vmul.f32 %v4208_v28, %v4186_v47 }
  0x80   : > { %v647_v0 = vmul.f32 %v4211_v31, %v4186_v47  ;;  %v648_v2 = vmul.f32 %v4214_v4, %v4186_v47  ;;  %v649_v14 = vmul.f32 %v6047_v23, %v4186_v47  ;;  %v650_v17 = vmul.f32 %v3819_v6, %v4186_v47 }
  0x81   : > { %v651_v49 = vadd.f32 %v643_v57, %v634_v13  ;;  %v652_v54 = vadd.f32 %v644_v7, %v635_v20  ;;  %v653_v56 = vadd.f32 %v645_v8, %v636_v51  ;;  %v654_v55 = vadd.f32 %v646_v38, %v637_v45  ;;  %v4247_v45 = vld [vmem:[%s3549_s6 + $0x31] sm:$0xff]  ;;  %v4254_v38 = vld [vmem:[%s3549_s6 + $0x39] sm:$0xff] }
  0x82   : > { %v655_v37 = vadd.f32 %v647_v0, %v638_v27  ;;  %v656_v10 = vadd.f32 %v648_v2, %v639_v36  ;;  %v657_v42 = vadd.f32 %v649_v14, %v640_v18  ;;  %v658_v9 = vadd.f32 %v650_v17, %v641_v29  ;;  %v4241_v29 = vld [vmem:[%s3549_s6 + $0x19] sm:$0xff]  ;;  %v4244_v36 = vld [vmem:[%s3549_s6 + $0x21] sm:$0xff] }
  0x83   : > { %v661_v60 = vmul.f32 %v4165_v50, %v616_v15  ;;  %v662_v43 = vmul.f32 %v4168_v58, %v616_v15  ;;  %v663_v25 = vmul.f32 %v4175_v5, %v616_v15  ;;  %v664_v13 = vmul.f32 %v4178_v62, %v616_v15  ;;  %6048 = vst [vmem:[#allocation19_spill] sm:$0xff] %v4241_v29 }
  0x84   : > { %v665_v20 = vmul.f32 %v6039_v11, %v616_v15  ;;  %v666_v51 = vmul.f32 %v6040_v46, %v616_v15  ;;  %v667_v27 = vmul.f32 %v4199_v12, %v625_v1  ;;  %v668_v18 = vmul.f32 %v4202_v52, %v625_v1  ;;  %6049 = vst [vmem:[#allocation20_spill] sm:$0xff] %v4244_v36  ;;  %v4257_v15 = vld [vmem:[%s3549_s6 + $0x49] sm:$0xff]  ;;  %v4260_v46 = vld [vmem:[%s3549_s6 + $0x51] sm:$0xff] }
  0x85   : > { %v669_v57 = vmul.f32 %v4205_v22, %v625_v1  ;;  %v670_v7 = vmul.f32 %v4208_v28, %v625_v1  ;;  %v671_v8 = vmul.f32 %v4211_v31, %v625_v1  ;;  %v672_v11 = vmul.f32 %v4214_v4, %v625_v1 }
  0x86   : > { %v673_v0 = vmul.f32 %v6047_v23, %v625_v1  ;;  %v674_v2 = vmul.f32 %v3819_v6, %v625_v1  ;;  %v675_v14 = vadd.f32 %v667_v27, %v659_v3  ;;  %v676_v17 = vadd.f32 %v668_v18, %v660_v48 }
  0x87   : > { %v677_v52 = vadd.f32 %v669_v57, %v661_v60  ;;  %v678_v12 = vadd.f32 %v670_v7, %v662_v43  ;;  %v679_v22 = vadd.f32 %v671_v8, %v663_v25  ;;  %v680_v28 = vadd.f32 %v672_v11, %v664_v13 }
  0x88   : > { %v681_v62 = vadd.f32 %v673_v0, %v665_v20  ;;  %v682_v31 = vadd.f32 %v674_v2, %v666_v51  ;;  %v683_v4 = vmul.f32 %v4241_v29, %v4186_v47  ;;  %v684_v5 = vmul.f32 %v4244_v36, %v4186_v47  ;;  %v6062_v0 = vld [vmem:[#allocation10_spill] sm:$0xff]  ;;  %v4382_v29 = vld [vmem:[%s3544_s28 + $0x69] sm:$0xff] }
  0x89   : > { %v685_v6 = vmul.f32 %v4247_v45, %v4186_v47  ;;  %v686_v43 = vmul.f32 %v4254_v38, %v4186_v47  ;;  %v687_v25 = vmul.f32 %v4257_v15, %v4186_v47  ;;  %v688_v60 = vmul.f32 %v4260_v46, %v4186_v47  ;;  %v4379_v36 = vld [vmem:[%s3544_s28 + $0x61] sm:$0xff]  ;;  %6066 = vst [vmem:[#allocation32_spill] sm:$0xff] %v4382_v29 }
  0x8a   : > { %v689_v1 = vmul.f32 %v3842_v39, %v4186_v47  ;;  %v690_v3 = vmul.f32 %v3846_v34, %v4186_v47  ;;  %v691_v48 = vadd.f32 %v683_v4, %v675_v14  ;;  %v692_v23 = vadd.f32 %v684_v5, %v676_v17  ;;  %v6063_v14 = vld [vmem:[#allocation11_spill] sm:$0xff] }
  0x8b   : > { %v693_v13 = vadd.f32 %v685_v6, %v677_v52  ;;  %v694_v20 = vadd.f32 %v686_v43, %v678_v12  ;;  %v695_v51 = vadd.f32 %v687_v25, %v679_v22  ;;  %v696_v27 = vadd.f32 %v688_v60, %v680_v28  ;;  %v6058_v12 = vld [vmem:[#allocation34_spill] sm:$0xff]  ;;  %v6059_v22 = vld [vmem:[#allocation35_spill] sm:$0xff]  ;;  %v6064_v25 = vld [vmem:[#allocation41_spill] sm:$0xff] }
  0x8c   : > { %v697_v18 = vadd.f32 %v689_v1, %v681_v62  ;;  %v698_v57 = vadd.f32 %v690_v3, %v682_v31  ;;  %v4285_v7 = vadd.f32 %v651_v49, %v4070_v63  ;;  %v4288_v8 = vadd.f32 %v652_v54, %v4072_v16  ;;  %v6057_v62 = vld [vmem:[#allocation31_spill] sm:$0xff]  ;;  %v6065_v1 = vld [vmem:[#allocation42_spill] sm:$0xff] }
  0x8d   : > { %v4291_v39 = vadd.f32 %v653_v56, %v4074_v21  ;;  %v4294_v34 = vadd.f32 %v654_v55, %v4076_v33  ;;  %v4297_v4 = vadd.f32 %v655_v37, %v4078_v30  ;;  %v4300_v31 = vadd.f32 %v656_v10, %v4080_v61  ;;  %v6060_v49 = vld [vmem:[#allocation39_spill] sm:$0xff]  ;;  %v6061_v56 = vld [vmem:[#allocation40_spill] sm:$0xff]  ;;  %v4353_v37 = vld [vmem:[%s3549_s6 + $0x60] sm:$0xff] }
  0x8e   : > { %v4303_v63 = vadd.f32 %v657_v42, %v4082_v24  ;;  %v4306_v16 = vadd.f32 %v658_v9, %v4084_v35  ;;  %v4309_v21 = vadd.f32 %v691_v48, %v4126_v41  ;;  %v4312_v33 = vadd.f32 %v692_v23, %v4137_v32  ;;  %v6056_v9 = vld [vmem:[#allocation30_spill] sm:$0xff]  ;;  %v4356_v10 = vld [vmem:[%s3549_s6 + $0x68] sm:$0xff] }
  0x8f   : > { %v4315_v5 = vadd.f32 %v693_v13, %v4139_v44  ;;  %v4318_v30 = vadd.f32 %v694_v20, %v4141_v53  ;;  %v4321_v61 = vadd.f32 %v695_v51, %v4143_v59  ;;  %v4324_v24 = vadd.f32 %v696_v27, %v4151_v40  ;;  %v4339_v53 = vld [vmem:[%s3544_s28 + $0x60] sm:$0xff]  ;;  %v4342_v59 = vld [vmem:[%s3544_s28 + $0x68] sm:$0xff] }
  0x90   : > { %v4329_v35 = vadd.f32 %v697_v18, %v4153_v19  ;;  %v4332_v41 = vadd.f32 %v698_v57, %v4155_v26  ;;  %v750_v32 = vstv %s4268_s22  ;;  %v4336_v44 = vstv %s4270_s0  ;;  %6054 = vst [vmem:[#allocation26_spill] sm:$0xff] %v4339_v53  ;;  %6055 = vst [vmem:[#allocation27_spill] sm:$0xff] %v4342_v59  ;;  %s5292_s22 = sld [smem:[#allocation3 + $0x25]]  ;;  %s5294_s0 = sld [smem:[#allocation3 + $0x26]] }
  0x91   : > { %6050 = vst [vmem:[#allocation21_spill] sm:$0xff] %v4321_v61  ;;  %6051 = vst [vmem:[#allocation22_spill] sm:$0xff] %v4324_v24  ;;  %v751_v40 = vmul.f32 %v6056_v9, %v750_v32  ;;  %v752_v47 = vmul.f32 %v6057_v62, %v750_v32  ;;  %v753_v52 = vmul.f32 %v6058_v12, %v750_v32 }
  0x92   : > { %6052 = vst [vmem:[#allocation24_spill] sm:$0xff] %v4329_v35  ;;  %6053 = vst [vmem:[#allocation25_spill] sm:$0xff] %v4332_v41  ;;  %v754_v28 = vmul.f32 %v6059_v22, %v750_v32  ;;  %v755_v19 = vmul.f32 %v4339_v53, %v750_v32  ;;  %v756_v26 = vmul.f32 %v4342_v59, %v750_v32  ;;  %v6067_v22 = vld [vmem:[#allocation14_spill] sm:$0xff] }
  0x93   : > { %v757_v54 = vmul.f32 %v6060_v49, %v750_v32  ;;  %v758_v55 = vmul.f32 %v6061_v56, %v750_v32  ;;  %v760_v42 = vmul.f32 %v4165_v50, %v4336_v44  ;;  %v761_v11 = vmul.f32 %v4168_v58, %v4336_v44 }
  0x94   : > { %v762_v2 = vmul.f32 %v6062_v0, %v4336_v44  ;;  %v763_v17 = vmul.f32 %v6063_v14, %v4336_v44  ;;  %v764_v6 = vmul.f32 %v4353_v37, %v4336_v44  ;;  %v765_v43 = vmul.f32 %v4356_v10, %v4336_v44 }
  0x95   : > { %v766_v60 = vmul.f32 %v6064_v25, %v4336_v44  ;;  %v767_v3 = vmul.f32 %v6065_v1, %v4336_v44  ;;  %v768_v48 = vadd.f32 %v760_v42, %v751_v40  ;;  %v769_v23 = vadd.f32 %v761_v11, %v752_v47  ;;  %v6068_v47 = vld [vmem:[#allocation15_spill] sm:$0xff]  ;;  %v6071_v11 = vld [vmem:[#allocation18_spill] sm:$0xff] }
  0x96   : > { %v770_v13 = vadd.f32 %v762_v2, %v753_v52  ;;  %v771_v20 = vadd.f32 %v763_v17, %v754_v28  ;;  %v772_v51 = vadd.f32 %v764_v6, %v755_v19  ;;  %v773_v27 = vadd.f32 %v765_v43, %v756_v26  ;;  %v6069_v28 = vld [vmem:[#allocation16_spill] sm:$0xff]  ;;  %v6070_v26 = vld [vmem:[#allocation17_spill] sm:$0xff]  ;;  %v6072_v17 = vld [vmem:[#allocation43_spill] sm:$0xff] }
  0x97   : > { %v774_v18 = vadd.f32 %v766_v60, %v757_v54  ;;  %v775_v57 = vadd.f32 %v767_v3, %v758_v55  ;;  %v776_v49 = vstv %s4326_s24  ;;  %v793_v56 = vmul.f32 %v4165_v50, %v750_v32  ;;  %s5426_s24 = sld [smem:[#allocation3 + $0x27]] }
  0x98   : > { %v794_v59 = vmul.f32 %v4168_v58, %v750_v32  ;;  %v795_v53 = vmul.f32 %v6062_v0, %v750_v32  ;;  %v777_v40 = vmul.f32 %v6067_v22, %v776_v49  ;;  %v778_v52 = vmul.f32 %v6068_v47, %v776_v49 }
  0x99   : > { %v779_v19 = vmul.f32 %v6069_v28, %v776_v49  ;;  %v780_v54 = vmul.f32 %v6070_v26, %v776_v49  ;;  %v781_v55 = vmul.f32 %v4379_v36, %v776_v49  ;;  %v782_v42 = vmul.f32 %v4382_v29, %v776_v49 }
  0x9a   : > { %v783_v2 = vmul.f32 %v6071_v11, %v776_v49  ;;  %v784_v6 = vmul.f32 %v6072_v17, %v776_v49  ;;  %v785_v43 = vadd.f32 %v777_v40, %v768_v48  ;;  %v786_v60 = vadd.f32 %v778_v52, %v769_v23 }
  0x9b   : > { %v787_v3 = vadd.f32 %v779_v19, %v770_v13  ;;  %v788_v0 = vadd.f32 %v780_v54, %v771_v20  ;;  %v789_v58 = vadd.f32 %v781_v55, %v772_v51  ;;  %v790_v50 = vadd.f32 %v782_v42, %v773_v27  ;;  %v4414_v55 = vld [vmem:[%s3549_s6 + $0x61] sm:$0xff]  ;;  %v4417_v42 = vld [vmem:[%s3549_s6 + $0x69] sm:$0xff] }
  0x9c   : > { %v791_v12 = vadd.f32 %v783_v2, %v774_v18  ;;  %v792_v62 = vadd.f32 %v784_v6, %v775_v57  ;;  %v796_v9 = vmul.f32 %v6063_v14, %v750_v32  ;;  %v797_v41 = vmul.f32 %v4353_v37, %v750_v32 }
  0x9d   : > { %v798_v35 = vmul.f32 %v4356_v10, %v750_v32  ;;  %v799_v24 = vmul.f32 %v6064_v25, %v750_v32  ;;  %v800_v61 = vmul.f32 %v6065_v1, %v750_v32  ;;  %v801_v48 = vmul.f32 %v6067_v22, %v4336_v44 }
  0x9e   : > { %v802_v23 = vmul.f32 %v6068_v47, %v4336_v44  ;;  %v803_v13 = vmul.f32 %v6069_v28, %v4336_v44  ;;  %v804_v20 = vmul.f32 %v6070_v26, %v4336_v44  ;;  %v805_v51 = vmul.f32 %v4379_v36, %v4336_v44 }
  0x9f   : > { %v806_v32 = vmul.f32 %v4382_v29, %v4336_v44  ;;  %v807_v25 = vmul.f32 %v6071_v11, %v4336_v44  ;;  %v808_v1 = vmul.f32 %v6072_v17, %v4336_v44  ;;  %v809_v27 = vadd.f32 %v801_v48, %v793_v56 }
  0xa0   : > { %v810_v18 = vadd.f32 %v802_v23, %v794_v59  ;;  %v811_v57 = vadd.f32 %v803_v13, %v795_v53  ;;  %v812_v40 = vadd.f32 %v804_v20, %v796_v9  ;;  %v813_v52 = vadd.f32 %v805_v51, %v797_v41  ;;  %v6073_v41 = vld [vmem:[#allocation23_spill] sm:$0xff] }
  0xa1   : > { %v814_v19 = vadd.f32 %v806_v32, %v798_v35  ;;  %v815_v54 = vadd.f32 %v807_v25, %v799_v24  ;;  %v816_v2 = vadd.f32 %v808_v1, %v800_v61  ;;  %v817_v6 = vmul.f32 %v4247_v45, %v776_v49  ;;  %v6074_v24 = vld [vmem:[#allocation44_spill] sm:$0xff] }
  0xa2   : > { %v818_v29 = vmul.f32 %v4254_v38, %v776_v49  ;;  %v819_v11 = vmul.f32 %v4257_v15, %v776_v49  ;;  %v820_v44 = vmul.f32 %v4260_v46, %v776_v49  ;;  %v821_v59 = vmul.f32 %v4414_v55, %v776_v49 }
  0xa3   : > { %v822_v53 = vmul.f32 %v4417_v42, %v776_v49  ;;  %v823_v35 = vmul.f32 %v6073_v41, %v776_v49  ;;  %v824_v9 = vmul.f32 %v6074_v24, %v776_v49  ;;  %v825_v56 = vadd.f32 %v817_v6, %v809_v27  ;;  %v4469_v24 = vld [vmem:[%s3549_s6 + $0x8] sm:$0xff] }
  0xa4   : > { %v826_v17 = vadd.f32 %v818_v29, %v810_v18  ;;  %v827_v48 = vadd.f32 %v819_v11, %v811_v57  ;;  %v828_v61 = vadd.f32 %v820_v44, %v812_v40  ;;  %v829_v23 = vadd.f32 %v821_v59, %v813_v52  ;;  %v4462_v44 = vld [vmem:[%s3549_s6] sm:$0xff]  ;;  %6082 = vst [vmem:[#allocation38_spill] sm:$0xff] %v4469_v24 }
  0xa5   : > { %v830_v13 = vadd.f32 %v822_v53, %v814_v19  ;;  %v831_v20 = vadd.f32 %v823_v35, %v815_v54  ;;  %v832_v51 = vadd.f32 %v824_v9, %v816_v2  ;;  %v833_v32 = vadd.f32 %v785_v43, %v4285_v7  ;;  %v6075_v43 = vld [vmem:[#allocation21_spill] sm:$0xff]  ;;  %6081 = vst [vmem:[#allocation37_spill] sm:$0xff] %v4462_v44  ;;  %v6083_v9 = vld [vmem:[#allocation28_spill] sm:$0xff] }
  0xa6   : > { %v834_v25 = vadd.f32 %v786_v60, %v4288_v8  ;;  %v835_v1 = vadd.f32 %v787_v3, %v4291_v39  ;;  %v836_v49 = vadd.f32 %v788_v0, %v4294_v34  ;;  %v837_v29 = vadd.f32 %v789_v58, %v4297_v4  ;;  %v6076_v0 = vld [vmem:[#allocation22_spill] sm:$0xff]  ;;  %v6077_v4 = vld [vmem:[#allocation24_spill] sm:$0xff] }
  0xa7   : > { %v838_v27 = vadd.f32 %v790_v50, %v4300_v31  ;;  %v839_v18 = vadd.f32 %v791_v12, %v4303_v63  ;;  %v840_v57 = vadd.f32 %v792_v62, %v4306_v16  ;;  %v841_v40 = vadd.f32 %v825_v56, %v4309_v21  ;;  %v6078_v31 = vld [vmem:[#allocation25_spill] sm:$0xff]  ;;  %v4448_v62 = vld [vmem:[%s3544_s28] sm:$0xff] }
  0xa8   : > { %v842_v7 = vadd.f32 %v826_v17, %v4312_v33  ;;  %v843_v8 = vadd.f32 %v827_v48, %v4315_v5  ;;  %v844_v39 = vadd.f32 %v828_v61, %v4318_v30  ;;  %v845_v34 = vadd.f32 %v829_v23, %v6075_v43  ;;  %6079 = vst [vmem:[#allocation33_spill] sm:$0xff] %v4448_v62  ;;  %v4451_v33 = vld [vmem:[%s3544_s28 + $0x8] sm:$0xff]  ;;  %v6084_v17 = vld [vmem:[#allocation29_spill] sm:$0xff]  ;;  %v6091_v43 = vld [vmem:[#allocation8_spill] sm:$0xff] }
  0xa9   : > { %v846_v58 = vadd.f32 %v830_v13, %v6076_v0  ;;  %v847_v50 = vadd.f32 %v831_v20, %v6077_v4  ;;  %v848_v63 = vadd.f32 %v832_v51, %v6078_v31  ;;  %v849_v12 = vmax.f32 %v833_v32, %v835_v1  ;;  %6080 = vst [vmem:[#allocation36_spill] sm:$0xff] %v4451_v33  ;;  %v6085_v13 = vld [vmem:[#allocation30_spill] sm:$0xff]  ;;  %v6086_v51 = vld [vmem:[#allocation31_spill] sm:$0xff]  ;;  %v6092_v0 = vld [vmem:[#allocation9_spill] sm:$0xff] }
  0xaa   : > { %v850_v16 = vmax.f32 %v834_v25, %v836_v49  ;;  %v851_v21 = vmax.f32 %v841_v40, %v843_v8  ;;  %v852_v5 = vmax.f32 %v842_v7, %v844_v39  ;;  %v861_v30 = vmax.f32 %v837_v29, %v839_v18  ;;  %v6087_v1 = vld [vmem:[#allocation34_spill] sm:$0xff]  ;;  %v6088_v29 = vld [vmem:[#allocation35_spill] sm:$0xff] }
  0xab   : > { %v862_v60 = vmax.f32 %v838_v27, %v840_v57  ;;  %v863_v3 = vmax.f32 %v845_v34, %v847_v50  ;;  %v864_v19 = vmax.f32 %v846_v58, %v848_v63  ;;  %v4456_v54 = vstv %s4427_s25  ;;  %v6089_v40 = vld [vmem:[#allocation6_spill] sm:$0xff]  ;;  %v6090_v8 = vld [vmem:[#allocation7_spill] sm:$0xff]  ;;  %s5428_s25 = sld [smem:[#allocation3 + $0x28]] }
  0xac   : > { %v853_v52 = vmax.f32 %v849_v12, %v851_v21  ;;  %v4459_v2 = vstv %s4429_s26  ;;  %v854_v6 = vmax.f32 %v850_v16, %v852_v5  ;;  %v909_v59 = vmul.f32 %v4456_v54, %v4448_v62  ;;  %v6093_v4 = vld [vmem:[#allocation10_spill] sm:$0xff]  ;;  %s5484_s26 = sld [smem:[#allocation3 + $0x29]] }
  0xad   : > { %v865_v11 = vmax.f32 %v861_v30, %v863_v3  ;;  %v910_v53 = vmul.f32 %v4456_v54, %v4451_v33  ;;  %v866_v35 = vmax.f32 %v862_v60, %v864_v19  ;;  %v911_v56 = vmul.f32 %v6083_v9, %v4456_v54  ;;  %v4504_v30 = vld [vmem:[%s3544_s28 + $0x1] sm:$0xff]  ;;  %v4507_v60 = vld [vmem:[%s3544_s28 + $0x9] sm:$0xff] }
  0xae   : > { %v855_v41 = vmax.f32 %v853_v52, 0.0  ;;  %v912_v48 = vmul.f32 %v6084_v17, %v4456_v54  ;;  %v856_v61 = vmax.f32 %v854_v6, 0.0  ;;  %v913_v20 = vmul.f32 %v6085_v13, %v4456_v54  ;;  %6094 = vst [vmem:[#allocation39_spill] sm:$0xff] %v4504_v30  ;;  %6095 = vst [vmem:[#allocation40_spill] sm:$0xff] %v4507_v60 }
  0xaf   : > { %v867_v23 = vmax.f32 %v865_v11, 0.0  ;;  %v914_v32 = vmul.f32 %v6086_v51, %v4456_v54  ;;  %v868_v25 = vmax.f32 %v866_v35, 0.0  ;;  %v915_v49 = vmul.f32 %v6087_v1, %v4456_v54  ;;  %v6096_v35 = vld [vmem:[#allocation12_spill] sm:$0xff] }
  0xb0   : > { %2872 = vst [vmem:[%s4036_s18 + $0xe0] sm:$0xff] %v855_v41  ;;  %v916_v27 = vmul.f32 %v6088_v29, %v4456_v54  ;;  %v918_v18 = vmul.f32 %v4459_v2, %v4462_v44  ;;  %2873 = vst [vmem:[%s4036_s18 + $0xe8] sm:$0xff] %v856_v61  ;;  %v919_v57 = vmul.f32 %v4459_v2, %v4469_v24  ;;  %v934_v6 = vstv %s4453_s27  ;;  %s5529_s27 = sld [smem:[#allocation3 + $0x2a]] }
  0xb1   : > { %2876 = vst [vmem:[%s4036_s18 + $0xf0] sm:$0xff] %v867_v23  ;;  %v920_v7 = vmul.f32 %v6089_v40, %v4459_v2  ;;  %v921_v39 = vmul.f32 %v6090_v8, %v4459_v2  ;;  %v922_v34 = vmul.f32 %v6091_v43, %v4459_v2  ;;  %2877 = vst [vmem:[%s4036_s18 + $0xf8] sm:$0xff] %v868_v25  ;;  %v6097_v23 = vld [vmem:[#allocation13_spill] sm:$0xff] }
  0xb2   : > { %v923_v58 = vmul.f32 %v6092_v0, %v4459_v2  ;;  %v924_v50 = vmul.f32 %v6093_v4, %v4459_v2  ;;  %v925_v31 = vmul.f32 %v6063_v14, %v4459_v2  ;;  %v926_v63 = vadd.f32 %v918_v18, %v909_v59 }
  0xb3   : > { %v927_v12 = vadd.f32 %v919_v57, %v910_v53  ;;  %v928_v16 = vadd.f32 %v920_v7, %v911_v56  ;;  %v929_v21 = vadd.f32 %v921_v39, %v912_v48  ;;  %v930_v5 = vadd.f32 %v922_v34, %v913_v20 }
  0xb4   : > { %v931_v3 = vadd.f32 %v923_v58, %v914_v32  ;;  %v932_v52 = vadd.f32 %v924_v50, %v915_v49  ;;  %v933_v19 = vadd.f32 %v925_v31, %v916_v27  ;;  %v935_v11 = vmul.f32 %v934_v6, %v4504_v30 }
  0xb5   : > { %v936_v41 = vmul.f32 %v934_v6, %v4507_v60  ;;  %v937_v61 = vmul.f32 %v6096_v35, %v934_v6  ;;  %v938_v59 = vmul.f32 %v6097_v23, %v934_v6  ;;  %v939_v53 = vmul.f32 %v6067_v22, %v934_v6 }
  0xb6   : > { %v940_v56 = vmul.f32 %v6068_v47, %v934_v6  ;;  %v941_v48 = vmul.f32 %v6069_v28, %v934_v6  ;;  %v942_v20 = vmul.f32 %v6070_v26, %v934_v6  ;;  %v4518_v32 = vadd.f32 %v935_v11, %v926_v63  ;;  %v4570_v11 = vld [vmem:[%s3549_s6 + $0x9] sm:$0xff] }
  0xb7   : > { %v4520_v25 = vadd.f32 %v936_v41, %v927_v12  ;;  %v4522_v49 = vadd.f32 %v937_v61, %v928_v16  ;;  %v4524_v27 = vadd.f32 %v938_v59, %v929_v21  ;;  %v4526_v18 = vadd.f32 %v939_v53, %v930_v5  ;;  %6104 = vst [vmem:[#allocation17_spill] sm:$0xff] %v4570_v11 }
  0xb8   : > { %v4528_v57 = vadd.f32 %v940_v56, %v931_v3  ;;  %v4530_v7 = vadd.f32 %v941_v48, %v932_v52  ;;  %v4532_v39 = vadd.f32 %v942_v20, %v933_v19  ;;  %v951_v34 = vmul.f32 %v4456_v54, %v4462_v44 }
  0xb9   : > { %6098 = vst [vmem:[#allocation11_spill] sm:$0xff] %v4524_v27  ;;  %6099 = vst [vmem:[#allocation41_spill] sm:$0xff] %v4526_v18  ;;  %v952_v58 = vmul.f32 %v4456_v54, %v4469_v24  ;;  %v953_v50 = vmul.f32 %v6089_v40, %v4456_v54  ;;  %v954_v31 = vmul.f32 %v6090_v8, %v4456_v54  ;;  %v6106_v18 = vld [vmem:[#allocation20_spill] sm:$0xff] }
  0xba   : > { %6100 = vst [vmem:[#allocation42_spill] sm:$0xff] %v4528_v57  ;;  %6101 = vst [vmem:[#allocation14_spill] sm:$0xff] %v4530_v7  ;;  %v955_v63 = vmul.f32 %v6091_v43, %v4456_v54  ;;  %v956_v12 = vmul.f32 %v6092_v0, %v4456_v54  ;;  %v957_v16 = vmul.f32 %v6093_v4, %v4456_v54  ;;  %v6105_v7 = vld [vmem:[#allocation19_spill] sm:$0xff] }
  0xbb   : > { %6102 = vst [vmem:[#allocation15_spill] sm:$0xff] %v4532_v39  ;;  %v958_v21 = vmul.f32 %v6063_v14, %v4456_v54  ;;  %v959_v5 = vmul.f32 %v4459_v2, %v4504_v30  ;;  %v960_v3 = vmul.f32 %v4459_v2, %v4507_v60  ;;  %v961_v52 = vmul.f32 %v6096_v35, %v4459_v2  ;;  %v4567_v54 = vld [vmem:[%s3549_s6 + $0x1] sm:$0xff] }
  0xbc   : > { %v962_v19 = vmul.f32 %v6097_v23, %v4459_v2  ;;  %6103 = vst [vmem:[#allocation16_spill] sm:$0xff] %v4567_v54  ;;  %v963_v41 = vmul.f32 %v6067_v22, %v4459_v2  ;;  %v964_v61 = vmul.f32 %v6068_v47, %v4459_v2  ;;  %v965_v59 = vmul.f32 %v6069_v28, %v4459_v2 }
  0xbd   : > { %v966_v53 = vmul.f32 %v6070_v26, %v4459_v2  ;;  %v967_v56 = vadd.f32 %v959_v5, %v951_v34  ;;  %v968_v48 = vadd.f32 %v960_v3, %v952_v58  ;;  %v969_v20 = vadd.f32 %v961_v52, %v953_v50 }
  0xbe   : > { %v970_v60 = vadd.f32 %v962_v19, %v954_v31  ;;  %v971_v30 = vadd.f32 %v963_v41, %v955_v63  ;;  %v972_v24 = vadd.f32 %v964_v61, %v956_v12  ;;  %v973_v44 = vadd.f32 %v965_v59, %v957_v16 }
  0xbf   : > { %v974_v33 = vadd.f32 %v966_v53, %v958_v21  ;;  %v975_v62 = vmul.f32 %v934_v6, %v4567_v54  ;;  %v976_v39 = vmul.f32 %v934_v6, %v4570_v11  ;;  %v977_v57 = vmul.f32 %v6105_v7, %v934_v6 }
  0xc0   : > { %v978_v27 = vmul.f32 %v6106_v18, %v934_v6  ;;  %v979_v2 = vmul.f32 %v4247_v45, %v934_v6  ;;  %v980_v34 = vmul.f32 %v4254_v38, %v934_v6  ;;  %v981_v58 = vmul.f32 %v4257_v15, %v934_v6 }
  0xc1   : > { %v982_v50 = vmul.f32 %v4260_v46, %v934_v6  ;;  %v4588_v31 = vadd.f32 %v975_v62, %v967_v56  ;;  %v4590_v63 = vadd.f32 %v976_v39, %v968_v48  ;;  %v4592_v12 = vadd.f32 %v977_v57, %v969_v20  ;;  %v6113_v39 = vld [vmem:[#allocation27_spill] sm:$0xff] }
  0xc2   : > { %v4594_v16 = vadd.f32 %v978_v27, %v970_v60  ;;  %v4596_v21 = vadd.f32 %v979_v2, %v971_v30  ;;  %v4598_v5 = vadd.f32 %v980_v34, %v972_v24  ;;  %v4600_v3 = vadd.f32 %v981_v58, %v973_v44 }
  0xc3   : > { %v4602_v52 = vadd.f32 %v982_v50, %v974_v33  ;;  %v1026_v19 = vstv %s4550_s29  ;;  %v1035_v41 = vstv %s4552_s30  ;;  %v4607_v61 = vstv %s4562_s7  ;;  %v6112_v33 = vld [vmem:[#allocation26_spill] sm:$0xff]  ;;  %s5532_s29 = sld [smem:[#allocation3 + $0x2b]]  ;;  %s5534_s30 = sld [smem:[#allocation3 + $0x2c]] }
  0xc4   : > { %6107 = vst [vmem:[#allocation18_spill] sm:$0xff] %v4596_v21  ;;  %6108 = vst [vmem:[#allocation43_spill] sm:$0xff] %v4598_v5  ;;  %v4610_v62 = vstv %s4564_s8  ;;  %v1027_v6 = vmul.f32 %v6083_v9, %v1026_v19  ;;  %v1028_v57 = vmul.f32 %v6084_v17, %v1026_v19  ;;  %v1029_v60 = vmul.f32 %v6085_v13, %v1026_v19 }
  0xc5   : > { %6109 = vst [vmem:[#allocation23_spill] sm:$0xff] %v4600_v3  ;;  %6110 = vst [vmem:[#allocation44_spill] sm:$0xff] %v4602_v52  ;;  %v1030_v30 = vmul.f32 %v6086_v51, %v1026_v19  ;;  %v1031_v24 = vmul.f32 %v6087_v1, %v1026_v19  ;;  %v1032_v44 = vmul.f32 %v6088_v29, %v1026_v19 }
  0xc6   : > { %6111 = vst [vmem:[#allocation21_spill] sm:$0xff] %v4610_v62  ;;  %v1033_v27 = vmul.f32 %v6112_v33, %v1026_v19  ;;  %v1034_v59 = vmul.f32 %v6113_v39, %v1026_v19  ;;  %v1036_v53 = vmul.f32 %v6089_v40, %v1035_v41  ;;  %v1037_v56 = vmul.f32 %v6090_v8, %v1035_v41 }
  0xc7   : > { %v1038_v9 = vmul.f32 %v6091_v43, %v1035_v41  ;;  %v1039_v17 = vmul.f32 %v6092_v0, %v1035_v41  ;;  %v1040_v13 = vmul.f32 %v6093_v4, %v1035_v41  ;;  %v1041_v51 = vmul.f32 %v6063_v14, %v1035_v41 }
  0xc8   : > { %v1042_v1 = vmul.f32 %v4353_v37, %v1035_v41  ;;  %v1043_v29 = vmul.f32 %v4356_v10, %v1035_v41  ;;  %v1044_v48 = vadd.f32 %v1036_v53, %v1027_v6  ;;  %v1045_v20 = vadd.f32 %v1037_v56, %v1028_v57 }
  0xc9   : > { %v1046_v2 = vadd.f32 %v1038_v9, %v1029_v60  ;;  %v1047_v34 = vadd.f32 %v1039_v17, %v1030_v30  ;;  %v1048_v58 = vadd.f32 %v1040_v13, %v1031_v24  ;;  %v1049_v50 = vadd.f32 %v1041_v51, %v1032_v44  ;;  %v6114_v30 = vld [vmem:[#allocation32_spill] sm:$0xff] }
  0xca   : > { %v1050_v11 = vadd.f32 %v1042_v1, %v1033_v27  ;;  %v1051_v54 = vadd.f32 %v1043_v29, %v1034_v59  ;;  %v1053_v39 = vmul.f32 %v6096_v35, %v4607_v61  ;;  %v1054_v33 = vmul.f32 %v6097_v23, %v4607_v61 }
  0xcb   : > { %v1055_v62 = vmul.f32 %v6067_v22, %v4607_v61  ;;  %v1056_v52 = vmul.f32 %v6068_v47, %v4607_v61  ;;  %v1057_v6 = vmul.f32 %v6069_v28, %v4607_v61  ;;  %v1058_v57 = vmul.f32 %v6070_v26, %v4607_v61 }
  0xcc   : > { %v1059_v60 = vmul.f32 %v4379_v36, %v4607_v61  ;;  %v1060_v24 = vmul.f32 %v6114_v30, %v4607_v61  ;;  %v1061_v44 = vadd.f32 %v1053_v39, %v1044_v48  ;;  %v1062_v27 = vadd.f32 %v1054_v33, %v1045_v20 }
  0xcd   : > { %v1063_v59 = vadd.f32 %v1055_v62, %v1046_v2  ;;  %v1064_v53 = vadd.f32 %v1056_v52, %v1047_v34  ;;  %v1065_v56 = vadd.f32 %v1057_v6, %v1048_v58  ;;  %v1066_v9 = vadd.f32 %v1058_v57, %v1049_v50  ;;  %v6115_v57 = vld [vmem:[#allocation11_spill] sm:$0xff] }
  0xce   : > { %v1067_v17 = vadd.f32 %v1059_v60, %v1050_v11  ;;  %v1068_v13 = vadd.f32 %v1060_v24, %v1051_v54  ;;  %v1069_v51 = vmul.f32 %v6089_v40, %v1026_v19  ;;  %v1070_v1 = vmul.f32 %v6090_v8, %v1026_v19  ;;  %v6116_v24 = vld [vmem:[#allocation41_spill] sm:$0xff] }
  0xcf   : > { %v1071_v29 = vmul.f32 %v6091_v43, %v1026_v19  ;;  %v1072_v3 = vmul.f32 %v6092_v0, %v1026_v19  ;;  %v1073_v5 = vmul.f32 %v6093_v4, %v1026_v19  ;;  %v1074_v21 = vmul.f32 %v6063_v14, %v1026_v19 }
  0xd0   : > { %v1075_v33 = vmul.f32 %v4353_v37, %v1026_v19  ;;  %v1076_v52 = vmul.f32 %v4356_v10, %v1026_v19  ;;  %v1077_v62 = vmul.f32 %v6096_v35, %v1035_v41  ;;  %v1078_v54 = vmul.f32 %v6097_v23, %v1035_v41 }
  0xd1   : > { %v1079_v40 = vmul.f32 %v6067_v22, %v1035_v41  ;;  %v1080_v8 = vmul.f32 %v6068_v47, %v1035_v41  ;;  %v1081_v43 = vmul.f32 %v6069_v28, %v1035_v41  ;;  %v1082_v0 = vmul.f32 %v6070_v26, %v1035_v41 }
  0xd2   : > { %v1083_v4 = vmul.f32 %v4379_v36, %v1035_v41  ;;  %v1084_v14 = vmul.f32 %v6114_v30, %v1035_v41  ;;  %v1085_v11 = vadd.f32 %v1077_v62, %v1069_v51  ;;  %v1086_v39 = vadd.f32 %v1078_v54, %v1070_v1  ;;  %v6117_v1 = vld [vmem:[#allocation42_spill] sm:$0xff] }
  0xd3   : > { %v1087_v48 = vadd.f32 %v1079_v40, %v1071_v29  ;;  %v1088_v19 = vadd.f32 %v1080_v8, %v1072_v3  ;;  %v1089_v20 = vadd.f32 %v1081_v43, %v1073_v5  ;;  %v1090_v35 = vadd.f32 %v1082_v0, %v1074_v21  ;;  %v4738_v40 = vld [vmem:[%s3544_s28 + $0x38] sm:$0xff]  ;;  %v4741_v8 = vld [vmem:[%s3544_s28 + $0x48] sm:$0xff]  ;;  %v4744_v43 = vld [vmem:[%s3544_s28 + $0x50] sm:$0xff] }
  0xd4   : > { %v1091_v2 = vadd.f32 %v1083_v4, %v1075_v33  ;;  %v1092_v23 = vadd.f32 %v1084_v14, %v1076_v52  ;;  %v1093_v22 = vmul.f32 %v6105_v7, %v4607_v61  ;;  %v1094_v47 = vmul.f32 %v6106_v18, %v4607_v61  ;;  %v6118_v33 = vld [vmem:[#allocation14_spill] sm:$0xff]  ;;  %6127 = vst [vmem:[#allocation28_spill] sm:$0xff] %v4738_v40  ;;  %v4747_v0 = vld [vmem:[%s3549_s6 + $0x30] sm:$0xff]  ;;  %v6131_v4 = vld [vmem:[#allocation21_spill] sm:$0xff] }
  0xd5   : > { %v1095_v28 = vmul.f32 %v4247_v45, %v4607_v61  ;;  %v1096_v26 = vmul.f32 %v4254_v38, %v4607_v61  ;;  %v1097_v41 = vmul.f32 %v4257_v15, %v4607_v61  ;;  %v1098_v21 = vmul.f32 %v4260_v46, %v4607_v61  ;;  %6128 = vst [vmem:[#allocation29_spill] sm:$0xff] %v4741_v8 }
  0xd6   : > { %v1099_v5 = vmul.f32 %v4414_v55, %v4607_v61  ;;  %v1100_v7 = vmul.f32 %v4417_v42, %v4607_v61  ;;  %v1101_v3 = vadd.f32 %v1093_v22, %v1085_v11  ;;  %v1102_v18 = vadd.f32 %v1094_v47, %v1086_v39  ;;  %6129 = vst [vmem:[#allocation30_spill] sm:$0xff] %v4744_v43  ;;  %v6136_v22 = vld [vmem:[#allocation27_spill] sm:$0xff] }
  0xd7   : > { %v1103_v34 = vadd.f32 %v1095_v28, %v1087_v48  ;;  %v1104_v58 = vadd.f32 %v1096_v26, %v1088_v19  ;;  %v1105_v45 = vadd.f32 %v1097_v41, %v1089_v20  ;;  %v1106_v38 = vadd.f32 %v1098_v21, %v1090_v35  ;;  %6130 = vst [vmem:[#allocation31_spill] sm:$0xff] %v4747_v0  ;;  %v4758_v19 = vld [vmem:[%s3549_s6 + $0x38] sm:$0xff]  ;;  %v4764_v35 = vld [vmem:[%s3549_s6 + $0x80] sm:$0xff]  ;;  %v4775_v41 = vld [vmem:[%s3549_s6 + $0x48] sm:$0xff] }
  0xd8   : > { %v1107_v15 = vadd.f32 %v1099_v5, %v1091_v2  ;;  %v1108_v46 = vadd.f32 %v1100_v7, %v1092_v23  ;;  %v4681_v50 = vadd.f32 %v1061_v44, %v4518_v32  ;;  %v4684_v61 = vadd.f32 %v1062_v27, %v4520_v25  ;;  %v6119_v25 = vld [vmem:[#allocation15_spill] sm:$0xff]  ;;  %6132 = vst [vmem:[#allocation34_spill] sm:$0xff] %v4758_v19  ;;  %v4761_v20 = vld [vmem:[%s3549_s6 + $0x78] sm:$0xff]  ;;  %v6135_v2 = vld [vmem:[#allocation26_spill] sm:$0xff] }
  0xd9   : > { %v4687_v6 = vadd.f32 %v1063_v59, %v4522_v49  ;;  %v4690_v60 = vadd.f32 %v1064_v53, %v6115_v57  ;;  %v4693_v51 = vadd.f32 %v1065_v56, %v6116_v24  ;;  %v4696_v29 = vadd.f32 %v1066_v9, %v6117_v1  ;;  %v4717_v56 = vld [vmem:[%s3544_s28 + $0x30] sm:$0xff]  ;;  %v4720_v9 = vld [vmem:[%s3544_s28 + $0x78] sm:$0xff]  ;;  %6133 = vst [vmem:[#allocation35_spill] sm:$0xff] %v4761_v20 }
  0xda   : > { %v4699_v32 = vadd.f32 %v1067_v17, %v6118_v33  ;;  %v4702_v44 = vadd.f32 %v1068_v13, %v6119_v25  ;;  %v4705_v49 = vadd.f32 %v1101_v3, %v4588_v31  ;;  %v4708_v27 = vadd.f32 %v1102_v18, %v4590_v63  ;;  %6120 = vst [vmem:[#allocation22_spill] sm:$0xff] %v4717_v56  ;;  %v4723_v17 = vld [vmem:[%s3544_s28 + $0x80] sm:$0xff]  ;;  %v6124_v63 = vld [vmem:[#allocation43_spill] sm:$0xff]  ;;  %v4778_v21 = vld [vmem:[%s3549_s6 + $0x50] sm:$0xff] }
  0xdb   : > { %v4711_v59 = vadd.f32 %v1103_v34, %v4592_v12  ;;  %v4714_v53 = vadd.f32 %v1104_v58, %v4594_v16  ;;  %6121 = vst [vmem:[#allocation24_spill] sm:$0xff] %v4720_v9  ;;  %6122 = vst [vmem:[#allocation25_spill] sm:$0xff] %v4723_v17  ;;  %v6123_v31 = vld [vmem:[#allocation18_spill] sm:$0xff]  ;;  %v4729_v52 = vadd.f32 %v1106_v38, %v6124_v63  ;;  %v6125_v12 = vld [vmem:[#allocation23_spill] sm:$0xff]  ;;  %v1169_v5 = vstv %s4676_s9 }
  0xdc   : > { %v4726_v13 = vadd.f32 %v1105_v45, %v6123_v31  ;;  %v4732_v62 = vadd.f32 %v1107_v15, %v6125_v12  ;;  %v6126_v16 = vld [vmem:[#allocation44_spill] sm:$0xff]  ;;  %v1161_v14 = vmul.f32 %v4717_v56, %v6131_v4  ;;  %v1162_v11 = vmul.f32 %v4738_v40, %v6131_v4  ;;  %6134 = vst [vmem:[#allocation6_spill] sm:$0xff] %v4764_v35  ;;  %v4800_v12 = vld [vmem:[%s3544_s28 + $0x39] sm:$0xff] }
  0xdd   : > { %v4735_v54 = vadd.f32 %v1108_v46, %v6126_v16  ;;  %v1163_v39 = vmul.f32 %v4741_v8, %v6131_v4  ;;  %v1164_v48 = vmul.f32 %v4744_v43, %v6131_v4  ;;  %v1165_v23 = vmul.f32 %v6135_v2, %v6131_v4  ;;  %v4797_v1 = vld [vmem:[%s3544_s28 + $0x31] sm:$0xff]  ;;  %v4803_v16 = vld [vmem:[%s3544_s28 + $0x49] sm:$0xff]  ;;  %v4812_v43 = vld [vmem:[%s3544_s28 + $0x81] sm:$0xff] }
  0xde   : > { %v1166_v47 = vmul.f32 %v6136_v22, %v6131_v4  ;;  %v1167_v28 = vmul.f32 %v4720_v9, %v6131_v4  ;;  %v1168_v26 = vmul.f32 %v4723_v17, %v6131_v4  ;;  %v4782_v7 = vstv %s4678_s10  ;;  %v4806_v2 = vld [vmem:[%s3544_s28 + $0x51] sm:$0xff]  ;;  %6139 = vst [vmem:[#allocation9_spill] sm:$0xff] %v4812_v43 }
  0xdf   : > { %v1203_v3 = vmul.f32 %v4747_v0, %v6131_v4  ;;  %v1204_v18 = vmul.f32 %v4758_v19, %v6131_v4  ;;  %v1170_v34 = vmul.f32 %v4747_v0, %v1169_v5  ;;  %v1171_v58 = vmul.f32 %v4758_v19, %v1169_v5  ;;  %6137 = vst [vmem:[#allocation7_spill] sm:$0xff] %v4806_v2  ;;  %v4809_v0 = vld [vmem:[%s3544_s28 + $0x79] sm:$0xff] }
  0xe0   : > { %v1172_v45 = vmul.f32 %v4775_v41, %v1169_v5  ;;  %v1173_v38 = vmul.f32 %v4778_v21, %v1169_v5  ;;  %v1174_v15 = vmul.f32 %v4353_v37, %v1169_v5  ;;  %v1175_v46 = vmul.f32 %v4356_v10, %v1169_v5  ;;  %6138 = vst [vmem:[#allocation8_spill] sm:$0xff] %v4809_v0 }
  0xe1   : > { %v1176_v57 = vmul.f32 %v4761_v20, %v1169_v5  ;;  %v1177_v24 = vmul.f32 %v4764_v35, %v1169_v5  ;;  %v1178_v33 = vadd.f32 %v1170_v34, %v1161_v14  ;;  %v1179_v25 = vadd.f32 %v1171_v58, %v1162_v11 }
  0xe2   : > { %v1180_v31 = vadd.f32 %v1172_v45, %v1163_v39  ;;  %v1181_v63 = vadd.f32 %v1173_v38, %v1164_v48  ;;  %v1182_v22 = vadd.f32 %v1174_v15, %v1165_v23  ;;  %v1183_v17 = vadd.f32 %v1175_v46, %v1166_v47 }
  0xe3   : > { %v1184_v9 = vadd.f32 %v1176_v57, %v1167_v28  ;;  %v1185_v19 = vadd.f32 %v1177_v24, %v1168_v26  ;;  %v1187_v14 = vmul.f32 %v4797_v1, %v4782_v7  ;;  %v1188_v11 = vmul.f32 %v4800_v12, %v4782_v7 }
  0xe4   : > { %v1189_v39 = vmul.f32 %v4803_v16, %v4782_v7  ;;  %v1190_v48 = vmul.f32 %v4806_v2, %v4782_v7  ;;  %v1191_v23 = vmul.f32 %v4379_v36, %v4782_v7  ;;  %v1192_v47 = vmul.f32 %v6114_v30, %v4782_v7 }
  0xe5   : > { %v1193_v28 = vmul.f32 %v4809_v0, %v4782_v7  ;;  %v1194_v26 = vmul.f32 %v4812_v43, %v4782_v7  ;;  %v1195_v34 = vadd.f32 %v1187_v14, %v1178_v33  ;;  %v1196_v58 = vadd.f32 %v1188_v11, %v1179_v25 }
  0xe6   : > { %v1197_v45 = vadd.f32 %v1189_v39, %v1180_v31  ;;  %v1198_v38 = vadd.f32 %v1190_v48, %v1181_v63  ;;  %v1199_v15 = vadd.f32 %v1191_v23, %v1182_v22  ;;  %v1200_v46 = vadd.f32 %v1192_v47, %v1183_v17  ;;  %v4849_v22 = vld [vmem:[%s3549_s6 + $0x31] sm:$0xff]  ;;  %v4854_v48 = vld [vmem:[%s3549_s6 + $0x39] sm:$0xff]  ;;  %v4860_v47 = vld [vmem:[%s3549_s6 + $0x81] sm:$0xff] }
  0xe7   : > { %v1201_v57 = vadd.f32 %v1193_v28, %v1184_v9  ;;  %v1202_v24 = vadd.f32 %v1194_v26, %v1185_v19  ;;  %v1205_v8 = vmul.f32 %v4775_v41, %v6131_v4  ;;  %v1206_v40 = vmul.f32 %v4778_v21, %v6131_v4  ;;  %v4857_v23 = vld [vmem:[%s3549_s6 + $0x79] sm:$0xff]  ;;  %6141 = vst [vmem:[#allocation12_spill] sm:$0xff] %v4860_v47 }
  0xe8   : > { %v1207_v56 = vmul.f32 %v4353_v37, %v6131_v4  ;;  %v1208_v33 = vmul.f32 %v4356_v10, %v6131_v4  ;;  %v1209_v17 = vmul.f32 %v4761_v20, %v6131_v4  ;;  %v1210_v9 = vmul.f32 %v4764_v35, %v6131_v4  ;;  %6140 = vst [vmem:[#allocation10_spill] sm:$0xff] %v4857_v23  ;;  %v4863_v20 = vld [vmem:[%s3549_s6 + $0x49] sm:$0xff] }
  0xe9   : > { %v1211_v19 = vmul.f32 %v4797_v1, %v1169_v5  ;;  %v1212_v25 = vmul.f32 %v4800_v12, %v1169_v5  ;;  %v1213_v31 = vmul.f32 %v4803_v16, %v1169_v5  ;;  %v1214_v37 = vmul.f32 %v4806_v2, %v1169_v5 }
  0xea   : > { %v1215_v63 = vmul.f32 %v4379_v36, %v1169_v5  ;;  %v1216_v10 = vmul.f32 %v6114_v30, %v1169_v5  ;;  %v1217_v14 = vmul.f32 %v4809_v0, %v1169_v5  ;;  %v1218_v4 = vmul.f32 %v4812_v43, %v1169_v5  ;;  %v4866_v30 = vld [vmem:[%s3549_s6 + $0x51] sm:$0xff] }
  0xeb   : > { %v1219_v11 = vadd.f32 %v1211_v19, %v1203_v3  ;;  %v1220_v39 = vadd.f32 %v1212_v25, %v1204_v18  ;;  %v1221_v28 = vadd.f32 %v1213_v31, %v1205_v8  ;;  %v1222_v26 = vadd.f32 %v1214_v37, %v1206_v40 }
  0xec   : > { %v1223_v35 = vadd.f32 %v1215_v63, %v1207_v56  ;;  %v1224_v36 = vadd.f32 %v1216_v10, %v1208_v33  ;;  %v1225_v2 = vadd.f32 %v1217_v14, %v1209_v17  ;;  %v1226_v0 = vadd.f32 %v1218_v4, %v1210_v9 }
  0xed   : > { %v1227_v5 = vmul.f32 %v4849_v22, %v4782_v7  ;;  %v1228_v3 = vmul.f32 %v4854_v48, %v4782_v7  ;;  %v1229_v18 = vmul.f32 %v4863_v20, %v4782_v7  ;;  %v1230_v40 = vmul.f32 %v4866_v30, %v4782_v7 }
  0xee   : > { %v1231_v56 = vmul.f32 %v4414_v55, %v4782_v7  ;;  %v1232_v8 = vmul.f32 %v4417_v42, %v4782_v7  ;;  %v1233_v33 = vmul.f32 %v4857_v23, %v4782_v7  ;;  %v1234_v17 = vmul.f32 %v4860_v47, %v4782_v7 }
  0xef   : > { %v1235_v9 = vadd.f32 %v1227_v5, %v1219_v11  ;;  %v1236_v19 = vadd.f32 %v1228_v3, %v1220_v39  ;;  %v1237_v25 = vadd.f32 %v1229_v18, %v1221_v28  ;;  %v1238_v31 = vadd.f32 %v1230_v40, %v1222_v26  ;;  %v4926_v3 = vld [vmem:[%s3549_s6 + $0x20] sm:$0xff] }
  0xf0   : > { %v1239_v37 = vadd.f32 %v1231_v56, %v1223_v35  ;;  %v1240_v63 = vadd.f32 %v1232_v8, %v1224_v36  ;;  %v1241_v55 = vadd.f32 %v1233_v33, %v1225_v2  ;;  %v1242_v10 = vadd.f32 %v1234_v17, %v1226_v0  ;;  %v4923_v36 = vld [vmem:[%s3549_s6 + $0x18] sm:$0xff]  ;;  %6147 = vst [vmem:[#allocation32_spill] sm:$0xff] %v4926_v3  ;;  %v6148_v33 = vld [vmem:[#allocation22_spill] sm:$0xff] }
  0xf1   : > { %v1243_v42 = vadd.f32 %v1195_v34, %v4681_v50  ;;  %v1244_v14 = vadd.f32 %v1196_v58, %v4684_v61  ;;  %v1245_v4 = vadd.f32 %v1197_v45, %v4687_v6  ;;  %v1246_v7 = vadd.f32 %v1198_v38, %v4690_v60  ;;  %v4905_v58 = vld [vmem:[%s3544_s28 + $0x18] sm:$0xff]  ;;  %6146 = vst [vmem:[#allocation20_spill] sm:$0xff] %v4923_v36 }
  0xf2   : > { %v1247_v11 = vadd.f32 %v1199_v15, %v4693_v51  ;;  %v1248_v39 = vadd.f32 %v1200_v46, %v4696_v29  ;;  %v1249_v5 = vadd.f32 %v1201_v57, %v4699_v32  ;;  %v1250_v35 = vadd.f32 %v1202_v24, %v4702_v44  ;;  %6142 = vst [vmem:[#allocation13_spill] sm:$0xff] %v4905_v58  ;;  %v6144_v15 = vld [vmem:[#allocation33_spill] sm:$0xff]  ;;  %v6145_v57 = vld [vmem:[#allocation36_spill] sm:$0xff] }
  0xf3   : > { %v1251_v0 = vadd.f32 %v1235_v9, %v4705_v49  ;;  %v1252_v50 = vadd.f32 %v1236_v19, %v4708_v27  ;;  %v1253_v61 = vadd.f32 %v1237_v25, %v4711_v59  ;;  %v1254_v6 = vadd.f32 %v1238_v31, %v4714_v53  ;;  %v4908_v53 = vld [vmem:[%s3544_s28 + $0x20] sm:$0xff]  ;;  %v6149_v9 = vld [vmem:[#allocation28_spill] sm:$0xff] }
  0xf4   : > { %v1255_v60 = vadd.f32 %v1239_v37, %v4726_v13  ;;  %v1256_v51 = vadd.f32 %v1240_v63, %v4729_v52  ;;  %v1257_v29 = vadd.f32 %v1241_v55, %v4732_v62  ;;  %v1258_v32 = vadd.f32 %v1242_v10, %v4735_v54  ;;  %6143 = vst [vmem:[#allocation19_spill] sm:$0xff] %v4908_v53  ;;  %v6150_v37 = vld [vmem:[#allocation29_spill] sm:$0xff]  ;;  %v6151_v55 = vld [vmem:[#allocation30_spill] sm:$0xff] }
  0xf5   : > { %v1259_v44 = vmax.f32 %v1243_v42, %v1245_v4  ;;  %v1260_v2 = vmax.f32 %v1244_v14, %v1246_v7  ;;  %v1261_v34 = vmax.f32 %v1251_v0, %v1253_v61  ;;  %v1262_v49 = vmax.f32 %v1252_v50, %v1254_v6  ;;  %v6152_v42 = vld [vmem:[#allocation37_spill] sm:$0xff]  ;;  %v6153_v4 = vld [vmem:[#allocation38_spill] sm:$0xff] }
  0xf6   : > { %v1271_v27 = vmax.f32 %v1247_v11, %v1249_v5  ;;  %v1272_v59 = vmax.f32 %v1248_v39, %v1250_v35  ;;  %v1273_v45 = vmax.f32 %v1255_v60, %v1257_v29  ;;  %v1274_v13 = vmax.f32 %v1256_v51, %v1258_v32  ;;  %v6154_v5 = vld [vmem:[#allocation31_spill] sm:$0xff]  ;;  %v6155_v0 = vld [vmem:[#allocation34_spill] sm:$0xff] }
  0xf7   : > { %v4911_v38 = vstv %s4884_s11  ;;  %v4914_v52 = vstv %s4886_s12  ;;  %v1263_v62 = vmax.f32 %v1259_v44, %v1261_v34  ;;  %v1264_v54 = vmax.f32 %v1260_v2, %v1262_v49 }
  0xf8   : > { %v1319_v46 = vmul.f32 %v4911_v38, %v6144_v15  ;;  %v1320_v24 = vmul.f32 %v4911_v38, %v6145_v57  ;;  %v1275_v28 = vmax.f32 %v1271_v27, %v1273_v45  ;;  %v1276_v26 = vmax.f32 %v1272_v59, %v1274_v13  ;;  %v4961_v27 = vld [vmem:[%s3544_s28 + $0x19] sm:$0xff]  ;;  %v4964_v59 = vld [vmem:[%s3544_s28 + $0x21] sm:$0xff]  ;;  %v6159_v57 = vld [vmem:[#allocation40_spill] sm:$0xff] }
  0xf9   : > { %v1321_v18 = vmul.f32 %v4911_v38, %v4905_v58  ;;  %v1322_v40 = vmul.f32 %v4911_v38, %v4908_v53  ;;  %v1265_v56 = vmax.f32 %v1263_v62, 0.0  ;;  %v1266_v8 = vmax.f32 %v1264_v54, 0.0  ;;  %6156 = vst [vmem:[#allocation11_spill] sm:$0xff] %v4961_v27  ;;  %6157 = vst [vmem:[#allocation41_spill] sm:$0xff] %v4964_v59  ;;  %v6158_v15 = vld [vmem:[#allocation39_spill] sm:$0xff] }
  0xfa   : > { %v1323_v17 = vmul.f32 %v6148_v33, %v4911_v38  ;;  %v1324_v19 = vmul.f32 %v6149_v9, %v4911_v38  ;;  %v1277_v25 = vmax.f32 %v1275_v28, 0.0  ;;  %v1278_v31 = vmax.f32 %v1276_v26, 0.0 }
  0xfb   : > { %v1325_v63 = vmul.f32 %v6150_v37, %v4911_v38  ;;  %v1326_v10 = vmul.f32 %v6151_v55, %v4911_v38  ;;  %2952 = vst [vmem:[%s4036_s18 + $0x1c0] sm:$0xff] %v1265_v56  ;;  %2953 = vst [vmem:[%s4036_s18 + $0x1c8] sm:$0xff] %v1266_v8  ;;  %v1328_v14 = vmul.f32 %v4914_v52, %v6152_v42  ;;  %v1344_v45 = vstv %s4916_s13  ;;  %v6160_v8 = vld [vmem:[#allocation7_spill] sm:$0xff] }
  0xfc   : > { %v1329_v7 = vmul.f32 %v4914_v52, %v6153_v4  ;;  %v1330_v11 = vmul.f32 %v4914_v52, %v4923_v36  ;;  %v1331_v39 = vmul.f32 %v4914_v52, %v4926_v3  ;;  %2956 = vst [vmem:[%s4036_s18 + $0x1d0] sm:$0xff] %v1277_v25  ;;  %2957 = vst [vmem:[%s4036_s18 + $0x1d8] sm:$0xff] %v1278_v31 }
  0xfd   : > { %v1332_v35 = vmul.f32 %v6154_v5, %v4914_v52  ;;  %v1333_v50 = vmul.f32 %v6155_v0, %v4914_v52  ;;  %v1334_v61 = vmul.f32 %v4775_v41, %v4914_v52  ;;  %v1335_v6 = vmul.f32 %v4778_v21, %v4914_v52 }
  0xfe   : > { %v1336_v60 = vadd.f32 %v1328_v14, %v1319_v46  ;;  %v1337_v51 = vadd.f32 %v1329_v7, %v1320_v24  ;;  %v1338_v29 = vadd.f32 %v1330_v11, %v1321_v18  ;;  %v1339_v32 = vadd.f32 %v1331_v39, %v1322_v40 }
  0xff   : > { %v1340_v44 = vadd.f32 %v1332_v35, %v1323_v17  ;;  %v1341_v2 = vadd.f32 %v1333_v50, %v1324_v19  ;;  %v1342_v34 = vadd.f32 %v1334_v61, %v1325_v63  ;;  %v1343_v49 = vadd.f32 %v1335_v6, %v1326_v10 }
 0x100   : > { %v1361_v13 = vmul.f32 %v4911_v38, %v6152_v42  ;;  %v1362_v62 = vmul.f32 %v4911_v38, %v6153_v4  ;;  %v1363_v54 = vmul.f32 %v4911_v38, %v4923_v36  ;;  %v1345_v46 = vmul.f32 %v1344_v45, %v6158_v15 }
 0x101   : > { %v1346_v24 = vmul.f32 %v1344_v45, %v6159_v57  ;;  %v1347_v28 = vmul.f32 %v1344_v45, %v4961_v27  ;;  %v1348_v26 = vmul.f32 %v1344_v45, %v4964_v59  ;;  %v1349_v18 = vmul.f32 %v4797_v1, %v1344_v45 }
 0x102   : > { %v1350_v40 = vmul.f32 %v4800_v12, %v1344_v45  ;;  %v1351_v56 = vmul.f32 %v4803_v16, %v1344_v45  ;;  %v1352_v17 = vmul.f32 %v6160_v8, %v1344_v45  ;;  %v4981_v19 = vadd.f32 %v1345_v46, %v1336_v60 }
 0x103   : > { %v4983_v25 = vadd.f32 %v1346_v24, %v1337_v51  ;;  %v4985_v31 = vadd.f32 %v1347_v28, %v1338_v29  ;;  %v4987_v63 = vadd.f32 %v1348_v26, %v1339_v32  ;;  %v4989_v10 = vadd.f32 %v1349_v18, %v1340_v44  ;;  %v5020_v51 = vld [vmem:[%s3549_s6 + $0x19] sm:$0xff] }
 0x104   : > { %v4991_v42 = vadd.f32 %v1350_v40, %v1341_v2  ;;  %v4993_v14 = vadd.f32 %v1351_v56, %v1342_v34  ;;  %v4995_v4 = vadd.f32 %v1352_v17, %v1343_v49  ;;  %v1364_v7 = vmul.f32 %v4911_v38, %v4926_v3  ;;  %6161 = vst [vmem:[#allocation42_spill] sm:$0xff] %v5020_v51  ;;  %v5031_v2 = vld [vmem:[%s3549_s6 + $0x21] sm:$0xff]  ;;  %v6163_v40 = vld [vmem:[#allocation16_spill] sm:$0xff]  ;;  %v6164_v17 = vld [vmem:[#allocation17_spill] sm:$0xff] }
 0x105   : > { %v1365_v11 = vmul.f32 %v6154_v5, %v4911_v38  ;;  %v1366_v39 = vmul.f32 %v6155_v0, %v4911_v38  ;;  %v1367_v35 = vmul.f32 %v4775_v41, %v4911_v38  ;;  %v1368_v50 = vmul.f32 %v4778_v21, %v4911_v38  ;;  %6162 = vst [vmem:[#allocation14_spill] sm:$0xff] %v5031_v2 }
 0x106   : > { %v1369_v61 = vmul.f32 %v4914_v52, %v6158_v15  ;;  %v1370_v6 = vmul.f32 %v4914_v52, %v6159_v57  ;;  %v1371_v60 = vmul.f32 %v4914_v52, %v4961_v27  ;;  %v1372_v29 = vmul.f32 %v4914_v52, %v4964_v59 }
 0x107   : > { %v1373_v38 = vmul.f32 %v4797_v1, %v4914_v52  ;;  %v1374_v32 = vmul.f32 %v4800_v12, %v4914_v52  ;;  %v1375_v44 = vmul.f32 %v4803_v16, %v4914_v52  ;;  %v1376_v34 = vmul.f32 %v6160_v8, %v4914_v52 }
 0x108   : > { %v1377_v49 = vadd.f32 %v1369_v61, %v1361_v13  ;;  %v1378_v15 = vadd.f32 %v1370_v6, %v1362_v62  ;;  %v1379_v46 = vadd.f32 %v1371_v60, %v1363_v54  ;;  %v1380_v57 = vadd.f32 %v1372_v29, %v1364_v7  ;;  %v5058_v60 = vld [vmem:[%s3544_s28 + $0x60] sm:$0xff]  ;;  %v5061_v29 = vld [vmem:[%s3544_s28 + $0x68] sm:$0xff] }
 0x109   : > { %v1381_v24 = vadd.f32 %v1373_v38, %v1365_v11  ;;  %v1382_v28 = vadd.f32 %v1374_v32, %v1366_v39  ;;  %v1383_v26 = vadd.f32 %v1375_v44, %v1367_v35  ;;  %v1384_v18 = vadd.f32 %v1376_v34, %v1368_v50  ;;  %6170 = vst [vmem:[#allocation21_spill] sm:$0xff] %v5058_v60 }
 0x10a   : > { %v1385_v56 = vmul.f32 %v1344_v45, %v6163_v40  ;;  %v1386_v47 = vmul.f32 %v1344_v45, %v6164_v17  ;;  %v1387_v23 = vmul.f32 %v1344_v45, %v5020_v51  ;;  %v1388_v43 = vmul.f32 %v1344_v45, %v5031_v2  ;;  %6171 = vst [vmem:[#allocation26_spill] sm:$0xff] %v5061_v29 }
 0x10b   : > { %v1389_v52 = vmul.f32 %v4849_v22, %v1344_v45  ;;  %v1390_v13 = vmul.f32 %v4854_v48, %v1344_v45  ;;  %v1391_v62 = vmul.f32 %v4863_v20, %v1344_v45  ;;  %v1392_v54 = vmul.f32 %v4866_v30, %v1344_v45 }
 0x10c   : > { %v5043_v7 = vadd.f32 %v1385_v56, %v1377_v49  ;;  %v5045_v11 = vadd.f32 %v1386_v47, %v1378_v15  ;;  %v5047_v39 = vadd.f32 %v1387_v23, %v1379_v46  ;;  %v5049_v35 = vadd.f32 %v1388_v43, %v1380_v57  ;;  %v5071_v23 = vld [vmem:[%s3549_s6 + $0x60] sm:$0xff]  ;;  %v5074_v43 = vld [vmem:[%s3549_s6 + $0x68] sm:$0xff] }
 0x10d   : > { %v5051_v50 = vadd.f32 %v1389_v52, %v1381_v24  ;;  %v5053_v61 = vadd.f32 %v1390_v13, %v1382_v28  ;;  %v5055_v6 = vadd.f32 %v1391_v62, %v1383_v26  ;;  %v5063_v38 = vadd.f32 %v1392_v54, %v1384_v18 }
 0x10e   : > { %6165 = vst [vmem:[#allocation15_spill] sm:$0xff] %v5047_v39  ;;  %6166 = vst [vmem:[#allocation18_spill] sm:$0xff] %v5049_v35  ;;  %v1436_v45 = vstv %s5005_s14  ;;  %v1445_v32 = vstv %s5015_s15  ;;  %v5068_v47 = vstv %s5017_s16 }
 0x10f   : > { %6167 = vst [vmem:[#allocation43_spill] sm:$0xff] %v5051_v50  ;;  %6168 = vst [vmem:[#allocation23_spill] sm:$0xff] %v5053_v61  ;;  %v1437_v44 = vmul.f32 %v1436_v45, %v4905_v58  ;;  %v1438_v34 = vmul.f32 %v1436_v45, %v4908_v53  ;;  %v1439_v49 = vmul.f32 %v6148_v33, %v1436_v45  ;;  %v5093_v33 = vld [vmem:[%s3544_s28 + $0x61] sm:$0xff] }
 0x110   : > { %6169 = vst [vmem:[#allocation44_spill] sm:$0xff] %v5055_v6  ;;  %6172 = vst [vmem:[#allocation27_spill] sm:$0xff] %v5063_v38  ;;  %v1440_v15 = vmul.f32 %v6149_v9, %v1436_v45  ;;  %v1441_v46 = vmul.f32 %v6150_v37, %v1436_v45  ;;  %v1442_v57 = vmul.f32 %v6151_v55, %v1436_v45  ;;  %v5096_v38 = vld [vmem:[%s3544_s28 + $0x69] sm:$0xff] }
 0x111   : > { %v1443_v24 = vmul.f32 %v5058_v60, %v1436_v45  ;;  %v1444_v28 = vmul.f32 %v5061_v29, %v1436_v45  ;;  %v1446_v26 = vmul.f32 %v1445_v32, %v4923_v36  ;;  %v1447_v18 = vmul.f32 %v1445_v32, %v4926_v3  ;;  %6173 = vst [vmem:[#allocation33_spill] sm:$0xff] %v5093_v33 }
 0x112   : > { %v1448_v40 = vmul.f32 %v6154_v5, %v1445_v32  ;;  %v1449_v56 = vmul.f32 %v6155_v0, %v1445_v32  ;;  %v1450_v17 = vmul.f32 %v4775_v41, %v1445_v32  ;;  %v1451_v52 = vmul.f32 %v4778_v21, %v1445_v32 }
 0x113   : > { %v1452_v13 = vmul.f32 %v5071_v23, %v1445_v32  ;;  %v1453_v62 = vmul.f32 %v5074_v43, %v1445_v32  ;;  %v1454_v54 = vadd.f32 %v1446_v26, %v1437_v44  ;;  %v1455_v53 = vadd.f32 %v1447_v18, %v1438_v34 }
 0x114   : > { %v1456_v58 = vadd.f32 %v1448_v40, %v1439_v49  ;;  %v1457_v29 = vadd.f32 %v1449_v56, %v1440_v15  ;;  %v1458_v60 = vadd.f32 %v1450_v17, %v1441_v46  ;;  %v1459_v55 = vadd.f32 %v1451_v52, %v1442_v57 }
 0x115   : > { %v1460_v37 = vadd.f32 %v1452_v13, %v1443_v24  ;;  %v1461_v9 = vadd.f32 %v1453_v62, %v1444_v28  ;;  %v1463_v6 = vmul.f32 %v5068_v47, %v4961_v27  ;;  %v1464_v61 = vmul.f32 %v5068_v47, %v4964_v59 }
 0x116   : > { %v1465_v44 = vmul.f32 %v4797_v1, %v5068_v47  ;;  %v1466_v34 = vmul.f32 %v4800_v12, %v5068_v47  ;;  %v1467_v49 = vmul.f32 %v4803_v16, %v5068_v47  ;;  %v1468_v15 = vmul.f32 %v6160_v8, %v5068_v47 }
 0x117   : > { %v1469_v46 = vmul.f32 %v5093_v33, %v5068_v47  ;;  %v1470_v57 = vmul.f32 %v5096_v38, %v5068_v47  ;;  %v1471_v24 = vadd.f32 %v1463_v6, %v1454_v54  ;;  %v1472_v28 = vadd.f32 %v1464_v61, %v1455_v53 }
 0x118   : > { %v1473_v26 = vadd.f32 %v1465_v44, %v1456_v58  ;;  %v1474_v18 = vadd.f32 %v1466_v34, %v1457_v29  ;;  %v1475_v40 = vadd.f32 %v1467_v49, %v1458_v60  ;;  %v1476_v56 = vadd.f32 %v1468_v15, %v1459_v55  ;;  %v5131_v34 = vld [vmem:[%s3549_s6 + $0x61] sm:$0xff]  ;;  %v5134_v49 = vld [vmem:[%s3549_s6 + $0x69] sm:$0xff] }
 0x119   : > { %v1477_v17 = vadd.f32 %v1469_v46, %v1460_v37  ;;  %v1478_v52 = vadd.f32 %v1470_v57, %v1461_v9  ;;  %v1479_v13 = vmul.f32 %v1436_v45, %v4923_v36  ;;  %v1480_v62 = vmul.f32 %v1436_v45, %v4926_v3 }
 0x11a   : > { %v1481_v50 = vmul.f32 %v6154_v5, %v1436_v45  ;;  %v1482_v35 = vmul.f32 %v6155_v0, %v1436_v45  ;;  %v1483_v39 = vmul.f32 %v4775_v41, %v1436_v45  ;;  %v1484_v53 = vmul.f32 %v4778_v21, %v1436_v45 }
 0x11b   : > { %v1485_v58 = vmul.f32 %v5071_v23, %v1436_v45  ;;  %v1486_v55 = vmul.f32 %v5074_v43, %v1436_v45  ;;  %v1487_v9 = vmul.f32 %v1445_v32, %v4961_v27  ;;  %v1488_v37 = vmul.f32 %v1445_v32, %v4964_v59 }
 0x11c   : > { %v1489_v61 = vmul.f32 %v4797_v1, %v1445_v32  ;;  %v1490_v6 = vmul.f32 %v4800_v12, %v1445_v32  ;;  %v1491_v60 = vmul.f32 %v4803_v16, %v1445_v32  ;;  %v1492_v29 = vmul.f32 %v6160_v8, %v1445_v32 }
 0x11d   : > { %v1493_v54 = vmul.f32 %v5093_v33, %v1445_v32  ;;  %v1494_v44 = vmul.f32 %v5096_v38, %v1445_v32  ;;  %v1495_v45 = vadd.f32 %v1487_v9, %v1479_v13  ;;  %v1496_v15 = vadd.f32 %v1488_v37, %v1480_v62 }
 0x11e   : > { %v1497_v46 = vadd.f32 %v1489_v61, %v1481_v50  ;;  %v1498_v57 = vadd.f32 %v1490_v6, %v1482_v35  ;;  %v1499_v59 = vadd.f32 %v1491_v60, %v1483_v39  ;;  %v1500_v27 = vadd.f32 %v1492_v29, %v1484_v53 }
 0x11f   : > { %v1501_v3 = vadd.f32 %v1493_v54, %v1485_v58  ;;  %v1502_v36 = vadd.f32 %v1494_v44, %v1486_v55  ;;  %v1503_v33 = vmul.f32 %v5068_v47, %v5020_v51  ;;  %v1504_v32 = vmul.f32 %v5068_v47, %v5031_v2 }
 0x120   : > { %v1505_v13 = vmul.f32 %v4849_v22, %v5068_v47  ;;  %v1506_v35 = vmul.f32 %v4854_v48, %v5068_v47  ;;  %v1507_v39 = vmul.f32 %v4863_v20, %v5068_v47  ;;  %v1508_v50 = vmul.f32 %v4866_v30, %v5068_v47 }
 0x121   : > { %v1509_v62 = vmul.f32 %v5131_v34, %v5068_v47  ;;  %v1510_v53 = vmul.f32 %v5134_v49, %v5068_v47  ;;  %v1511_v58 = vadd.f32 %v1503_v33, %v1495_v45  ;;  %v1512_v55 = vadd.f32 %v1504_v32, %v1496_v15  ;;  %v6189_v15 = vld [vmem:[#allocation28_spill] sm:$0xff] }
 0x122   : > { %v1513_v9 = vadd.f32 %v1505_v13, %v1497_v46  ;;  %v1514_v37 = vadd.f32 %v1506_v35, %v1498_v57  ;;  %v1515_v61 = vadd.f32 %v1507_v39, %v1499_v59  ;;  %v1516_v6 = vadd.f32 %v1508_v50, %v1500_v27  ;;  %v6190_v57 = vld [vmem:[#allocation29_spill] sm:$0xff]  ;;  %v6191_v13 = vld [vmem:[#allocation30_spill] sm:$0xff] }
 0x123   : > { %v1517_v60 = vadd.f32 %v1509_v62, %v1501_v3  ;;  %v1518_v29 = vadd.f32 %v1510_v53, %v1502_v36  ;;  %v5161_v54 = vadd.f32 %v1471_v24, %v4981_v19  ;;  %v5164_v44 = vadd.f32 %v1472_v28, %v4983_v25  ;;  %v6192_v39 = vld [vmem:[#allocation21_spill] sm:$0xff]  ;;  %v6193_v62 = vld [vmem:[#allocation26_spill] sm:$0xff] }
 0x124   : > { %v5167_v2 = vadd.f32 %v1473_v26, %v4985_v31  ;;  %v5170_v33 = vadd.f32 %v1474_v18, %v4987_v63  ;;  %v5173_v27 = vadd.f32 %v1475_v40, %v4989_v10  ;;  %v5176_v36 = vadd.f32 %v1476_v56, %v4991_v42  ;;  %v6175_v31 = vld [vmem:[#allocation15_spill] sm:$0xff]  ;;  %v6177_v10 = vld [vmem:[#allocation18_spill] sm:$0xff] }
 0x125   : > { %v5179_v3 = vadd.f32 %v1477_v17, %v4993_v14  ;;  %v5182_v59 = vadd.f32 %v1478_v52, %v4995_v4  ;;  %v5185_v19 = vadd.f32 %v1511_v58, %v5043_v7  ;;  %v5188_v25 = vadd.f32 %v1512_v55, %v5045_v11  ;;  %v6179_v42 = vld [vmem:[#allocation43_spill] sm:$0xff]  ;;  %v6183_v4 = vld [vmem:[#allocation44_spill] sm:$0xff]  ;;  %v6188_v52 = vld [vmem:[#allocation22_spill] sm:$0xff] }
 0x126   : > { %v5191_v63 = vadd.f32 %v1513_v9, %v6175_v31  ;;  %v5194_v47 = vadd.f32 %v1514_v37, %v6177_v10  ;;  %v5197_v24 = vadd.f32 %v1515_v61, %v6179_v42  ;;  %v6181_v14 = vld [vmem:[#allocation23_spill] sm:$0xff]  ;;  %v5203_v26 = vadd.f32 %v1517_v60, %v6183_v4  ;;  %v6194_v58 = vld [vmem:[#allocation24_spill] sm:$0xff]  ;;  %v6195_v9 = vld [vmem:[#allocation25_spill] sm:$0xff] }
 0x127   : > { %6174 = vst [vmem:[#allocation36_spill] sm:$0xff] %v5188_v25  ;;  %v5200_v28 = vadd.f32 %v1516_v6, %v6181_v14  ;;  %v6185_v7 = vld [vmem:[#allocation27_spill] sm:$0xff]  ;;  %v1570_v11 = vstv %s5136_s17  ;;  %v1579_v40 = vstv %s5138_s19  ;;  %v5211_v56 = vstv %s5148_s20  ;;  %v6197_v4 = vld [vmem:[#allocation6_spill] sm:$0xff] }
 0x128   : > { %6176 = vst [vmem:[#allocation37_spill] sm:$0xff] %v5191_v63  ;;  %6178 = vst [vmem:[#allocation38_spill] sm:$0xff] %v5194_v47  ;;  %v5206_v18 = vadd.f32 %v1518_v29, %v6185_v7  ;;  %v5214_v17 = vstv %s5150_s21  ;;  %v1571_v45 = vmul.f32 %v6188_v52, %v1570_v11  ;;  %v1572_v46 = vmul.f32 %v6189_v15, %v1570_v11  ;;  %v6196_v42 = vld [vmem:[#allocation35_spill] sm:$0xff] }
 0x129   : > { %6180 = vst [vmem:[#allocation31_spill] sm:$0xff] %v5197_v24  ;;  %6182 = vst [vmem:[#allocation34_spill] sm:$0xff] %v5200_v28  ;;  %v1573_v32 = vmul.f32 %v6190_v57, %v1570_v11  ;;  %v1574_v35 = vmul.f32 %v6191_v13, %v1570_v11  ;;  %v1575_v50 = vmul.f32 %v6192_v39, %v1570_v11 }
 0x12a   : > { %6184 = vst [vmem:[#allocation39_spill] sm:$0xff] %v5203_v26  ;;  %6186 = vst [vmem:[#allocation40_spill] sm:$0xff] %v5206_v18  ;;  %v1576_v53 = vmul.f32 %v6193_v62, %v1570_v11  ;;  %v1577_v55 = vmul.f32 %v6194_v58, %v1570_v11  ;;  %v1578_v37 = vmul.f32 %v6195_v9, %v1570_v11 }
 0x12b   : > { %6187 = vst [vmem:[#allocation7_spill] sm:$0xff] %v5214_v17  ;;  %v1580_v61 = vmul.f32 %v6154_v5, %v1579_v40  ;;  %v1581_v6 = vmul.f32 %v6155_v0, %v1579_v40  ;;  %v1582_v60 = vmul.f32 %v4775_v41, %v1579_v40  ;;  %v1583_v29 = vmul.f32 %v4778_v21, %v1579_v40 }
 0x12c   : > { %v1584_v31 = vmul.f32 %v5071_v23, %v1579_v40  ;;  %v1585_v10 = vmul.f32 %v5074_v43, %v1579_v40  ;;  %v1586_v14 = vmul.f32 %v6196_v42, %v1579_v40  ;;  %v1587_v7 = vmul.f32 %v6197_v4, %v1579_v40 }
 0x12d   : > { %v1588_v52 = vadd.f32 %v1580_v61, %v1571_v45  ;;  %v1589_v15 = vadd.f32 %v1581_v6, %v1572_v46  ;;  %v1590_v57 = vadd.f32 %v1582_v60, %v1573_v32  ;;  %v1591_v13 = vadd.f32 %v1583_v29, %v1574_v35  ;;  %v6198_v45 = vld [vmem:[#allocation33_spill] sm:$0xff]  ;;  %v6199_v35 = vld [vmem:[#allocation8_spill] sm:$0xff] }
 0x12e   : > { %v1592_v58 = vadd.f32 %v1584_v31, %v1575_v50  ;;  %v1593_v9 = vadd.f32 %v1585_v10, %v1576_v53  ;;  %v1594_v62 = vadd.f32 %v1586_v14, %v1577_v55  ;;  %v1595_v39 = vadd.f32 %v1587_v7, %v1578_v37  ;;  %v6200_v53 = vld [vmem:[#allocation9_spill] sm:$0xff] }
 0x12f   : > { %v1597_v51 = vmul.f32 %v4797_v1, %v5211_v56  ;;  %v1598_v17 = vmul.f32 %v4800_v12, %v5211_v56  ;;  %v1599_v18 = vmul.f32 %v4803_v16, %v5211_v56  ;;  %v1600_v26 = vmul.f32 %v6160_v8, %v5211_v56 }
 0x130   : > { %v1601_v46 = vmul.f32 %v6198_v45, %v5211_v56  ;;  %v1602_v32 = vmul.f32 %v5096_v38, %v5211_v56  ;;  %v1603_v50 = vmul.f32 %v6199_v35, %v5211_v56  ;;  %v1604_v55 = vmul.f32 %v6200_v53, %v5211_v56 }
 0x131   : > { %v1605_v37 = vadd.f32 %v1597_v51, %v1588_v52  ;;  %v1606_v61 = vadd.f32 %v1598_v17, %v1589_v15  ;;  %v1607_v6 = vadd.f32 %v1599_v18, %v1590_v57  ;;  %v1608_v60 = vadd.f32 %v1600_v26, %v1591_v13 }
 0x132   : > { %v1609_v29 = vadd.f32 %v1601_v46, %v1592_v58  ;;  %v1610_v31 = vadd.f32 %v1602_v32, %v1593_v9  ;;  %v1611_v10 = vadd.f32 %v1603_v50, %v1594_v62  ;;  %v1612_v14 = vadd.f32 %v1604_v55, %v1595_v39 }
 0x133   : > { %v1613_v7 = vmul.f32 %v6154_v5, %v1570_v11  ;;  %v1614_v28 = vmul.f32 %v6155_v0, %v1570_v11  ;;  %v1615_v24 = vmul.f32 %v4775_v41, %v1570_v11  ;;  %v1616_v47 = vmul.f32 %v4778_v21, %v1570_v11 }
 0x134   : > { %v1617_v63 = vmul.f32 %v5071_v23, %v1570_v11  ;;  %v1618_v25 = vmul.f32 %v5074_v43, %v1570_v11  ;;  %v1619_v51 = vmul.f32 %v6196_v42, %v1570_v11  ;;  %v1620_v26 = vmul.f32 %v6197_v4, %v1570_v11 }
 0x135   : > { %v1621_v18 = vmul.f32 %v4797_v1, %v1579_v40  ;;  %v1622_v17 = vmul.f32 %v4800_v12, %v1579_v40  ;;  %v1623_v5 = vmul.f32 %v4803_v16, %v1579_v40  ;;  %v1624_v0 = vmul.f32 %v6160_v8, %v1579_v40 }
 0x136   : > { %v1625_v41 = vmul.f32 %v6198_v45, %v1579_v40  ;;  %v1626_v21 = vmul.f32 %v5096_v38, %v1579_v40  ;;  %v1627_v39 = vmul.f32 %v6199_v35, %v1579_v40  ;;  %v1628_v62 = vmul.f32 %v6200_v53, %v1579_v40 }
 0x137   : > { %v1629_v52 = vadd.f32 %v1621_v18, %v1613_v7  ;;  %v1630_v42 = vadd.f32 %v1622_v17, %v1614_v28  ;;  %v1631_v15 = vadd.f32 %v1623_v5, %v1615_v24  ;;  %v1632_v11 = vadd.f32 %v1624_v0, %v1616_v47  ;;  %v6203_v5 = vld [vmem:[#allocation36_spill] sm:$0xff] }
 0x138   : > { %v1633_v4 = vadd.f32 %v1625_v41, %v1617_v63  ;;  %v1634_v1 = vadd.f32 %v1626_v21, %v1618_v25  ;;  %v1635_v57 = vadd.f32 %v1627_v39, %v1619_v51  ;;  %v1636_v12 = vadd.f32 %v1628_v62, %v1620_v26  ;;  %v6201_v63 = vld [vmem:[#allocation10_spill] sm:$0xff] }
 0x139   : > { %v1637_v16 = vmul.f32 %v4849_v22, %v5211_v56  ;;  %v1638_v8 = vmul.f32 %v4854_v48, %v5211_v56  ;;  %v1639_v13 = vmul.f32 %v4863_v20, %v5211_v56  ;;  %v1640_v40 = vmul.f32 %v4866_v30, %v5211_v56  ;;  %v6202_v22 = vld [vmem:[#allocation12_spill] sm:$0xff] }
 0x13a   : > { %v1641_v24 = vmul.f32 %v5131_v34, %v5211_v56  ;;  %v1642_v25 = vmul.f32 %v5134_v49, %v5211_v56  ;;  %v1643_v47 = vmul.f32 %v6201_v63, %v5211_v56  ;;  %v1644_v28 = vmul.f32 %v6202_v22, %v5211_v56  ;;  %v6215_v63 = vld [vmem:[#allocation13_spill] sm:$0xff]  ;;  %v6216_v22 = vld [vmem:[#allocation19_spill] sm:$0xff] }
 0x13b   : > { %v1645_v58 = vadd.f32 %v1637_v16, %v1629_v52  ;;  %v1646_v48 = vadd.f32 %v1638_v8, %v1630_v42  ;;  %v1647_v9 = vadd.f32 %v1639_v13, %v1631_v15  ;;  %v1648_v46 = vadd.f32 %v1640_v40, %v1632_v11  ;;  %v5303_v42 = vld [vmem:[%s3544_s28 + $0x30] sm:$0xff]  ;;  %v5306_v15 = vld [vmem:[%s3544_s28 + $0x38] sm:$0xff] }
 0x13c   : > { %v1649_v20 = vadd.f32 %v1641_v24, %v1633_v4  ;;  %v1650_v32 = vadd.f32 %v1642_v25, %v1634_v1  ;;  %v1651_v35 = vadd.f32 %v1643_v47, %v1635_v57  ;;  %v1652_v30 = vadd.f32 %v1644_v28, %v1636_v12  ;;  %6210 = vst [vmem:[#allocation16_spill] sm:$0xff] %v5303_v42  ;;  %v5309_v1 = vld [vmem:[%s3544_s28 + $0x48] sm:$0xff]  ;;  %v5312_v57 = vld [vmem:[%s3544_s28 + $0x50] sm:$0xff]  ;;  %v1701_v24 = vld [vmem:[%s3549_s6] sm:$0xff] }
 0x13d   : > { %v1653_v50 = vadd.f32 %v1605_v37, %v5161_v54  ;;  %v1654_v53 = vadd.f32 %v1606_v61, %v5164_v44  ;;  %v1655_v55 = vadd.f32 %v1607_v6, %v5167_v2  ;;  %v1656_v7 = vadd.f32 %v1608_v60, %v5170_v33  ;;  %v6204_v37 = vld [vmem:[#allocation37_spill] sm:$0xff]  ;;  %v6205_v61 = vld [vmem:[#allocation38_spill] sm:$0xff]  ;;  %v6206_v33 = vld [vmem:[#allocation31_spill] sm:$0xff]  ;;  %6211 = vst [vmem:[#allocation17_spill] sm:$0xff] %v5306_v15 }
 0x13e   : > { %v1657_v56 = vadd.f32 %v1609_v29, %v5173_v27  ;;  %v1658_v51 = vadd.f32 %v1610_v31, %v5176_v36  ;;  %v1659_v26 = vadd.f32 %v1611_v10, %v5179_v3  ;;  %v1660_v18 = vadd.f32 %v1612_v14, %v5182_v59  ;;  %v6207_v36 = vld [vmem:[#allocation34_spill] sm:$0xff]  ;;  %v6208_v6 = vld [vmem:[#allocation39_spill] sm:$0xff]  ;;  %v6209_v60 = vld [vmem:[#allocation40_spill] sm:$0xff]  ;;  %6212 = vst [vmem:[#allocation15_spill] sm:$0xff] %v5309_v1 }
 0x13f   : > { %v1661_v17 = vadd.f32 %v1645_v58, %v5185_v19  ;;  %v1662_v54 = vadd.f32 %v1646_v48, %v6203_v5  ;;  %v1663_v44 = vadd.f32 %v1647_v9, %v6204_v37  ;;  %v1664_v2 = vadd.f32 %v1648_v46, %v6205_v61  ;;  %v1693_v29 = vld [vmem:[%s3544_s28] sm:$0xff]  ;;  %v1694_v31 = vld [vmem:[%s3544_s28 + $0x8] sm:$0xff]  ;;  %6213 = vst [vmem:[#allocation18_spill] sm:$0xff] %v5312_v57  ;;  %v5323_v9 = vld [vmem:[%s3549_s6 + $0x30] sm:$0xff] }
 0x140   : > { %v1665_v27 = vadd.f32 %v1649_v20, %v6206_v33  ;;  %v1666_v3 = vadd.f32 %v1650_v32, %v6207_v36  ;;  %v1667_v59 = vadd.f32 %v1651_v35, %v6208_v6  ;;  %v1668_v19 = vadd.f32 %v1652_v30, %v6209_v60  ;;  %v6214_v12 = vld [vmem:[#allocation7_spill] sm:$0xff]  ;;  %v5330_v30 = vld [vmem:[%s3549_s6 + $0x38] sm:$0xff] }
 0x141   : > { %v1669_v10 = vmax.f32 %v1653_v50, %v1655_v55  ;;  %v1670_v14 = vmax.f32 %v1654_v53, %v1656_v7  ;;  %v1671_v0 = vmax.f32 %v1661_v17, %v1663_v44  ;;  %v1672_v41 = vmax.f32 %v1662_v54, %v1664_v2  ;;  %v1702_v25 = vld [vmem:[%s3549_s6 + $0x8] sm:$0xff]  ;;  %v5336_v53 = vld [vmem:[%s3549_s6 + $0x50] sm:$0xff] }
 0x142   : > { %v1681_v21 = vmax.f32 %v1657_v56, %v1659_v26  ;;  %v1682_v39 = vmax.f32 %v1658_v51, %v1660_v18  ;;  %v1683_v62 = vmax.f32 %v1665_v27, %v1667_v59  ;;  %v1684_v52 = vmax.f32 %v1666_v3, %v1668_v19  ;;  %v5333_v50 = vld [vmem:[%s3549_s6 + $0x48] sm:$0xff]  ;;  %v6217_v54 = vld [vmem:[#allocation20_spill] sm:$0xff] }
 0x143   : > { %v1673_v11 = vmax.f32 %v1669_v10, %v1671_v0  ;;  %v1674_v4 = vmax.f32 %v1670_v14, %v1672_v41  ;;  %v1729_v16 = vmul.f32 %v6214_v12, %v1693_v29  ;;  %v1730_v8 = vmul.f32 %v6214_v12, %v1694_v31  ;;  %v6218_v44 = vld [vmem:[#allocation32_spill] sm:$0xff]  ;;  %v1709_v19 = vld [vmem:[%s3544_s28 + $0x1] sm:$0xff] }
 0x144   : > { %v1685_v13 = vmax.f32 %v1681_v21, %v1683_v62  ;;  %v1686_v40 = vmax.f32 %v1682_v39, %v1684_v52  ;;  %v1731_v47 = vmul.f32 %v6214_v12, %v6215_v63  ;;  %v1732_v28 = vmul.f32 %v6214_v12, %v6216_v22  ;;  %v1710_v29 = vld [vmem:[%s3544_s28 + $0x9] sm:$0xff]  ;;  %v5371_v31 = vld [vmem:[%s3544_s28 + $0x31] sm:$0xff]  ;;  %v5374_v21 = vld [vmem:[%s3544_s28 + $0x39] sm:$0xff] }
 0x145   : > { %v1675_v58 = vmax.f32 %v1673_v11, 0.0  ;;  %v1676_v48 = vmax.f32 %v1674_v4, 0.0  ;;  %v1733_v46 = vmul.f32 %v6214_v12, %v5303_v42  ;;  %v1734_v20 = vmul.f32 %v6214_v12, %v5306_v15  ;;  %v5377_v39 = vld [vmem:[%s3544_s28 + $0x49] sm:$0xff]  ;;  %v5380_v62 = vld [vmem:[%s3544_s28 + $0x51] sm:$0xff] }
 0x146   : > { %v1687_v32 = vmax.f32 %v1685_v13, 0.0  ;;  %v1688_v35 = vmax.f32 %v1686_v40, 0.0  ;;  %v1735_v55 = vmul.f32 %v6214_v12, %v5309_v1  ;;  %v1736_v7 = vmul.f32 %v6214_v12, %v5312_v57  ;;  %v6219_v4 = vld [vmem:[#allocation11_spill] sm:$0xff] }
 0x147   : > { %3032 = vst [vmem:[%s4036_s18 + $0x2a0] sm:$0xff] %v1675_v58  ;;  %3033 = vst [vmem:[%s4036_s18 + $0x2a8] sm:$0xff] %v1676_v48  ;;  %v5345_v56 = vstv %s5292_s22  ;;  %v5348_v51 = vstv %s5294_s0  ;;  %v1771_v26 = vmul.f32 %v6214_v12, %v1701_v24  ;;  %v1772_v18 = vmul.f32 %v6214_v12, %v1702_v25 }
 0x148   : > { %3036 = vst [vmem:[%s4036_s18 + $0x2b0] sm:$0xff] %v1687_v32  ;;  %3037 = vst [vmem:[%s4036_s18 + $0x2b8] sm:$0xff] %v1688_v35  ;;  %v1738_v17 = vmul.f32 %v5345_v56, %v1701_v24  ;;  %v1739_v5 = vmul.f32 %v5345_v56, %v1702_v25  ;;  %v1740_v37 = vmul.f32 %v5345_v56, %v6217_v54 }
 0x149   : > { %v1741_v61 = vmul.f32 %v5345_v56, %v6218_v44  ;;  %v1742_v2 = vmul.f32 %v5345_v56, %v5323_v9  ;;  %v1743_v33 = vmul.f32 %v5345_v56, %v5330_v30  ;;  %v1744_v27 = vmul.f32 %v5345_v56, %v5333_v50 }
 0x14a   : > { %v1745_v36 = vmul.f32 %v5345_v56, %v5336_v53  ;;  %v1746_v3 = vadd.f32 %v1738_v17, %v1729_v16  ;;  %v1747_v6 = vadd.f32 %v1739_v5, %v1730_v8  ;;  %v1748_v59 = vadd.f32 %v1740_v37, %v1731_v47  ;;  %v6220_v8 = vld [vmem:[#allocation41_spill] sm:$0xff] }
 0x14b   : > { %v1749_v60 = vadd.f32 %v1741_v61, %v1732_v28  ;;  %v1750_v10 = vadd.f32 %v1742_v2, %v1733_v46  ;;  %v1751_v14 = vadd.f32 %v1743_v33, %v1734_v20  ;;  %v1752_v0 = vadd.f32 %v1744_v27, %v1735_v55  ;;  %v1718_v2 = vld [vmem:[%s3549_s6 + $0x9] sm:$0xff] }
 0x14c   : > { %v1753_v41 = vadd.f32 %v1745_v36, %v1736_v7  ;;  %v1755_v52 = vmul.f32 %v5348_v51, %v1709_v19  ;;  %v1756_v11 = vmul.f32 %v5348_v51, %v1710_v29  ;;  %v1757_v16 = vmul.f32 %v5348_v51, %v6219_v4 }
 0x14d   : > { %v1758_v13 = vmul.f32 %v5348_v51, %v6220_v8  ;;  %v1759_v40 = vmul.f32 %v5348_v51, %v5371_v31  ;;  %v1760_v24 = vmul.f32 %v5348_v51, %v5374_v21  ;;  %v1761_v25 = vmul.f32 %v5348_v51, %v5377_v39 }
 0x14e   : > { %v1762_v63 = vmul.f32 %v5348_v51, %v5380_v62  ;;  %v5396_v47 = vadd.f32 %v1755_v52, %v1746_v3  ;;  %v5398_v22 = vadd.f32 %v1756_v11, %v1747_v6  ;;  %v5400_v28 = vadd.f32 %v1757_v16, %v1748_v59  ;;  %v5441_v3 = vld [vmem:[%s3549_s6 + $0x31] sm:$0xff]  ;;  %v5444_v6 = vld [vmem:[%s3549_s6 + $0x39] sm:$0xff] }
 0x14f   : > { %v5402_v58 = vadd.f32 %v1758_v13, %v1749_v60  ;;  %v5404_v48 = vadd.f32 %v1759_v40, %v1750_v10  ;;  %v5406_v46 = vadd.f32 %v1760_v24, %v1751_v14  ;;  %v5408_v20 = vadd.f32 %v1761_v25, %v1752_v0  ;;  %v5451_v10 = vld [vmem:[%s3549_s6 + $0x49] sm:$0xff]  ;;  %v5454_v14 = vld [vmem:[%s3549_s6 + $0x51] sm:$0xff]  ;;  %v6221_v40 = vld [vmem:[#allocation42_spill] sm:$0xff] }
 0x150   : > { %v5410_v32 = vadd.f32 %v1762_v63, %v1753_v41  ;;  %v1773_v35 = vmul.f32 %v6214_v12, %v6217_v54  ;;  %v1774_v55 = vmul.f32 %v6214_v12, %v6218_v44  ;;  %v1775_v7 = vmul.f32 %v6214_v12, %v5323_v9  ;;  %v1717_v44 = vld [vmem:[%s3549_s6 + $0x1] sm:$0xff] }
 0x151   : > { %v1776_v17 = vmul.f32 %v6214_v12, %v5330_v30  ;;  %v1777_v5 = vmul.f32 %v6214_v12, %v5333_v50  ;;  %v1778_v37 = vmul.f32 %v6214_v12, %v5336_v53  ;;  %v1779_v61 = vmul.f32 %v5345_v56, %v1709_v19 }
 0x152   : > { %v1780_v54 = vmul.f32 %v5345_v56, %v1710_v29  ;;  %v1781_v33 = vmul.f32 %v5345_v56, %v6219_v4  ;;  %v1782_v27 = vmul.f32 %v5345_v56, %v6220_v8  ;;  %v1783_v12 = vmul.f32 %v5345_v56, %v5371_v31 }
 0x153   : > { %v1784_v36 = vmul.f32 %v5345_v56, %v5374_v21  ;;  %v1785_v59 = vmul.f32 %v5345_v56, %v5377_v39  ;;  %v1786_v60 = vmul.f32 %v5345_v56, %v5380_v62  ;;  %v1787_v19 = vadd.f32 %v1779_v61, %v1771_v26  ;;  %v6222_v26 = vld [vmem:[#allocation14_spill] sm:$0xff] }
 0x154   : > { %v1788_v29 = vadd.f32 %v1780_v54, %v1772_v18  ;;  %v1789_v0 = vadd.f32 %v1781_v33, %v1773_v35  ;;  %v1790_v41 = vadd.f32 %v1782_v27, %v1774_v55  ;;  %v1791_v52 = vadd.f32 %v1783_v12, %v1775_v7  ;;  %v3050_v27 = vld [vmem:[%s3549_s6 + $0x20] sm:$0xff] }
 0x155   : > { %v1792_v11 = vadd.f32 %v1784_v36, %v1776_v17  ;;  %v1793_v4 = vadd.f32 %v1785_v59, %v1777_v5  ;;  %v1794_v16 = vadd.f32 %v1786_v60, %v1778_v37  ;;  %v1795_v8 = vmul.f32 %v5348_v51, %v1717_v44  ;;  %v3041_v17 = vld [vmem:[%s3544_s28 + $0x18] sm:$0xff]  ;;  %v3042_v5 = vld [vmem:[%s3544_s28 + $0x20] sm:$0xff] }
 0x156   : > { %v1796_v13 = vmul.f32 %v5348_v51, %v1718_v2  ;;  %v1797_v56 = vmul.f32 %v5348_v51, %v6221_v40  ;;  %v1798_v18 = vmul.f32 %v5348_v51, %v6222_v26  ;;  %v1799_v24 = vmul.f32 %v5348_v51, %v5441_v3 }
 0x157   : > { %v1800_v25 = vmul.f32 %v5348_v51, %v5444_v6  ;;  %v1801_v63 = vmul.f32 %v5348_v51, %v5451_v10  ;;  %v1802_v35 = vmul.f32 %v5348_v51, %v5454_v14  ;;  %v5470_v55 = vadd.f32 %v1795_v8, %v1787_v19  ;;  %v3049_v51 = vld [vmem:[%s3549_s6 + $0x18] sm:$0xff] }
 0x158   : > { %v5472_v7 = vadd.f32 %v1796_v13, %v1788_v29  ;;  %v5476_v37 = vadd.f32 %v1797_v56, %v1789_v0  ;;  %v5478_v61 = vadd.f32 %v1798_v18, %v1790_v41  ;;  %v5480_v54 = vadd.f32 %v1799_v24, %v1791_v52  ;;  %v6230_v52 = vld [vmem:[#allocation21_spill] sm:$0xff] }
 0x159   : > { %v5482_v44 = vadd.f32 %v1800_v25, %v1792_v11  ;;  %v5486_v2 = vadd.f32 %v1801_v63, %v1793_v4  ;;  %v5488_v33 = vadd.f32 %v1802_v35, %v1794_v16  ;;  %v1846_v12 = vstv %s5426_s24  ;;  %v6231_v4 = vld [vmem:[#allocation26_spill] sm:$0xff] }
 0x15a   : > { %6223 = vst [vmem:[#allocation43_spill] sm:$0xff] %v5472_v7  ;;  %6224 = vst [vmem:[#allocation23_spill] sm:$0xff] %v5476_v37  ;;  %v1855_v36 = vstv %s5428_s25  ;;  %v1847_v59 = vmul.f32 %v3041_v17, %v1846_v12  ;;  %v1848_v60 = vmul.f32 %v3042_v5, %v1846_v12  ;;  %v1849_v19 = vmul.f32 %v1846_v12, %v5303_v42  ;;  %v3058_v42 = vld [vmem:[%s3544_s28 + $0x21] sm:$0xff] }
 0x15b   : > { %6225 = vst [vmem:[#allocation44_spill] sm:$0xff] %v5478_v61  ;;  %6226 = vst [vmem:[#allocation27_spill] sm:$0xff] %v5480_v54  ;;  %v1850_v29 = vmul.f32 %v1846_v12, %v5306_v15  ;;  %v1851_v0 = vmul.f32 %v1846_v12, %v5309_v1  ;;  %v1852_v41 = vmul.f32 %v1846_v12, %v5312_v57  ;;  %v3057_v15 = vld [vmem:[%s3544_s28 + $0x19] sm:$0xff] }
 0x15c   : > { %6227 = vst [vmem:[#allocation22_spill] sm:$0xff] %v5482_v44  ;;  %6228 = vst [vmem:[#allocation28_spill] sm:$0xff] %v5486_v2  ;;  %v1853_v11 = vmul.f32 %v6230_v52, %v1846_v12  ;;  %v1854_v8 = vmul.f32 %v6231_v4, %v1846_v12  ;;  %v1856_v16 = vmul.f32 %v3049_v51, %v1855_v36 }
 0x15d   : > { %6229 = vst [vmem:[#allocation29_spill] sm:$0xff] %v5488_v33  ;;  %v1857_v13 = vmul.f32 %v3050_v27, %v1855_v36  ;;  %v1858_v40 = vmul.f32 %v1855_v36, %v5323_v9  ;;  %v1859_v56 = vmul.f32 %v1855_v36, %v5330_v30  ;;  %v1860_v26 = vmul.f32 %v1855_v36, %v5333_v50 }
 0x15e   : > { %v1861_v18 = vmul.f32 %v1855_v36, %v5336_v53  ;;  %v1862_v24 = vmul.f32 %v5071_v23, %v1855_v36  ;;  %v1863_v25 = vmul.f32 %v5074_v43, %v1855_v36  ;;  %v1864_v63 = vadd.f32 %v1856_v16, %v1847_v59 }
 0x15f   : > { %v1865_v35 = vadd.f32 %v1857_v13, %v1848_v60  ;;  %v1866_v17 = vadd.f32 %v1858_v40, %v1849_v19  ;;  %v1867_v5 = vadd.f32 %v1859_v56, %v1850_v29  ;;  %v1868_v52 = vadd.f32 %v1860_v26, %v1851_v0 }
 0x160   : > { %v1869_v4 = vadd.f32 %v1861_v18, %v1852_v41  ;;  %v1870_v57 = vadd.f32 %v1862_v24, %v1853_v11  ;;  %v1871_v1 = vadd.f32 %v1863_v25, %v1854_v8  ;;  %v1872_v33 = vstv %s5484_s26 }
 0x161   : > { %v1889_v2 = vmul.f32 %v3049_v51, %v1846_v12  ;;  %v1890_v44 = vmul.f32 %v3050_v27, %v1846_v12  ;;  %v1891_v54 = vmul.f32 %v1846_v12, %v5323_v9  ;;  %v1873_v61 = vmul.f32 %v3057_v15, %v1872_v33 }
 0x162   : > { %v1874_v37 = vmul.f32 %v3058_v42, %v1872_v33  ;;  %v1875_v7 = vmul.f32 %v1872_v33, %v5371_v31  ;;  %v1876_v59 = vmul.f32 %v1872_v33, %v5374_v21  ;;  %v1877_v60 = vmul.f32 %v1872_v33, %v5377_v39 }
 0x163   : > { %v1878_v19 = vmul.f32 %v1872_v33, %v5380_v62  ;;  %v1879_v29 = vmul.f32 %v6198_v45, %v1872_v33  ;;  %v1880_v0 = vmul.f32 %v5096_v38, %v1872_v33  ;;  %v1881_v41 = vadd.f32 %v1873_v61, %v1864_v63 }
 0x164   : > { %v1882_v51 = vadd.f32 %v1874_v37, %v1865_v35  ;;  %v1883_v27 = vadd.f32 %v1875_v7, %v1866_v17  ;;  %v1884_v11 = vadd.f32 %v1876_v59, %v1867_v5  ;;  %v1885_v8 = vadd.f32 %v1877_v60, %v1868_v52  ;;  %v3065_v7 = vld [vmem:[%s3549_s6 + $0x19] sm:$0xff]  ;;  %v3066_v35 = vld [vmem:[%s3549_s6 + $0x21] sm:$0xff] }
 0x165   : > { %v1886_v16 = vadd.f32 %v1878_v19, %v1869_v4  ;;  %v1887_v13 = vadd.f32 %v1879_v29, %v1870_v57  ;;  %v1888_v40 = vadd.f32 %v1880_v0, %v1871_v1  ;;  %v1892_v56 = vmul.f32 %v1846_v12, %v5330_v30 }
 0x166   : > { %v1893_v26 = vmul.f32 %v1846_v12, %v5333_v50  ;;  %v1894_v18 = vmul.f32 %v1846_v12, %v5336_v53  ;;  %v1895_v24 = vmul.f32 %v5071_v23, %v1846_v12  ;;  %v1896_v25 = vmul.f32 %v5074_v43, %v1846_v12 }
 0x167   : > { %v1897_v61 = vmul.f32 %v3057_v15, %v1855_v36  ;;  %v1898_v63 = vmul.f32 %v3058_v42, %v1855_v36  ;;  %v1899_v37 = vmul.f32 %v1855_v36, %v5371_v31  ;;  %v1900_v17 = vmul.f32 %v1855_v36, %v5374_v21 }
 0x168   : > { %v1901_v1 = vmul.f32 %v1855_v36, %v5377_v39  ;;  %v1902_v57 = vmul.f32 %v1855_v36, %v5380_v62  ;;  %v1903_v5 = vmul.f32 %v6198_v45, %v1855_v36  ;;  %v1904_v52 = vmul.f32 %v5096_v38, %v1855_v36 }
 0x169   : > { %v1905_v4 = vadd.f32 %v1897_v61, %v1889_v2  ;;  %v1906_v23 = vadd.f32 %v1898_v63, %v1890_v44  ;;  %v1907_v59 = vadd.f32 %v1899_v37, %v1891_v54  ;;  %v1908_v43 = vadd.f32 %v1900_v17, %v1892_v56  ;;  %v3082_v17 = vld [vmem:[%s3544_s28 + $0x78] sm:$0xff] }
 0x16a   : > { %v1909_v15 = vadd.f32 %v1901_v1, %v1893_v26  ;;  %v1910_v42 = vadd.f32 %v1902_v57, %v1894_v18  ;;  %v1911_v12 = vadd.f32 %v1903_v5, %v1895_v24  ;;  %v1912_v60 = vadd.f32 %v1904_v52, %v1896_v25  ;;  %v3083_v1 = vld [vmem:[%s3544_s28 + $0x80] sm:$0xff]  ;;  %v6240_v57 = vld [vmem:[#allocation29_spill] sm:$0xff] }
 0x16b   : > { %v1913_v19 = vmul.f32 %v3065_v7, %v1872_v33  ;;  %v1914_v29 = vmul.f32 %v3066_v35, %v1872_v33  ;;  %v1915_v0 = vmul.f32 %v1872_v33, %v5441_v3  ;;  %v1916_v38 = vmul.f32 %v1872_v33, %v5444_v6  ;;  %v3088_v52 = vld [vmem:[%s3549_s6 + $0x60] sm:$0xff] }
 0x16c   : > { %v1917_v45 = vmul.f32 %v1872_v33, %v5451_v10  ;;  %v1918_v54 = vmul.f32 %v1872_v33, %v5454_v14  ;;  %v1919_v44 = vmul.f32 %v5131_v34, %v1872_v33  ;;  %v1920_v2 = vmul.f32 %v5134_v49, %v1872_v33 }
 0x16d   : > { %v1921_v36 = vadd.f32 %v1913_v19, %v1905_v4  ;;  %v1922_v56 = vadd.f32 %v1914_v29, %v1906_v23  ;;  %v1923_v26 = vadd.f32 %v1915_v0, %v1907_v59  ;;  %v1924_v18 = vadd.f32 %v1916_v38, %v1908_v43  ;;  %v3089_v43 = vld [vmem:[%s3549_s6 + $0x68] sm:$0xff]  ;;  %v6243_v19 = vld [vmem:[#allocation17_spill] sm:$0xff] }
 0x16e   : > { %v1925_v24 = vadd.f32 %v1917_v45, %v1909_v15  ;;  %v1926_v25 = vadd.f32 %v1918_v54, %v1910_v42  ;;  %v1927_v61 = vadd.f32 %v1919_v44, %v1911_v12  ;;  %v1928_v63 = vadd.f32 %v1920_v2, %v1912_v60  ;;  %v3090_v15 = vld [vmem:[%s3549_s6 + $0x78] sm:$0xff]  ;;  %v3091_v42 = vld [vmem:[%s3549_s6 + $0x80] sm:$0xff]  ;;  %v6242_v12 = vld [vmem:[#allocation16_spill] sm:$0xff] }
 0x16f   : > { %v5542_v37 = vadd.f32 %v1881_v41, %v5396_v47  ;;  %v5545_v7 = vadd.f32 %v1882_v51, %v5398_v22  ;;  %v5548_v34 = vadd.f32 %v1883_v27, %v5400_v28  ;;  %v5551_v49 = vadd.f32 %v1884_v11, %v5402_v58  ;;  %v6232_v58 = vld [vmem:[#allocation43_spill] sm:$0xff]  ;;  %v3080_v51 = vld [vmem:[%s3544_s28 + $0x60] sm:$0xff] }
 0x170   : > { %v5554_v33 = vadd.f32 %v1885_v8, %v5404_v48  ;;  %v5557_v35 = vadd.f32 %v1886_v16, %v5406_v46  ;;  %v5560_v47 = vadd.f32 %v1887_v13, %v5408_v20  ;;  %v5563_v22 = vadd.f32 %v1888_v40, %v5410_v32  ;;  %v6233_v41 = vld [vmem:[#allocation23_spill] sm:$0xff]  ;;  %v6234_v20 = vld [vmem:[#allocation44_spill] sm:$0xff]  ;;  %v6236_v8 = vld [vmem:[#allocation22_spill] sm:$0xff] }
 0x171   : > { %v5566_v28 = vadd.f32 %v1921_v36, %v5470_v55  ;;  %v5569_v48 = vadd.f32 %v1922_v56, %v6232_v58  ;;  %v5572_v46 = vadd.f32 %v1923_v26, %v6233_v41  ;;  %v5576_v27 = vadd.f32 %v1924_v18, %v6234_v20  ;;  %v6235_v11 = vld [vmem:[#allocation27_spill] sm:$0xff]  ;;  %v6238_v55 = vld [vmem:[#allocation28_spill] sm:$0xff]  ;;  %v6245_v45 = vld [vmem:[#allocation18_spill] sm:$0xff] }
 0x172   : > { %v5579_v32 = vadd.f32 %v1925_v24, %v6235_v11  ;;  %v5582_v16 = vadd.f32 %v1926_v25, %v6236_v8  ;;  %v5585_v13 = vadd.f32 %v1927_v61, %v6238_v55  ;;  %v3081_v40 = vld [vmem:[%s3544_s28 + $0x68] sm:$0xff]  ;;  %v5591_v5 = vadd.f32 %v1928_v63, %v6240_v57 }
 0x173   : > { %v1980_v4 = vstv %s5529_s27  ;;  %v5596_v23 = vstv %s5532_s29  ;;  %v5599_v59 = vstv %s5534_s30  ;;  %v6244_v0 = vld [vmem:[#allocation15_spill] sm:$0xff] }
 0x174   : > { %6237 = vst [vmem:[#allocation30_spill] sm:$0xff] %v5582_v16  ;;  %6239 = vst [vmem:[#allocation24_spill] sm:$0xff] %v5585_v13  ;;  %v1981_v60 = vmul.f32 %v1980_v4, %v6242_v12  ;;  %v1982_v29 = vmul.f32 %v1980_v4, %v6243_v19  ;;  %v1983_v38 = vmul.f32 %v1980_v4, %v6244_v0  ;;  %v3096_v55 = vld [vmem:[%s3544_s28 + $0x61] sm:$0xff]  ;;  %v3097_v12 = vld [vmem:[%s3544_s28 + $0x69] sm:$0xff] }
 0x175   : > { %6241 = vst [vmem:[#allocation25_spill] sm:$0xff] %v5591_v5  ;;  %v1984_v54 = vmul.f32 %v1980_v4, %v6245_v45  ;;  %v1985_v44 = vmul.f32 %v3080_v51, %v1980_v4  ;;  %v1986_v2 = vmul.f32 %v3081_v40, %v1980_v4  ;;  %v1987_v36 = vmul.f32 %v3082_v17, %v1980_v4  ;;  %v3098_v19 = vld [vmem:[%s3544_s28 + $0x79] sm:$0xff]  ;;  %v3099_v0 = vld [vmem:[%s3544_s28 + $0x81] sm:$0xff] }
 0x176   : > { %v1988_v56 = vmul.f32 %v3083_v1, %v1980_v4  ;;  %v1990_v26 = vmul.f32 %v5596_v23, %v5323_v9  ;;  %v1991_v18 = vmul.f32 %v5596_v23, %v5330_v30  ;;  %v1992_v24 = vmul.f32 %v5596_v23, %v5333_v50 }
 0x177   : > { %v1993_v25 = vmul.f32 %v5596_v23, %v5336_v53  ;;  %v1994_v61 = vmul.f32 %v3088_v52, %v5596_v23  ;;  %v1995_v63 = vmul.f32 %v3089_v43, %v5596_v23  ;;  %v1996_v58 = vmul.f32 %v3090_v15, %v5596_v23 }
 0x178   : > { %v1997_v41 = vmul.f32 %v3091_v42, %v5596_v23  ;;  %v1998_v51 = vadd.f32 %v1990_v26, %v1981_v60  ;;  %v1999_v20 = vadd.f32 %v1991_v18, %v1982_v29  ;;  %v2000_v11 = vadd.f32 %v1992_v24, %v1983_v38 }
 0x179   : > { %v2001_v8 = vadd.f32 %v1993_v25, %v1984_v54  ;;  %v2002_v40 = vadd.f32 %v1994_v61, %v1985_v44  ;;  %v2003_v17 = vadd.f32 %v1995_v63, %v1986_v2  ;;  %v2004_v1 = vadd.f32 %v1996_v58, %v1987_v36 }
 0x17a   : > { %v2005_v57 = vadd.f32 %v1997_v41, %v1988_v56  ;;  %v2007_v45 = vmul.f32 %v5599_v59, %v5371_v31  ;;  %v2008_v5 = vmul.f32 %v5599_v59, %v5374_v21  ;;  %v2009_v60 = vmul.f32 %v5599_v59, %v5377_v39 }
 0x17b   : > { %v2010_v29 = vmul.f32 %v5599_v59, %v5380_v62  ;;  %v2011_v38 = vmul.f32 %v3096_v55, %v5599_v59  ;;  %v2012_v54 = vmul.f32 %v3097_v12, %v5599_v59  ;;  %v2013_v44 = vmul.f32 %v3098_v19, %v5599_v59 }
 0x17c   : > { %v2014_v2 = vmul.f32 %v3099_v0, %v5599_v59  ;;  %v2015_v36 = vadd.f32 %v2007_v45, %v1998_v51  ;;  %v2016_v56 = vadd.f32 %v2008_v5, %v1999_v20  ;;  %v2017_v26 = vadd.f32 %v2009_v60, %v2000_v11 }
 0x17d   : > { %v2018_v18 = vadd.f32 %v2010_v29, %v2001_v8  ;;  %v2019_v24 = vadd.f32 %v2011_v38, %v2002_v40  ;;  %v2020_v25 = vadd.f32 %v2012_v54, %v2003_v17  ;;  %v2021_v61 = vadd.f32 %v2013_v44, %v2004_v1 }
 0x17e   : > { %v2022_v63 = vadd.f32 %v2014_v2, %v2005_v57  ;;  %v2023_v58 = vmul.f32 %v1980_v4, %v5323_v9  ;;  %v2024_v41 = vmul.f32 %v1980_v4, %v5330_v30  ;;  %v2025_v13 = vmul.f32 %v1980_v4, %v5333_v50  ;;  %v3104_v50 = vld [vmem:[%s3549_s6 + $0x61] sm:$0xff] }
 0x17f   : > { %v2026_v16 = vmul.f32 %v1980_v4, %v5336_v53  ;;  %v2027_v51 = vmul.f32 %v3088_v52, %v1980_v4  ;;  %v2028_v5 = vmul.f32 %v3089_v43, %v1980_v4  ;;  %v2029_v20 = vmul.f32 %v3090_v15, %v1980_v4  ;;  %v3105_v15 = vld [vmem:[%s3549_s6 + $0x69] sm:$0xff] }
 0x180   : > { %v2030_v11 = vmul.f32 %v3091_v42, %v1980_v4  ;;  %v2031_v8 = vmul.f32 %v5596_v23, %v5371_v31  ;;  %v2032_v40 = vmul.f32 %v5596_v23, %v5374_v21  ;;  %v2033_v9 = vmul.f32 %v5596_v23, %v5377_v39  ;;  %v3106_v31 = vld [vmem:[%s3549_s6 + $0x79] sm:$0xff]  ;;  %v3107_v42 = vld [vmem:[%s3549_s6 + $0x81] sm:$0xff] }
 0x181   : > { %v2034_v30 = vmul.f32 %v5596_v23, %v5380_v62  ;;  %v2035_v53 = vmul.f32 %v3096_v55, %v5596_v23  ;;  %v2036_v52 = vmul.f32 %v3097_v12, %v5596_v23  ;;  %v2037_v43 = vmul.f32 %v3098_v19, %v5596_v23 }
 0x182   : > { %v2038_v4 = vmul.f32 %v3099_v0, %v5596_v23  ;;  %v2039_v17 = vadd.f32 %v2031_v8, %v2023_v58  ;;  %v2040_v21 = vadd.f32 %v2032_v40, %v2024_v41  ;;  %v2041_v1 = vadd.f32 %v2033_v9, %v2025_v13 }
 0x183   : > { %v2042_v57 = vadd.f32 %v2034_v30, %v2026_v16  ;;  %v2043_v39 = vadd.f32 %v2035_v53, %v2027_v51  ;;  %v2044_v45 = vadd.f32 %v2036_v52, %v2028_v5  ;;  %v2045_v60 = vadd.f32 %v2037_v43, %v2029_v20 }
 0x184   : > { %v2046_v62 = vadd.f32 %v2038_v4, %v2030_v11  ;;  %v2047_v55 = vmul.f32 %v5599_v59, %v5441_v3  ;;  %v2048_v12 = vmul.f32 %v5599_v59, %v5444_v6  ;;  %v2049_v23 = vmul.f32 %v5599_v59, %v5451_v10 }
 0x185   : > { %v2050_v19 = vmul.f32 %v5599_v59, %v5454_v14  ;;  %v2051_v0 = vmul.f32 %v3104_v50, %v5599_v59  ;;  %v2052_v16 = vmul.f32 %v3105_v15, %v5599_v59  ;;  %v2053_v13 = vmul.f32 %v3106_v31, %v5599_v59 }
 0x186   : > { %v2054_v29 = vmul.f32 %v3107_v42, %v5599_v59  ;;  %v2055_v38 = vadd.f32 %v2047_v55, %v2039_v17  ;;  %v2056_v54 = vadd.f32 %v2048_v12, %v2040_v21  ;;  %v2057_v3 = vadd.f32 %v2049_v23, %v2041_v1 }
 0x187   : > { %v2058_v44 = vadd.f32 %v2050_v19, %v2042_v57  ;;  %v2059_v2 = vadd.f32 %v2051_v0, %v2043_v39  ;;  %v2060_v6 = vadd.f32 %v2052_v16, %v2044_v45  ;;  %v2061_v58 = vadd.f32 %v2053_v13, %v2045_v60 }
 0x188   : > { %v2062_v41 = vadd.f32 %v2054_v29, %v2046_v62  ;;  %v2063_v10 = vadd.f32 %v2015_v36, %v5542_v37  ;;  %v2064_v14 = vadd.f32 %v2016_v56, %v5545_v7  ;;  %v2065_v51 = vadd.f32 %v2017_v26, %v5548_v34  ;;  %v6246_v36 = vld [vmem:[#allocation30_spill] sm:$0xff]  ;;  %v6247_v56 = vld [vmem:[#allocation24_spill] sm:$0xff]  ;;  %v6248_v26 = vld [vmem:[#allocation25_spill] sm:$0xff] }
 0x189   : > { %v2066_v5 = vadd.f32 %v2018_v18, %v5551_v49  ;;  %v2067_v20 = vadd.f32 %v2019_v24, %v5554_v33  ;;  %v2068_v59 = vadd.f32 %v2020_v25, %v5557_v35  ;;  %v2069_v11 = vadd.f32 %v2021_v61, %v5560_v47 }
 0x18a   : > { %v2070_v8 = vadd.f32 %v2022_v63, %v5563_v22  ;;  %v2071_v40 = vadd.f32 %v2055_v38, %v5566_v28  ;;  %v2072_v9 = vadd.f32 %v2056_v54, %v5569_v48  ;;  %v2073_v37 = vadd.f32 %v2057_v3, %v5572_v46 }
 0x18b   : > { %v2074_v7 = vadd.f32 %v2058_v44, %v5576_v27  ;;  %v2075_v34 = vadd.f32 %v2059_v2, %v5579_v32  ;;  %v2076_v49 = vadd.f32 %v2060_v6, %v6246_v36  ;;  %v2077_v33 = vadd.f32 %v2061_v58, %v6247_v56 }
 0x18c   : > { %v2078_v35 = vadd.f32 %v2062_v41, %v6248_v26  ;;  %v2079_v18 = vmax.f32 %v2063_v10, %v2065_v51  ;;  %v2080_v47 = vmax.f32 %v2064_v14, %v2066_v5  ;;  %v2081_v22 = vmax.f32 %v2071_v40, %v2073_v37 }
 0x18d   : > { %v2082_v28 = vmax.f32 %v2072_v9, %v2074_v7  ;;  %v2091_v48 = vmax.f32 %v2067_v20, %v2069_v11  ;;  %v2092_v46 = vmax.f32 %v2068_v59, %v2070_v8  ;;  %v2093_v24 = vmax.f32 %v2075_v34, %v2077_v33 }
 0x18e   : > { %v2094_v27 = vmax.f32 %v2076_v49, %v2078_v35  ;;  %v2083_v25 = vmax.f32 %v2079_v18, %v2081_v22  ;;  %37 = sbr.rel (!%p35_p5) target bundleno = 16 (0x10), region = 67 }
 0x18f   : > { %v2084_v32 = vmax.f32 %v2080_v47, %v2082_v28  ;;  %v2095_v61 = vmax.f32 %v2091_v48, %v2093_v24 }
 0x190   : > { %v2096_v63 = vmax.f32 %v2092_v46, %v2094_v27  ;;  %v2085_v30 = vmax.f32 %v2083_v25, 0.0 }
 0x191   : > { %v2086_v50 = vmax.f32 %v2084_v32, 0.0  ;;  %v2097_v53 = vmax.f32 %v2095_v61, 0.0 }
 0x192   : > { %v2098_v52 = vmax.f32 %v2096_v63, 0.0  ;;  %3112 = vst [vmem:[%s4036_s18 + $0x380] sm:$0xff] %v2085_v30 }
 0x193   : > { %3113 = vst [vmem:[%s4036_s18 + $0x388] sm:$0xff] %v2086_v50  ;;  %3116 = vst [vmem:[%s4036_s18 + $0x390] sm:$0xff] %v2097_v53 }
 0x194   : > { %3117 = vst [vmem:[%s4036_s18 + $0x398] sm:$0xff] %v2098_v52 }
 0x19b   :  { %v2137_v43 = vld [vmem:[#allocation2 + $0x80] sm:$0xff]  ;;  %v2138_v4 = vld [vmem:[#allocation2 + $0x88] sm:$0xff]  ;;  %v2139_v60 = vld [vmem:[#allocation2 + $0x90] sm:$0xff] }
 0x19c   :  { %v2121_v15 = vld [vmem:[#allocation2] sm:$0xff]  ;;  %v3318_v31 = vpack.c.bf16 %v2138_v4, %v2137_v43  ;;  %v2122_v42 = vld [vmem:[#allocation2 + $0x8] sm:$0xff]  ;;  %v2140_v55 = vld [vmem:[#allocation2 + $0x98] sm:$0xff] }
 0x19d   :  { %v2169_v17 = vld [vmem:[#allocation2 + $0x180] sm:$0xff]  ;;  %v2170_v21 = vld [vmem:[#allocation2 + $0x188] sm:$0xff]  ;;  %v3320_v1 = vpack.c.bf16 %v2122_v42, %v2121_v15  ;;  %v2123_v12 = vld [vmem:[#allocation2 + $0x10] sm:$0xff]  ;;  %v3322_v19 = vpack.c.bf16 %v2140_v55, %v2139_v60 }
 0x19e   :  { %v3350_v57 = vpack.c.bf16 %v2170_v21, %v2169_v17  ;;  %v2153_v39 = vld [vmem:[#allocation2 + $0x100] sm:$0xff]  ;;  %v2154_v45 = vld [vmem:[#allocation2 + $0x108] sm:$0xff]  ;;  %3319 = vmatprep.subr.bf16.mxu0 %v3318_v31  ;;  %v2124_v23 = vld [vmem:[#allocation2 + $0x18] sm:$0xff] }
 0x19f   :  { %v3352_v62 = vpack.c.bf16 %v2154_v45, %v2153_v39  ;;  %3321 = vmatpush3.bf16.msra.mxu0 %v3320_v1  ;;  %v3324_v0 = vpack.c.bf16 %v2124_v23, %v2123_v12  ;;  %v2171_v16 = vld [vmem:[#allocation2 + $0x190] sm:$0xff]  ;;  %v2172_v13 = vld [vmem:[#allocation2 + $0x198] sm:$0xff]  ;;  %v2141_v3 = vld [vmem:[#allocation2 + $0xa0] sm:$0xff] }
 0x1a0   :  { %3351 = vmatprep.subr.bf16.mxu1 %v3350_v57  ;;  %v2155_v29 = vld [vmem:[#allocation2 + $0x110] sm:$0xff]  ;;  %v3354_v38 = vpack.c.bf16 %v2172_v13, %v2171_v16  ;;  %v2156_v54 = vld [vmem:[#allocation2 + $0x118] sm:$0xff]  ;;  %v2142_v44 = vld [vmem:[#allocation2 + $0xa8] sm:$0xff]  ;;  %3323 = vmatprep.subr.bf16.mxu0 %v3322_v19 }
 0x1a1   :  { %3353 = vmatpush3.bf16.msra.mxu1 %v3352_v62  ;;  %v3356_v2 = vpack.c.bf16 %v2156_v54, %v2155_v29  ;;  %v3326_v6 = vpack.c.bf16 %v2142_v44, %v2141_v3  ;;  %v2125_v58 = vld [vmem:[#allocation2 + $0x20] sm:$0xff]  ;;  %v2126_v41 = vld [vmem:[#allocation2 + $0x28] sm:$0xff]  ;;  %v2143_v11 = vld [vmem:[#allocation2 + $0xb0] sm:$0xff] }
 0x1a2   :  { %v2173_v10 = vld [vmem:[#allocation2 + $0x1a0] sm:$0xff]  ;;  %3355 = vmatprep.subr.bf16.mxu1 %v3354_v38  ;;  %v2174_v14 = vld [vmem:[#allocation2 + $0x1a8] sm:$0xff]  ;;  %v3328_v20 = vpack.c.bf16 %v2126_v41, %v2125_v58  ;;  %v2144_v8 = vld [vmem:[#allocation2 + $0xb8] sm:$0xff] }
 0x1a3   :  { %v2157_v51 = vld [vmem:[#allocation2 + $0x120] sm:$0xff]  ;;  %v2158_v5 = vld [vmem:[#allocation2 + $0x128] sm:$0xff]  ;;  %3325 = vmatpush3.bf16.msra.mxu0 %v3324_v0  ;;  %v3358_v59 = vpack.c.bf16 %v2174_v14, %v2173_v10  ;;  %v2127_v40 = vld [vmem:[#allocation2 + $0x30] sm:$0xff]  ;;  %v3330_v37 = vpack.c.bf16 %v2144_v8, %v2143_v11 }
 0x1a4   :  { %3327 = vmatprep.subr.bf16.mxu0 %v3326_v6  ;;  %v3360_v9 = vpack.c.bf16 %v2158_v5, %v2157_v51  ;;  %v2128_v7 = vld [vmem:[#allocation2 + $0x38] sm:$0xff]  ;;  %v2175_v34 = vld [vmem:[#allocation2 + $0x1b0] sm:$0xff]  ;;  %v2145_v26 = vld [vmem:[#allocation2 + $0xc0] sm:$0xff] }
 0x1a5   :  { %3357 = vmatpush3.bf16.msra.mxu1 %v3356_v2  ;;  %v2176_v36 = vld [vmem:[#allocation2 + $0x1b8] sm:$0xff]  ;;  %v2159_v56 = vld [vmem:[#allocation2 + $0x130] sm:$0xff]  ;;  %v2146_v35 = vld [vmem:[#allocation2 + $0xc8] sm:$0xff]  ;;  %v3332_v18 = vpack.c.bf16 %v2128_v7, %v2127_v40 }
 0x1a6   :  { %3359 = vmatprep.subr.bf16.mxu1 %v3358_v59  ;;  %v3362_v49 = vpack.c.bf16 %v2176_v36, %v2175_v34  ;;  %v2160_v33 = vld [vmem:[#allocation2 + $0x138] sm:$0xff]  ;;  %v2177_v47 = vld [vmem:[#allocation2 + $0x1c0] sm:$0xff]  ;;  %v2178_v22 = vld [vmem:[#allocation2 + $0x1c8] sm:$0xff]  ;;  %v3334_v48 = vpack.c.bf16 %v2146_v35, %v2145_v26 }
 0x1a7   :  { %3329 = vmatpush3.bf16.msra.mxu0 %v3328_v20  ;;  %v3364_v28 = vpack.c.bf16 %v2160_v33, %v2159_v56  ;;  %v2129_v46 = vld [vmem:[#allocation2 + $0x40] sm:$0xff]  ;;  %v2130_v24 = vld [vmem:[#allocation2 + $0x48] sm:$0xff]  ;;  %v3366_v25 = vpack.c.bf16 %v2178_v22, %v2177_v47  ;;  %v2147_v61 = vld [vmem:[#allocation2 + $0xd0] sm:$0xff] }
 0x1a8   :  { %3331 = vmatprep.subr.bf16.mxu0 %v3330_v37  ;;  %v2161_v27 = vld [vmem:[#allocation2 + $0x140] sm:$0xff]  ;;  %v2162_v32 = vld [vmem:[#allocation2 + $0x148] sm:$0xff]  ;;  %v2148_v63 = vld [vmem:[#allocation2 + $0xd8] sm:$0xff]  ;;  %v3336_v53 = vpack.c.bf16 %v2130_v24, %v2129_v46 }
 0x1a9   :  { %3361 = vmatpush3.bf16.msra.mxu1 %v3360_v9  ;;  %v2179_v30 = vld [vmem:[#allocation2 + $0x1d0] sm:$0xff]  ;;  %v2180_v50 = vld [vmem:[#allocation2 + $0x1d8] sm:$0xff]  ;;  %v3368_v52 = vpack.c.bf16 %v2162_v32, %v2161_v27  ;;  %v3338_v43 = vpack.c.bf16 %v2148_v63, %v2147_v61  ;;  %v2149_v21 = vld [vmem:[#allocation2 + $0xe0] sm:$0xff] }
 0x1aa   :  { %3363 = vmatprep.subr.bf16.mxu1 %v3362_v49  ;;  %v2131_v4 = vld [vmem:[#allocation2 + $0x50] sm:$0xff]  ;;  %v2132_v15 = vld [vmem:[#allocation2 + $0x58] sm:$0xff]  ;;  %v3370_v42 = vpack.c.bf16 %v2180_v50, %v2179_v30  ;;  %v2150_v1 = vld [vmem:[#allocation2 + $0xe8] sm:$0xff] }
 0x1ab   :  { %3333 = vmatpush3.bf16.msra.mxu0 %v3332_v18  ;;  %v2163_v31 = vld [vmem:[#allocation2 + $0x150] sm:$0xff]  ;;  %v2164_v17 = vld [vmem:[#allocation2 + $0x158] sm:$0xff]  ;;  %v2181_v57 = vld [vmem:[#allocation2 + $0x1e0] sm:$0xff]  ;;  %v3340_v45 = vpack.c.bf16 %v2132_v15, %v2131_v4  ;;  %v3342_v12 = vpack.c.bf16 %v2150_v1, %v2149_v21 }
 0x1ac   :  { %3335 = vmatprep.subr.bf16.mxu0 %v3334_v48  ;;  %v2182_v39 = vld [vmem:[#allocation2 + $0x1e8] sm:$0xff]  ;;  %v2133_v60 = vld [vmem:[#allocation2 + $0x60] sm:$0xff]  ;;  %v3372_v55 = vpack.c.bf16 %v2164_v17, %v2163_v31  ;;  %v2151_v13 = vld [vmem:[#allocation2 + $0xf0] sm:$0xff] }
 0x1ad   :  { %3365 = vmatpush3.bf16.msra.mxu1 %v3364_v28  ;;  %v2104_v62 = vld [vmem:[%s5762_s3 + $0x8] sm:$0xff]  ;;  %v2165_v19 = vld [vmem:[#allocation2 + $0x160] sm:$0xff]  ;;  %v3374_v16 = vpack.c.bf16 %v2182_v39, %v2181_v57  ;;  %v2152_v29 = vld [vmem:[#allocation2 + $0xf8] sm:$0xff] }
 0x1ae   :  { %3367 = vmatprep.subr.bf16.mxu1 %v3366_v25  ;;  %v2134_v23 = vld [vmem:[#allocation2 + $0x68] sm:$0xff]  ;;  %2334 = vmatprep.mubr.f32.mxu0 %v2104_v62  ;;  %v2106_v38 = vld [vmem:[%s5762_s3 + $0x18] sm:$0xff]  ;;  %v2183_v54 = vld [vmem:[#allocation2 + $0x1f0] sm:$0xff]  ;;  %v3346_v6 = vpack.c.bf16 %v2152_v29, %v2151_v13 }
 0x1af   :  { %3337 = vmatpush3.bf16.msra.mxu0 %v3336_v53  ;;  %v2166_v0 = vld [vmem:[#allocation2 + $0x168] sm:$0xff]  ;;  %v2184_v3 = vld [vmem:[#allocation2 + $0x1f8] sm:$0xff]  ;;  %2409 = vmatprep.mubr.f32.mxu1 %v2106_v38  ;;  %v3344_v44 = vpack.c.bf16 %v2134_v23, %v2133_v60  ;;  %v2135_v58 = vld [vmem:[#allocation2 + $0x70] sm:$0xff] }
 0x1b0   :  { %3339 = vmatprep.subr.bf16.mxu0 %v3338_v43  ;;  %v3376_v2 = vpack.c.bf16 %v2166_v0, %v2165_v19  ;;  %v2136_v41 = vld [vmem:[#allocation2 + $0x78] sm:$0xff]  ;;  %v2167_v10 = vld [vmem:[#allocation2 + $0x170] sm:$0xff]  ;;  %v3378_v14 = vpack.c.bf16 %v2184_v3, %v2183_v54  ;;  %v2201_v5 = vld [vmem:[#allocation2 + $0x280] sm:$0xff] }
 0x1b1   :  { %3369 = vmatpush3.bf16.msra.mxu1 %v3368_v52  ;;  %v2168_v51 = vld [vmem:[#allocation2 + $0x178] sm:$0xff]  ;;  %v2202_v20 = vld [vmem:[#allocation2 + $0x288] sm:$0xff]  ;;  %v2233_v59 = vld [vmem:[#allocation2 + $0x380] sm:$0xff]  ;;  %v3348_v8 = vpack.c.bf16 %v2136_v41, %v2135_v58 }
 0x1b2   :  { %3371 = vmatprep.subr.bf16.mxu1 %v3370_v42  ;;  %v2234_v11 = vld [vmem:[#allocation2 + $0x388] sm:$0xff]  ;;  %v3380_v40 = vpack.c.bf16 %v2168_v51, %v2167_v10  ;;  %v3382_v9 = vpack.c.bf16 %v2202_v20, %v2201_v5  ;;  %v2185_v37 = vld [vmem:[#allocation2 + $0x200] sm:$0xff]  ;;  %v2203_v56 = vld [vmem:[#allocation2 + $0x290] sm:$0xff] }
 0x1b3   :  { %3341 = vmatpush3.bf16.msra.mxu0 %v3340_v45  ;;  %v2186_v7 = vld [vmem:[#allocation2 + $0x208] sm:$0xff]  ;;  %v2217_v34 = vld [vmem:[#allocation2 + $0x300] sm:$0xff]  ;;  %v3414_v36 = vpack.c.bf16 %v2234_v11, %v2233_v59  ;;  %v2204_v33 = vld [vmem:[#allocation2 + $0x298] sm:$0xff] }
 0x1b4   :  { %3343 = vmatprep.subr.bf16.mxu0 %v3342_v12  ;;  %v2218_v49 = vld [vmem:[#allocation2 + $0x308] sm:$0xff]  ;;  %v2235_v26 = vld [vmem:[#allocation2 + $0x390] sm:$0xff]  ;;  %v2236_v35 = vld [vmem:[#allocation2 + $0x398] sm:$0xff]  ;;  %v3384_v47 = vpack.c.bf16 %v2186_v7, %v2185_v37  ;;  %v3386_v48 = vpack.c.bf16 %v2204_v33, %v2203_v56 }
 0x1b5   :  { %3373 = vmatpush3.bf16.msra.mxu1 %v3372_v55  ;;  %v2103_v18 = vld [vmem:[%s5762_s3] sm:$0xff]  ;;  %v2105_v22 = vld [vmem:[%s5762_s3 + $0x10] sm:$0xff]  ;;  %v3416_v28 = vpack.c.bf16 %v2218_v49, %v2217_v34  ;;  %v2188_v24 = vld [vmem:[#allocation2 + $0x218] sm:$0xff]  ;;  %v3418_v25 = vpack.c.bf16 %v2236_v35, %v2235_v26 }
 0x1b6   :  { %3375 = vmatprep.subr.bf16.mxu1 %v3374_v16  ;;  %v2187_v46 = vld [vmem:[#allocation2 + $0x210] sm:$0xff]  ;;  %v2220_v32 = vld [vmem:[#allocation2 + $0x318] sm:$0xff]  ;;  %v2205_v61 = vld [vmem:[#allocation2 + $0x2a0] sm:$0xff] }
 0x1b7   :  { %3345 = vmatpush3.bf16.msra.mxu0 %v3344_v44  ;;  %v2219_v27 = vld [vmem:[#allocation2 + $0x310] sm:$0xff]  ;;  %v2206_v63 = vld [vmem:[#allocation2 + $0x2a8] sm:$0xff]  ;;  %v2237_v30 = vld [vmem:[#allocation2 + $0x3a0] sm:$0xff]  ;;  %v3388_v53 = vpack.c.bf16 %v2188_v24, %v2187_v46 }
 0x1b8   :  { %3347 = vmatprep.subr.bf16.mxu0 %v3346_v6  ;;  %v2238_v50 = vld [vmem:[#allocation2 + $0x3a8] sm:$0xff]  ;;  %v3420_v52 = vpack.c.bf16 %v2220_v32, %v2219_v27  ;;  %v3390_v43 = vpack.c.bf16 %v2206_v63, %v2205_v61  ;;  %v2189_v4 = vld [vmem:[#allocation2 + $0x220] sm:$0xff]  ;;  %v2207_v21 = vld [vmem:[#allocation2 + $0x2b0] sm:$0xff] }
 0x1b9   :  { %3377 = vmatpush3.bf16.msra.mxu1 %v3376_v2  ;;  %v2190_v15 = vld [vmem:[#allocation2 + $0x228] sm:$0xff]  ;;  %v2221_v31 = vld [vmem:[#allocation2 + $0x320] sm:$0xff]  ;;  %v3422_v42 = vpack.c.bf16 %v2238_v50, %v2237_v30  ;;  %v2208_v1 = vld [vmem:[#allocation2 + $0x2b8] sm:$0xff] }
 0x1ba   :  { %3379 = vmatprep.subr.bf16.mxu1 %v3378_v14  ;;  %v2222_v17 = vld [vmem:[#allocation2 + $0x328] sm:$0xff]  ;;  %v2239_v57 = vld [vmem:[#allocation2 + $0x3b0] sm:$0xff]  ;;  %v2240_v39 = vld [vmem:[#allocation2 + $0x3b8] sm:$0xff]  ;;  %v3392_v45 = vpack.c.bf16 %v2190_v15, %v2189_v4  ;;  %v3394_v23 = vpack.c.bf16 %v2208_v1, %v2207_v21 }
 0x1bb   :  { %3349 = vmatpush3.bf16.msra.mxu0 %v3348_v8  ;;  %v2191_v60 = vld [vmem:[#allocation2 + $0x230] sm:$0xff]  ;;  %v2192_v62 = vld [vmem:[#allocation2 + $0x238] sm:$0xff]  ;;  %v3424_v12 = vpack.c.bf16 %v2222_v17, %v2221_v31  ;;  %v2112_v16 = vld [vmem:[%s5762_s3 + $0x48] sm:$0xff]  ;;  %v3426_v13 = vpack.c.bf16 %v2240_v39, %v2239_v57 }
 0x1bc   :  { %3383 = vmatprep.subr.bf16.mxu0 %v3382_v9  ;;  %v2113_v55 = vld [vmem:[%s5762_s3 + $0x50] sm:$0xff]  ;;  %v2224_v0 = vld [vmem:[#allocation2 + $0x338] sm:$0xff]  ;;  %v2209_v29 = vld [vmem:[#allocation2 + $0x2c0] sm:$0xff]  ;;  %v3396_v6 = vpack.c.bf16 %v2192_v62, %v2191_v60 }
 0x1bd   :  { %3381 = vmatpush3.bf16.msra.mxu1 %v3380_v40  ;;  %v2223_v19 = vld [vmem:[#allocation2 + $0x330] sm:$0xff]  ;;  %v2210_v38 = vld [vmem:[#allocation2 + $0x2c8] sm:$0xff]  ;;  %v2115_v54 = vld [vmem:[%s5762_s3 + $0x60] sm:$0xff] }
 0x1be   :  { %3415 = vmatprep.subr.bf16.mxu1 %v3414_v36  ;;  %2335 = vmatmul.mubr.f32.vlgmr.msra.gmra.mrb[0].mxu0 %v2103_v18  ;;  %v2241_v3 = vld [vmem:[#allocation2 + $0x3c0] sm:$0xff]  ;;  %v2242_v44 = vld [vmem:[#allocation2 + $0x3c8] sm:$0xff]  ;;  %v2114_v2 = vld [vmem:[%s5762_s3 + $0x58] sm:$0xff]  ;;  %v3428_v10 = vpack.c.bf16 %v2224_v0, %v2223_v19  ;;  %v3398_v14 = vpack.c.bf16 %v2210_v38, %v2209_v29 }
 0x1bf   :  { %3385 = vmatpush3.bf16.msra.mxu0 %v3384_v47  ;;  %2339 = vmatprep.mubr.f32.mxu0 %v2113_v55  ;;  %v2193_v58 = vld [vmem:[#allocation2 + $0x240] sm:$0xff]  ;;  %v2108_v41 = vld [vmem:[%s5762_s3 + $0x28] sm:$0xff]  ;;  %v3430_v59 = vpack.c.bf16 %v2242_v44, %v2241_v3  ;;  %v2211_v11 = vld [vmem:[#allocation2 + $0x2d0] sm:$0xff] }
 0x1c0   :  { %2410 = vmatmul.mubr.f32.vlgmr.msra.gmra.mrb[0].mxu1 %v2105_v22  ;;  %3387 = vmatprep.subr.bf16.mxu0 %v3386_v48  ;;  %v2194_v51 = vld [vmem:[#allocation2 + $0x248] sm:$0xff]  ;;  %v2225_v5 = vld [vmem:[#allocation2 + $0x340] sm:$0xff]  ;;  %v2212_v8 = vld [vmem:[#allocation2 + $0x2d8] sm:$0xff] }
 0x1c1   :  { %3417 = vmatpush3.bf16.msra.mxu1 %v3416_v28  ;;  %2414 = vmatprep.mubr.f32.mxu1 %v2115_v54  ;;  %v2226_v20 = vld [vmem:[#allocation2 + $0x348] sm:$0xff]  ;;  %v2110_v40 = vld [vmem:[%s5762_s3 + $0x38] sm:$0xff]  ;;  %v2243_v9 = vld [vmem:[#allocation2 + $0x3d0] sm:$0xff]  ;;  %v3400_v7 = vpack.c.bf16 %v2194_v51, %v2193_v58  ;;  %v3402_v36 = vpack.c.bf16 %v2212_v8, %v2211_v11 }
 0x1c2   :  { %3419 = vmatprep.subr.bf16.mxu1 %v3418_v25  ;;  %2340 = vmatmul.mubr.f32.gmra.mrb[2].mxu0 %v2112_v16  ;;  %v2244_v37 = vld [vmem:[#allocation2 + $0x3d8] sm:$0xff]  ;;  %v3432_v34 = vpack.c.bf16 %v2226_v20, %v2225_v5  ;;  %v2195_v49 = vld [vmem:[#allocation2 + $0x250] sm:$0xff]  ;;  %v2213_v18 = vld [vmem:[#allocation2 + $0x2e0] sm:$0xff] }
 0x1c3   :  { %3389 = vmatpush3.bf16.msra.mxu0 %v3388_v53  ;;  %2484 = vmatprep.mubr.f32.mxu0 %v2108_v41  ;;  %v2196_v56 = vld [vmem:[#allocation2 + $0x258] sm:$0xff]  ;;  %v2227_v33 = vld [vmem:[#allocation2 + $0x350] sm:$0xff]  ;;  %v3434_v26 = vpack.c.bf16 %v2244_v37, %v2243_v9  ;;  %v2214_v47 = vld [vmem:[#allocation2 + $0x2e8] sm:$0xff] }
 0x1c4   :  { %3391 = vmatprep.subr.bf16.mxu0 %v3390_v43  ;;  %2415 = vmatmul.mubr.f32.gmra.mrb[2].mxu1 %v2114_v2  ;;  %v2228_v35 = vld [vmem:[#allocation2 + $0x358] sm:$0xff]  ;;  %v2245_v22 = vld [vmem:[#allocation2 + $0x3e0] sm:$0xff]  ;;  %v2246_v28 = vld [vmem:[#allocation2 + $0x3e8] sm:$0xff]  ;;  %v3404_v48 = vpack.c.bf16 %v2196_v56, %v2195_v49  ;;  %v3406_v24 = vpack.c.bf16 %v2214_v47, %v2213_v18 }
 0x1c5   :  { %3421 = vmatpush3.bf16.msra.mxu1 %v3420_v52  ;;  %2559 = vmatprep.mubr.f32.mxu1 %v2110_v40  ;;  %v3436_v46 = vpack.c.bf16 %v2228_v35, %v2227_v33  ;;  %v2197_v27 = vld [vmem:[#allocation2 + $0x260] sm:$0xff]  ;;  %v2198_v25 = vld [vmem:[#allocation2 + $0x268] sm:$0xff]  ;;  %v3438_v61 = vpack.c.bf16 %v2246_v28, %v2245_v22  ;;  %v2215_v30 = vld [vmem:[#allocation2 + $0x2f0] sm:$0xff] }
 0x1c6   :  { %3423 = vmatprep.subr.bf16.mxu1 %v3422_v42  ;;  %v2229_v32 = vld [vmem:[#allocation2 + $0x360] sm:$0xff]  ;;  %v2230_v63 = vld [vmem:[#allocation2 + $0x368] sm:$0xff]  ;;  %v2216_v50 = vld [vmem:[#allocation2 + $0x2f8] sm:$0xff]  ;;  %v3408_v43 = vpack.c.bf16 %v2198_v25, %v2197_v27 }
 0x1c7   :  { %3393 = vmatpush3.bf16.msra.mxu0 %v3392_v45  ;;  %v2247_v53 = vld [vmem:[#allocation2 + $0x3f0] sm:$0xff]  ;;  %v2248_v52 = vld [vmem:[#allocation2 + $0x3f8] sm:$0xff]  ;;  %v3440_v4 = vpack.c.bf16 %v2230_v63, %v2229_v32  ;;  %v3410_v15 = vpack.c.bf16 %v2216_v50, %v2215_v30  ;;  %v2249_v57 = vld [vmem:[#allocation2 + $0x400] sm:$0xff] }
 0x1c8   :  { %3395 = vmatprep.subr.bf16.mxu0 %v3394_v23  ;;  %v2199_v31 = vld [vmem:[#allocation2 + $0x270] sm:$0xff]  ;;  %v2200_v42 = vld [vmem:[#allocation2 + $0x278] sm:$0xff]  ;;  %v3442_v21 = vpack.c.bf16 %v2248_v52, %v2247_v53  ;;  %v2250_v39 = vld [vmem:[#allocation2 + $0x408] sm:$0xff] }
 0x1c9   :  { %3425 = vmatpush3.bf16.msra.mxu1 %v3424_v12  ;;  %v2231_v17 = vld [vmem:[#allocation2 + $0x370] sm:$0xff]  ;;  %v2232_v1 = vld [vmem:[#allocation2 + $0x378] sm:$0xff]  ;;  %v3412_v45 = vpack.c.bf16 %v2200_v42, %v2199_v31  ;;  %v3446_v62 = vpack.c.bf16 %v2250_v39, %v2249_v57  ;;  %v2107_v23 = vld [vmem:[%s5762_s3 + $0x20] sm:$0xff] }
 0x1ca   :  { %3427 = vmatprep.subr.bf16.mxu1 %v3426_v13  ;;  %v3444_v60 = vpack.c.bf16 %v2232_v1, %v2231_v17  ;;  %v2251_v55 = vld [vmem:[#allocation2 + $0x410] sm:$0xff]  ;;  %v2252_v12 = vld [vmem:[#allocation2 + $0x418] sm:$0xff]  ;;  %v2253_v13 = vld [vmem:[#allocation2 + $0x420] sm:$0xff] }
 0x1cb   :  { %3397 = vmatpush3.bf16.msra.mxu0 %v3396_v6  ;;  %v2109_v19 = vld [vmem:[%s5762_s3 + $0x30] sm:$0xff]  ;;  %v3450_v0 = vpack.c.bf16 %v2252_v12, %v2251_v55  ;;  %v2254_v29 = vld [vmem:[#allocation2 + $0x428] sm:$0xff]  ;;  %v2119_v38 = vld [vmem:[%s5762_s3 + $0x80] sm:$0xff] }
 0x1cc   :  { %3399 = vmatprep.subr.bf16.mxu0 %v3398_v14  ;;  %v2117_v16 = vld [vmem:[%s5762_s3 + $0x70] sm:$0xff]  ;;  %v2116_v54 = vld [vmem:[%s5762_s3 + $0x68] sm:$0xff]  ;;  %v2118_v3 = vld [vmem:[%s5762_s3 + $0x78] sm:$0xff]  ;;  %v3454_v44 = vpack.c.bf16 %v2254_v29, %v2253_v13 }
 0x1cd   :  { %3429 = vmatpush3.bf16.msra.mxu1 %v3428_v10  ;;  %v2255_v2 = vld [vmem:[#allocation2 + $0x430] sm:$0xff]  ;;  %v2256_v6 = vld [vmem:[#allocation2 + $0x438] sm:$0xff]  ;;  %v2111_v58 = vld [vmem:[%s5762_s3 + $0x40] sm:$0xff] }
 0x1ce   :  { %3431 = vmatprep.subr.bf16.mxu1 %v3430_v59  ;;  %v3458_v41 = vpack.c.bf16 %v2256_v6, %v2255_v2  ;;  %v2257_v10 = vld [vmem:[#allocation2 + $0x440] sm:$0xff]  ;;  %v2258_v14 = vld [vmem:[#allocation2 + $0x448] sm:$0xff]  ;;  %v2259_v5 = vld [vmem:[#allocation2 + $0x450] sm:$0xff] }
 0x1cf   :  { %3401 = vmatpush3.bf16.msra.mxu0 %v3400_v7  ;;  %v3462_v51 = vpack.c.bf16 %v2258_v14, %v2257_v10  ;;  %v2260_v20 = vld [vmem:[#allocation2 + $0x458] sm:$0xff]  ;;  %v2120_v11 = vld [vmem:[%s5762_s3 + $0x88] sm:$0xff]  ;;  %v2261_v40 = vld [vmem:[%s5763_s4] sm:$0xff] }
 0x1d0   :  { %3403 = vmatprep.subr.bf16.mxu0 %v3402_v36  ;;  %v3466_v59 = vpack.c.bf16 %v2260_v20, %v2259_v5 }
 0x1d1   :  { %3433 = vmatpush3.bf16.msra.mxu1 %v3432_v34 }
 0x1d2   :  { %3435 = vmatprep.subr.bf16.mxu1 %v3434_v26  ;;  %v2262_v26 = vld [vmem:[%s5763_s4 + $0x8] sm:$0xff] }
 0x1d3   :  { %3405 = vmatpush3.bf16.msra.mxu0 %v3404_v48 }
 0x1d4   :  { %3407 = vmatprep.subr.bf16.mxu0 %v3406_v24 }
 0x1d5   :  { %3437 = vmatpush3.bf16.msra.mxu1 %v3436_v46 }
 0x1d6   :  { %3439 = vmatprep.subr.bf16.mxu1 %v3438_v61 }
 0x1d7   :  { %3409 = vmatpush3.bf16.msra.mxu0 %v3408_v43 }
 0x1d8   :  { %3411 = vmatprep.subr.bf16.mxu0 %v3410_v15 }
 0x1d9   :  { %3441 = vmatpush3.bf16.msra.mxu1 %v3440_v4 }
 0x1da   :  { %3443 = vmatprep.subr.bf16.mxu1 %v3442_v21 }
 0x1db   :  { %3413 = vmatpush3.bf16.msra.mxu0 %v3412_v45 }
 0x1dc   :  { %3447 = vmatprep.subr.bf16.mxu0 %v3446_v62 }
 0x1dd   :  { %3445 = vmatpush3.bf16.msra.mxu1 %v3444_v60 }
 0x1de   :  { %2485 = vmatmul.mubr.f32.vlgmr.msra.gmra.mrb[4].mxu0 %v2107_v23 }
 0x1df   :  { %3449 = vmatpush3.bf16.msra.mxu0 %v3446_v62  ;;  %2489 = vmatprep.mubr.f32.mxu0 %v2117_v16 }
 0x1e0   :  { %2560 = vmatmul.mubr.f32.vlgmr.msra.gmra.mrb[4].mxu1 %v2109_v19  ;;  %3451 = vmatprep.subr.bf16.mxu0 %v3450_v0 }
 0x1e1   :  { %2564 = vmatprep.mubr.f32.mxu1 %v2119_v38 }
 0x1e2   :  { %2490 = vmatmul.mubr.f32.gmra.mrb[6].mxu0 %v2116_v54 }
 0x1e3   :  { %3453 = vmatpush3.bf16.msra.mxu0 %v3450_v0  ;;  %3315 = vmatprep.mubr.msk.f32.mxu0 %vm2263_vm0, %v2111_v58 }
 0x1e4   :  { %2565 = vmatmul.mubr.f32.gmra.mrb[6].mxu1 %v2118_v3  ;;  %3455 = vmatprep.subr.bf16.mxu0 %v3454_v44 }
 0x1e7   :  { %3457 = vmatpush3.bf16.msra.mxu0 %v3454_v44 }
 0x1e8   :  { %3459 = vmatprep.subr.bf16.mxu0 %v3458_v41 }
 0x1eb   :  { %3461 = vmatpush3.bf16.msra.mxu0 %v3458_v41 }
 0x1ec   :  { %3463 = vmatprep.subr.bf16.mxu0 %v3462_v51 }
 0x1ef   :  { %3465 = vmatpush3.bf16.msra.mxu0 %v3462_v51 }
 0x1f0   :  { %3467 = vmatprep.subr.bf16.mxu0 %v3466_v59 }
 0x1f3   :  { %3469 = vmatpush3.bf16.msra.mxu0 %v3466_v59 }
 0x1f6   :  { %3316 = vmatmul.mubr.msk.f32.vlgmr.msra.gmra.mrb[8].mxu0 %vm2263_vm0, %v2120_v11 }
 0x291   :  { %v3157_v8 = vpop.f32.mrb[0].mxu0 }
 0x292   :  { %v3158_v9 = vpop.f32.mrb[1].mxu0 }
 0x293   :  { %v3195_v37 = vpop.f32.mrb[0].mxu1  ;;  %v3159_v7 = vadd.f32 %v3158_v9, %v3157_v8 }
 0x294   :  { %v3196_v34 = vpop.f32.mrb[1].mxu1 }
 0x295   :  { %v3197_v36 = vadd.f32 %v3196_v34, %v3195_v37  ;;  %v2337_v49 = vadd.f32 %v3159_v7, %v2261_v40  ;;  %v3160_v33 = vpop.f32.mrb[2].mxu0 }
 0x296   :  { %v3161_v35 = vpop.f32.mrb[3].mxu0 }
 0x297   :  { %v2412_v56 = vadd.f32 %v3197_v36, %v2337_v49  ;;  %v3198_v18 = vpop.f32.mrb[2].mxu1  ;;  %v3162_v47 = vadd.f32 %v3161_v35, %v3160_v33 }
 0x298   :  { %v3199_v22 = vpop.f32.mrb[3].mxu1 }
 0x299   :  { %v3200_v28 = vadd.f32 %v3199_v22, %v3198_v18  ;;  %v2342_v48 = vadd.f32 %v3162_v47, %v2262_v26 }
 0x29b   :  { %v2417_v46 = vadd.f32 %v3200_v28, %v2342_v48 }
 0x2b1   :  { %v3233_v24 = vpop.f32.mrb[4].mxu0 }
 0x2b2   :  { %v3234_v27 = vpop.f32.mrb[5].mxu0 }
 0x2b3   :  { %v3271_v25 = vpop.f32.mrb[4].mxu1  ;;  %v3235_v32 = vadd.f32 %v3234_v27, %v3233_v24 }
 0x2b4   :  { %v3272_v61 = vpop.f32.mrb[5].mxu1 }
 0x2b5   :  { %v3273_v63 = vadd.f32 %v3272_v61, %v3271_v25  ;;  %v2487_v30 = vadd.f32 %v3235_v32, %v2412_v56  ;;  %v3236_v50 = vpop.f32.mrb[6].mxu0 }
 0x2b6   :  { %v3237_v53 = vpop.f32.mrb[7].mxu0 }
 0x2b7   :  { %v3274_v52 = vpop.f32.mrb[6].mxu1  ;;  %v3238_v43 = vadd.f32 %v3237_v53, %v3236_v50  ;;  %v2562_v15 = vadd.f32 %v3273_v63, %v2487_v30 }
 0x2b8   :  { %v3275_v4 = vpop.f32.mrb[7].mxu1 }
 0x2b9   :  { %v3276_v31 = vadd.f32 %v3275_v4, %v3274_v52  ;;  %v2492_v42 = vadd.f32 %v3238_v43, %v2417_v46 }
 0x2bb   :  { %v2567_v17 = vadd.f32 %v3276_v31, %v2492_v42 }
 0x2c9   :  { %v3317_v21 = vpop.f32.mrb[8].mxu0 }
 0x2ca   :  { %v2642_v1 = vadd.f32 %v3317_v21, %v2567_v17  ;;  %v2636_v57 = vpop.f32.mrb[9].mxu0 }
 0x2cb   :  { %v2637_v39 = vadd.f32 %v2636_v57, %v2562_v15 }
 0x2cc   :  { %2646 = vst [vmem:[%s5764_s5 + $0x8] sm:$0xff] %v2642_v1 }
 0x2cd   :  { %2645 = vst [vmem:[%s5764_s5] sm:$0xff] %v2637_v39 }
 0x2ce   :  { %2651 = vsyncpa [#allocation4], 1 }

</bundles_post_ra>
